<compile_context>
chip_gen: v7x
topology: tpu7x:2x2x1
jax: 0.10.0
libtpu: 0.0.40
codegen_flags: <defaults>
</compile_context>

<pallas_src>
import jax
import jax.numpy as jnp
from jax.experimental import pallas as pl
from jax.experimental.pallas import tpu as pltpu

# ---- model dimensions (fixed by the module definition) ----
N = 16                      # nodes per graph (size of A_hat) - small test size
D_IN = 300                  # semantic feature dim
H1, H3, H5, H6 = 512, 256, 128, 128
D_CAT = H1 + H3 + H5 + H6   # 1024
D_OUT = 128
NEG_SLOPE = 0.01            # nn.LeakyReLU() default
GRAPHS_PER_STEP = 8         # graphs fused per grid step -> 8*16 = 128 MXU rows

# Packed "tail" buffer layout (everything that is 128 lanes wide), row offsets.
_W5_OFF = 0
_W6_OFF = _W5_OFF + H3            # 256
_WFC_OFF = _W6_OFF + H5           # 384   (start of fc weight, K = 1024)
_WFC1_OFF = _WFC_OFF              # 384   rows matching h1 (512)
_WFC3_OFF = _WFC1_OFF + H1        # 896   rows matching h3 (256)
_WFC5_OFF = _WFC3_OFF + H3        # 1152  rows matching h5 (128)
_WFC6_OFF = _WFC5_OFF + H5        # 1280  rows matching h6 (128)
_TAIL_ROWS = _WFC6_OFF + H6       # 1408


def _leaky_relu(x):
    return jnp.where(x > 0, x, NEG_SLOPE * x)


def _l2_normalize_rows(x):
    # Matches torch L2_normalization exactly (NO epsilon, as in the module);
    # rsqrt * x keeps the transcendental on the EUP slot.
    ss = jnp.sum(x * x, axis=1, keepdims=True)
    return x * jax.lax.rsqrt(ss)


def gcn_jk_kernel(a_ref, x_ref, w1_ref, w3_ref, wt_ref, bfc_ref, out_ref):
    f32, bf16 = jnp.float32, jnp.bfloat16

    a = a_ref[...]                          # [M, M] bf16 block-diagonal A_hat
    x = x_ref[...]                          # [M, D_IN] f32 input features

    # layer1: (A @ x) @ W1 -- same association as the torch module.
    ax = jnp.dot(a, x.astype(bf16), preferred_element_type=f32)
    h1 = _leaky_relu(jnp.dot(ax.astype(bf16), w1_ref[...],
                             preferred_element_type=f32))            # [M, 512]

    def gcn_layer(h, w):
        # out_dim <= in_dim here, so reassociate to A @ (h @ W): the adjacency
        # matmul then runs at the narrower output width. LeakyReLU stays f32.
        hw = jnp.dot(h.astype(bf16), w, preferred_element_type=f32)
        return _leaky_relu(jnp.dot(a, hw.astype(bf16),
                                   preferred_element_type=f32))

    h3 = gcn_layer(h1, w3_ref[...])                                   # [M, 256]
    h5 = gcn_layer(h3, wt_ref[_W5_OFF:_W6_OFF, :])                    # [M, 128]
    h6 = gcn_layer(h5, wt_ref[_W6_OFF:_WFC_OFF, :])                   # [M, 128]

    # fc(concat([h1, h3, h5, h6])) as four static-slice partial products summed
    # in f32 -- avoids materializing the [M, 1024] bf16 concat in VMEM.
    y = jnp.dot(h1.astype(bf16), wt_ref[_WFC1_OFF:_WFC3_OFF, :],
                preferred_element_type=f32)
    y = y + jnp.dot(h3.astype(bf16), wt_ref[_WFC3_OFF:_WFC5_OFF, :],
                    preferred_element_type=f32)
    y = y + jnp.dot(h5.astype(bf16), wt_ref[_WFC5_OFF:_WFC6_OFF, :],
                    preferred_element_type=f32)
    y = y + jnp.dot(h6.astype(bf16), wt_ref[_WFC6_OFF:_TAIL_ROWS, :],
                    preferred_element_type=f32)
    y = y + bfc_ref[...]

    y = _l2_normalize_rows(y)   # L2_normalization inside self.fc
    y = _l2_normalize_rows(y)   # self.L2_nornal_layer (applied again, as torch)
    out_ref[...] = y


# Unblocked, fully-resident VMEM operands (single DMA, no double buffering).
_VMEM = pl.BlockSpec(memory_space=pltpu.MemorySpace.VMEM)


def prepare_params(a_hat, w1, w3, w5, w6, wfc_t, bfc,
                   graphs_per_step=GRAPHS_PER_STEP):
    """One-time parameter prep. Keep OUT of the per-call forward (perf review
    item #1): bf16 casts, packing of the 128-wide weights, block-diagonal A."""
    bf16 = jnp.bfloat16
    # Block-diagonal A_hat so GRAPHS_PER_STEP graphs are applied with a single
    # dense MXU matmul per layer (only sensible because N=16 is tiny).
    a_blk = jnp.kron(jnp.eye(graphs_per_step, dtype=jnp.float32),
                     a_hat).astype(bf16)                     # [G*N, G*N]
    w_tail = jnp.concatenate([w5, w6, wfc_t], axis=0).astype(bf16)  # [1408,128]
    return (a_blk, w1.astype(bf16), w3.astype(bf16), w_tail,
            bfc.astype(jnp.float32).reshape(1, D_OUT))


@jax.jit
def gcn_jk_forward(params, x_batch):
    """Batched forward: per-graph semantics identical to the torch module."""
    a_blk, w1_b, w3_b, w_tail, bfc = params
    batch, n, d_in = x_batch.shape
    assert n == N and d_in == D_IN
    m_step = a_blk.shape[0]
    graphs_per_step = m_step // N
    assert batch % graphs_per_step == 0, "batch must be a multiple of GRAPHS_PER_STEP"
    # TODO(synk): pad the batch up to a multiple of GRAPHS_PER_STEP for arbitrary B.
    steps = batch // graphs_per_step

    # (B, N) -> (B*N) row merge is layout-preserving (N is a multiple of 8).
    x2d = x_batch.reshape(batch * N, D_IN)

    # TODO(synk): if this forward is one layer of a larger per-step model,
    # prefetch the packed weights across pallas_call boundaries (semaphore +
    # VMEM-ref futures) instead of paying the one-time weight DMA here.
    out = pl.pallas_call(
        gcn_jk_kernel,
        out_shape=jax.ShapeDtypeStruct((batch * N, D_OUT), jnp.float32),
        grid=(steps,),
        in_specs=[
            _VMEM,                                            # a_blk (resident)
            pl.BlockSpec((m_step, D_IN), lambda i: (i, 0)),   # x rows per step
            _VMEM,                                            # w1
            _VMEM,                                            # w3
            _VMEM,                                            # packed w5/w6/wfc
            _VMEM,                                            # fc bias
        ],
        out_specs=pl.BlockSpec((m_step, D_OUT), lambda i: (i, 0)),
        compiler_params=pltpu.CompilerParams(
            dimension_semantics=("parallel",)),   # v7x: split steps over 2 TCs
    )(a_blk, x2d, w1_b, w3_b, w_tail, bfc)
    return out.reshape(batch, N, D_OUT)


def reference_forward(a_hat, x_batch, w1, w3, w5, w6, wfc_t, bfc):
    # Pure f32 reference following the original module's operation order.
    def l2n(v):
        return v / jnp.sqrt(jnp.sum(v * v, axis=1, keepdims=True))

    def one(x):
        def gcn(h, w):
            return _leaky_relu(a_hat @ h @ w)
        x1 = gcn(x, w1)
        x3 = gcn(x1, w3)
        x5 = gcn(x3, w5)
        x6 = gcn(x5, w6)
        cat = jnp.concatenate([x1, x3, x5, x6], axis=1)
        y = cat @ wfc_t + bfc
        return l2n(l2n(y))

    return jax.vmap(one)(x_batch)


if __name__ == "__main__":
    B = 16   # batch of semantic matrices sharing the same graph
    key = jax.random.PRNGKey(0)
    k_graph, k_x, k1, k3, k5, k6, kfc = jax.random.split(key, 7)

    # Deterministic normalized adjacency A_hat = D^-1/2 (A + I) D^-1/2.
    adj = (jax.random.uniform(k_graph, (N, N)) > 0.7).astype(jnp.float32)
    adj = jnp.maximum(adj, adj.T) + jnp.eye(N, dtype=jnp.float32)
    deg_inv_sqrt = 1.0 / jnp.sqrt(jnp.sum(adj, axis=1))
    a_hat = adj * deg_inv_sqrt[:, None] * deg_inv_sqrt[None, :]

    # Input semantic matrices [B, N, 300].
    x_batch = jax.random.normal(k_x, (B, N, D_IN), dtype=jnp.float32)

    # Parameters: GCN weights [in, out] ~ U(-0.001, 0.001) (init_weights);
    # GCN biases are unused in forward. fc weight [128, 1024] + zero bias.
    def unif(k, shape):
        return jax.random.uniform(k, shape, jnp.float32, -0.001, 0.001)

    w1 = unif(k1, (D_IN, H1))
    w3 = unif(k3, (H1, H3))
    w5 = unif(k5, (H3, H5))
    w6 = unif(k6, (H5, H6))
    wfc = unif(kfc, (D_OUT, D_CAT))      # nn.Linear(1024, 128).weight shape
    wfc_t = wfc.T                        # [1024, 128] row-major for the kernel
    bfc = jnp.zeros((1, D_OUT), jnp.float32)

    # One-time prep (bf16 casts / packing / block-diag A) outside the forward.
    params = prepare_params(a_hat, w1, w3, w5, w6, wfc_t, bfc)
    params = jax.tree_util.tree_map(jax.block_until_ready, params)

    out = gcn_jk_forward(params, x_batch)
    out = jax.block_until_ready(out)

    ref = reference_forward(a_hat, x_batch, w1, w3, w5, w6, wfc_t, bfc)
    assert out.shape == (B, N, D_OUT)
    assert bool(jnp.all(jnp.isfinite(out)))
    # bf16 MXU operands (weights + adjacency + activations) vs f32 reference.
    assert bool(jnp.allclose(out, ref, rtol=5e-2, atol=5e-3)), "mismatch vs reference"

    print("KERNEL_OK")
</pallas_src>

<mosaic_0001>
module attributes {stable_mosaic.version = 11 : i64} {
  func.func @gcn_jk_kernel(%arg0: i32, %arg1: memref<128x128xbf16, #tpu.memory_space<vmem>>, %arg2: memref<128x300xf32, #tpu.memory_space<vmem>>, %arg3: memref<300x512xbf16, #tpu.memory_space<vmem>>, %arg4: memref<512x256xbf16, #tpu.memory_space<vmem>>, %arg5: memref<1408x128xbf16, #tpu.memory_space<vmem>>, %arg6: memref<1x128xf32, #tpu.memory_space<vmem>>, %arg7: memref<128x128xf32, #tpu.memory_space<vmem>>) attributes {dimension_semantics = [#tpu.dimension_semantics<parallel>], iteration_bounds = array<i64: 2>, scalar_prefetch = 0 : i64, scratch_operands = 0 : i64, tpu.core_type = #tpu.core_type<tc>, window_params = [{pipeline_mode = #tpu.pipeline_mode<synchronous>, transform_indices = @transform_0, window_bounds = array<i64: 128, 128>}, {transform_indices = @transform_1, window_bounds = array<i64: 128, 300>}, {pipeline_mode = #tpu.pipeline_mode<synchronous>, transform_indices = @transform_2, window_bounds = array<i64: 300, 512>}, {pipeline_mode = #tpu.pipeline_mode<synchronous>, transform_indices = @transform_3, window_bounds = array<i64: 512, 256>}, {pipeline_mode = #tpu.pipeline_mode<synchronous>, transform_indices = @transform_4, window_bounds = array<i64: 1408, 128>}, {pipeline_mode = #tpu.pipeline_mode<synchronous>, transform_indices = @transform_5, window_bounds = array<i64: 1, 128>}, {transform_indices = @transform_6, window_bounds = array<i64: 128, 128>}]} {
    %c0 = arith.constant 0 : index
    %c0_0 = arith.constant 0 : index
    %0 = vector.load %arg1[%c0, %c0_0] : memref<128x128xbf16, #tpu.memory_space<vmem>>, vector<128x128xbf16>
    %c0_1 = arith.constant 0 : index
    %c0_2 = arith.constant 0 : index
    %1 = vector.load %arg2[%c0_1, %c0_2] : memref<128x300xf32, #tpu.memory_space<vmem>>, vector<128x300xf32>
    %2 = arith.truncf %1 : vector<128x300xf32> to vector<128x300xbf16>
    %cst = arith.constant dense<0.000000e+00> : vector<128x300xf32>
    %3 = tpu.matmul %0, %2, %cst {dimension_numbers = #tpu.dot_dimension_numbers<[1], [0], [0], [1], [0, 0, 1, 1], [], []>} : vector<128x128xbf16>, vector<128x300xbf16>, vector<128x300xf32> -> vector<128x300xf32>
    %4 = arith.truncf %3 : vector<128x300xf32> to vector<128x300xbf16>
    %c0_3 = arith.constant 0 : index
    %c0_4 = arith.constant 0 : index
    %5 = vector.load %arg3[%c0_3, %c0_4] : memref<300x512xbf16, #tpu.memory_space<vmem>>, vector<300x512xbf16>
    %cst_5 = arith.constant dense<0.000000e+00> : vector<128x512xf32>
    %6 = tpu.matmul %4, %5, %cst_5 {dimension_numbers = #tpu.dot_dimension_numbers<[1], [0], [0], [1], [0, 0, 1, 1], [], []>} : vector<128x300xbf16>, vector<300x512xbf16>, vector<128x512xf32> -> vector<128x512xf32>
    %cst_6 = arith.constant 0.000000e+00 : f32
    %7 = vector.broadcast %cst_6 : f32 to vector<128x512xf32>
    %8 = arith.cmpf ogt, %6, %7 : vector<128x512xf32>
    %cst_7 = arith.constant 0.00999999977 : f32
    %9 = vector.broadcast %cst_7 : f32 to vector<128x512xf32>
    %10 = arith.mulf %9, %6 : vector<128x512xf32>
    %11 = arith.select %8, %6, %10 : vector<128x512xi1>, vector<128x512xf32>
    %c0_8 = arith.constant 0 : index
    %c0_9 = arith.constant 0 : index
    %12 = vector.load %arg4[%c0_8, %c0_9] : memref<512x256xbf16, #tpu.memory_space<vmem>>, vector<512x256xbf16>
    %13 = arith.truncf %11 : vector<128x512xf32> to vector<128x512xbf16>
    %cst_10 = arith.constant dense<0.000000e+00> : vector<128x256xf32>
    %14 = tpu.matmul %13, %12, %cst_10 {dimension_numbers = #tpu.dot_dimension_numbers<[1], [0], [0], [1], [0, 0, 1, 1], [], []>} : vector<128x512xbf16>, vector<512x256xbf16>, vector<128x256xf32> -> vector<128x256xf32>
    %15 = arith.truncf %14 : vector<128x256xf32> to vector<128x256xbf16>
    %cst_11 = arith.constant dense<0.000000e+00> : vector<128x256xf32>
    %16 = tpu.matmul %0, %15, %cst_11 {dimension_numbers = #tpu.dot_dimension_numbers<[1], [0], [0], [1], [0, 0, 1, 1], [], []>} : vector<128x128xbf16>, vector<128x256xbf16>, vector<128x256xf32> -> vector<128x256xf32>
    %cst_12 = arith.constant 0.000000e+00 : f32
    %17 = vector.broadcast %cst_12 : f32 to vector<128x256xf32>
    %18 = arith.cmpf ogt, %16, %17 : vector<128x256xf32>
    %cst_13 = arith.constant 0.00999999977 : f32
    %19 = vector.broadcast %cst_13 : f32 to vector<128x256xf32>
    %20 = arith.mulf %19, %16 : vector<128x256xf32>
    %21 = arith.select %18, %16, %20 : vector<128x256xi1>, vector<128x256xf32>
    %c0_14 = arith.constant 0 : index
    %c0_15 = arith.constant 0 : index
    %22 = vector.load %arg5[%c0_14, %c0_15] : memref<1408x128xbf16, #tpu.memory_space<vmem>>, vector<256x128xbf16>
    %23 = arith.truncf %21 : vector<128x256xf32> to vector<128x256xbf16>
    %cst_16 = arith.constant dense<0.000000e+00> : vector<128x128xf32>
    %24 = tpu.matmul %23, %22, %cst_16 {dimension_numbers = #tpu.dot_dimension_numbers<[1], [0], [0], [1], [0, 0, 1, 1], [], []>} : vector<128x256xbf16>, vector<256x128xbf16>, vector<128x128xf32> -> vector<128x128xf32>
    %25 = arith.truncf %24 : vector<128x128xf32> to vector<128x128xbf16>
    %cst_17 = arith.constant dense<0.000000e+00> : vector<128x128xf32>
    %26 = tpu.matmul %0, %25, %cst_17 {dimension_numbers = #tpu.dot_dimension_numbers<[1], [0], [0], [1], [0, 0, 1, 1], [], []>} : vector<128x128xbf16>, vector<128x128xbf16>, vector<128x128xf32> -> vector<128x128xf32>
    %cst_18 = arith.constant 0.000000e+00 : f32
    %27 = vector.broadcast %cst_18 : f32 to vector<128x128xf32>
    %28 = arith.cmpf ogt, %26, %27 : vector<128x128xf32>
    %cst_19 = arith.constant 0.00999999977 : f32
    %29 = vector.broadcast %cst_19 : f32 to vector<128x128xf32>
    %30 = arith.mulf %29, %26 : vector<128x128xf32>
    %31 = arith.select %28, %26, %30 : vector<128x128xi1>, vector<128x128xf32>
    %c256 = arith.constant 256 : index
    %c0_20 = arith.constant 0 : index
    %32 = vector.load %arg5[%c256, %c0_20] : memref<1408x128xbf16, #tpu.memory_space<vmem>>, vector<128x128xbf16>
    %33 = arith.truncf %31 : vector<128x128xf32> to vector<128x128xbf16>
    %cst_21 = arith.constant dense<0.000000e+00> : vector<128x128xf32>
    %34 = tpu.matmul %33, %32, %cst_21 {dimension_numbers = #tpu.dot_dimension_numbers<[1], [0], [0], [1], [0, 0, 1, 1], [], []>} : vector<128x128xbf16>, vector<128x128xbf16>, vector<128x128xf32> -> vector<128x128xf32>
    %35 = arith.truncf %34 : vector<128x128xf32> to vector<128x128xbf16>
    %cst_22 = arith.constant dense<0.000000e+00> : vector<128x128xf32>
    %36 = tpu.matmul %0, %35, %cst_22 {dimension_numbers = #tpu.dot_dimension_numbers<[1], [0], [0], [1], [0, 0, 1, 1], [], []>} : vector<128x128xbf16>, vector<128x128xbf16>, vector<128x128xf32> -> vector<128x128xf32>
    %cst_23 = arith.constant 0.000000e+00 : f32
    %37 = vector.broadcast %cst_23 : f32 to vector<128x128xf32>
    %38 = arith.cmpf ogt, %36, %37 : vector<128x128xf32>
    %cst_24 = arith.constant 0.00999999977 : f32
    %39 = vector.broadcast %cst_24 : f32 to vector<128x128xf32>
    %40 = arith.mulf %39, %36 : vector<128x128xf32>
    %41 = arith.select %38, %36, %40 : vector<128x128xi1>, vector<128x128xf32>
    %42 = arith.truncf %11 : vector<128x512xf32> to vector<128x512xbf16>
    %c384 = arith.constant 384 : index
    %c0_25 = arith.constant 0 : index
    %43 = vector.load %arg5[%c384, %c0_25] : memref<1408x128xbf16, #tpu.memory_space<vmem>>, vector<512x128xbf16>
    %cst_26 = arith.constant dense<0.000000e+00> : vector<128x128xf32>
    %44 = tpu.matmul %42, %43, %cst_26 {dimension_numbers = #tpu.dot_dimension_numbers<[1], [0], [0], [1], [0, 0, 1, 1], [], []>} : vector<128x512xbf16>, vector<512x128xbf16>, vector<128x128xf32> -> vector<128x128xf32>
    %45 = arith.truncf %21 : vector<128x256xf32> to vector<128x256xbf16>
    %c896 = arith.constant 896 : index
    %c0_27 = arith.constant 0 : index
    %46 = vector.load %arg5[%c896, %c0_27] : memref<1408x128xbf16, #tpu.memory_space<vmem>>, vector<256x128xbf16>
    %cst_28 = arith.constant dense<0.000000e+00> : vector<128x128xf32>
    %47 = tpu.matmul %45, %46, %cst_28 {dimension_numbers = #tpu.dot_dimension_numbers<[1], [0], [0], [1], [0, 0, 1, 1], [], []>} : vector<128x256xbf16>, vector<256x128xbf16>, vector<128x128xf32> -> vector<128x128xf32>
    %48 = arith.addf %44, %47 : vector<128x128xf32>
    %49 = arith.truncf %31 : vector<128x128xf32> to vector<128x128xbf16>
    %c1152 = arith.constant 1152 : index
    %c0_29 = arith.constant 0 : index
    %50 = vector.load %arg5[%c1152, %c0_29] : memref<1408x128xbf16, #tpu.memory_space<vmem>>, vector<128x128xbf16>
    %cst_30 = arith.constant dense<0.000000e+00> : vector<128x128xf32>
    %51 = tpu.matmul %49, %50, %cst_30 {dimension_numbers = #tpu.dot_dimension_numbers<[1], [0], [0], [1], [0, 0, 1, 1], [], []>} : vector<128x128xbf16>, vector<128x128xbf16>, vector<128x128xf32> -> vector<128x128xf32>
    %52 = arith.addf %48, %51 : vector<128x128xf32>
    %53 = arith.truncf %41 : vector<128x128xf32> to vector<128x128xbf16>
    %c1280 = arith.constant 1280 : index
    %c0_31 = arith.constant 0 : index
    %54 = vector.load %arg5[%c1280, %c0_31] : memref<1408x128xbf16, #tpu.memory_space<vmem>>, vector<128x128xbf16>
    %cst_32 = arith.constant dense<0.000000e+00> : vector<128x128xf32>
    %55 = tpu.matmul %53, %54, %cst_32 {dimension_numbers = #tpu.dot_dimension_numbers<[1], [0], [0], [1], [0, 0, 1, 1], [], []>} : vector<128x128xbf16>, vector<128x128xbf16>, vector<128x128xf32> -> vector<128x128xf32>
    %56 = arith.addf %52, %55 : vector<128x128xf32>
    %c0_33 = arith.constant 0 : index
    %c0_34 = arith.constant 0 : index
    %57 = vector.load %arg6[%c0_33, %c0_34] : memref<1x128xf32, #tpu.memory_space<vmem>>, vector<1x128xf32>
    %58 = vector.broadcast %57 : vector<1x128xf32> to vector<128x128xf32>
    %59 = arith.addf %56, %58 : vector<128x128xf32>
    %60 = arith.mulf %59, %59 : vector<128x128xf32>
    %cst_35 = arith.constant dense<0.000000e+00> : vector<128xf32>
    %61 = vector.multi_reduction <add>, %60, %cst_35 [1] : vector<128x128xf32> to vector<128xf32>
    %62 = vector.shape_cast %61 : vector<128xf32> to vector<128x1xf32>
    %63 = math.rsqrt %62 : vector<128x1xf32>
    %64 = vector.broadcast %63 : vector<128x1xf32> to vector<128x128xf32>
    %65 = arith.mulf %59, %64 : vector<128x128xf32>
    %66 = arith.mulf %65, %65 : vector<128x128xf32>
    %cst_36 = arith.constant dense<0.000000e+00> : vector<128xf32>
    %67 = vector.multi_reduction <add>, %66, %cst_36 [1] : vector<128x128xf32> to vector<128xf32>
    %68 = vector.shape_cast %67 : vector<128xf32> to vector<128x1xf32>
    %69 = math.rsqrt %68 : vector<128x1xf32>
    %70 = vector.broadcast %69 : vector<128x1xf32> to vector<128x128xf32>
    %71 = arith.mulf %65, %70 : vector<128x128xf32>
    %c0_37 = arith.constant 0 : index
    %c0_38 = arith.constant 0 : index
    %72 = vector.load %arg7[%c0_37, %c0_38] : memref<128x128xf32, #tpu.memory_space<vmem>>, vector<128x128xf32>
    tpu.vector_store %arg7[%c0_37, %c0_38], %71 {strides = array<i32>} : memref<128x128xf32, #tpu.memory_space<vmem>>, vector<128x128xf32>,
    return
  }
  func.func @transform_0(%arg0: i32) -> (i32, i32) {
    %c0_i32 = arith.constant 0 : i32
    %c0_i32_0 = arith.constant 0 : i32
    %c0_i32_1 = arith.constant 0 : i32
    return %c0_i32, %c0_i32_0 : i32, i32
  }
  func.func @transform_1(%arg0: i32) -> (i32, i32) {
    %c0_i32 = arith.constant 0 : i32
    %c0_i32_0 = arith.constant 0 : i32
    return %arg0, %c0_i32 : i32, i32
  }
  func.func @transform_2(%arg0: i32) -> (i32, i32) {
    %c0_i32 = arith.constant 0 : i32
    %c0_i32_0 = arith.constant 0 : i32
    %c0_i32_1 = arith.constant 0 : i32
    return %c0_i32, %c0_i32_0 : i32, i32
  }
  func.func @transform_3(%arg0: i32) -> (i32, i32) {
    %c0_i32 = arith.constant 0 : i32
    %c0_i32_0 = arith.constant 0 : i32
    %c0_i32_1 = arith.constant 0 : i32
    return %c0_i32, %c0_i32_0 : i32, i32
  }
  func.func @transform_4(%arg0: i32) -> (i32, i32) {
    %c0_i32 = arith.constant 0 : i32
    %c0_i32_0 = arith.constant 0 : i32
    %c0_i32_1 = arith.constant 0 : i32
    return %c0_i32, %c0_i32_0 : i32, i32
  }
  func.func @transform_5(%arg0: i32) -> (i32, i32) {
    %c0_i32 = arith.constant 0 : i32
    %c0_i32_0 = arith.constant 0 : i32
    %c0_i32_1 = arith.constant 0 : i32
    return %c0_i32, %c0_i32_0 : i32, i32
  }
  func.func @transform_6(%arg0: i32) -> (i32, i32) {
    %c0_i32 = arith.constant 0 : i32
    %c0_i32_0 = arith.constant 0 : i32
    return %arg0, %c0_i32 : i32, i32
  }
}

</mosaic_0001>

<bundles_post_ra>
// kernel: gcn_jk_forward.1
= control target key start
LH: loop header
LB: loop body
LE: loop exit
PB: predicated region body
PF: predicated region fallthrough
CT: control target
= control target key end

     0   :  { %11 = vsyncpa [#allocation3], 0  ;;  %s7573_s0 = inlined_call_operand.hbm [shape: bf16[128,128], index: 0, kind: input, shape index: {}]   ;;  %s7574_s1 = inlined_call_operand.hbm [shape: f32[256,300], index: 1, kind: input, shape index: {}]   ;;  %s7575_s2 = inlined_call_operand.hbm [shape: bf16[300,512], index: 2, kind: input, shape index: {}]   ;;  %s7576_s3 = inlined_call_operand.hbm [shape: bf16[512,256], index: 3, kind: input, shape index: {}]   ;;  %s7577_s4 = inlined_call_operand.hbm [shape: bf16[1408,128], index: 4, kind: input, shape index: {}]   ;;  %s7578_s5 = inlined_call_operand.vmem [shape: f32[1,128], index: 5, kind: input, shape index: {}]   ;;  %s7579_s6 = inlined_call_operand.hbm [shape: f32[256,128], index: 6, kind: output, shape index: {}]  }
   0x1   :  { %12 = vsyncpa [#allocation6], 0 }
   0x2   :  { %14 = vsyncpa [#allocation6 + $0x1], 0 }
   0x3   :  { %15 = vsyncpa [#allocation9], 0 }
   0x4   :  { %16 = vsyncpa [#allocation4], 0 }
   0x5   :  { %18 = vsyncpa [#allocation4 + $0x1], 0  ;;  %s6507_s21 = smov 0   ;;  %s6509_s22 = smov 0  }
   0x6   :  { %s6511_s23 = smov 0   ;;  %s6513_s24 = smov 0  }
   0x7 LB: > { %s6528_s25 = sadd.s32 4294967295, %s6453_s24   ;;  %s4782_s26 = sadd.s32 4294967294, %s6453_s24   ;;  %s6453_s24 = sphi %s6513_s24, %s7637_s24   ;;  %s6449_s23 = sphi %s6511_s23, %s7636_s23   ;;  %s6445_s22 = sphi %s6509_s22, %s7635_s22   ;;  %s6441_s21 = sphi %s6507_s21, %s7634_s21  }
   0x8   : > { %p65_p0 = scmp.ne.s32.totalorder %s6445_s22, %s6441_s21  ;;  %p7580_p1 = scmp.eq.s32.totalorder %s6528_s25, 0 }
   0x9   : > { %p179_p3 = scmp.eq.s32.totalorder %s4782_s26, 1  ;;  %p4783_p5 = scmp.ge.s32.totalorder %s6453_s24, 1 }
   0xa   : > { %p6537_p4 = por %p7580_p1, %p65_p0  ;;  %p186_p7 = scmp.lt.s32.totalorder %s6453_s24, 3 }
   0xb   : > { %p6542_p6 = por %p179_p3, %p65_p0  ;;  %s6455_s30 = smov [#allocation7]  }
   0xc   : > { %s7594_s27 = scalar_select %p6537_p4, 1, 0 }
   0xd   : > { %s7595_s28 = scalar_select %p6542_p6, 1, 0 }
   0xe   : > { %p6547_p8 = pnand %p4783_p5, %p186_p7  ;;  %s211_s7 = sshll.u32 %s6455_s30, 4  ;;  %s6551_s7 = int_to_ptr.vmem [resolvable:$true] %s211_s7 }
   0xf   : > { %s6456_s9 = smov [#allocation8]   ;;  %s6233_s13 = scalar_lea.hbm %s7575_s2, 9728 }
  0x10   : > { %s7596_s29 = scalar_select %p6547_p8, 1, 0 }
  0x11   : > { %p5770_p9 = pneg %p6547_p8  ;;  %s224_s10 = sshll.u32 %s6456_s9, 4  ;;  %s6562_s10 = int_to_ptr.vmem [resolvable:$true] %s224_s10 }
  0x12   : > { %p6234_p12 = scmp.ne.s32.totalorder %s7575_s2, %s6233_s13  ;;  %p6240_p5 = scmp.lt.u32.totalorder %s6233_s13, %s7575_s2 }
  0x13   : > { %p6558_p11 = pnand %p5770_p9, %p7580_p1 }
  0x15   : > { %p6572_p13 = pneg %p6558_p11 }
  0x17   : > { %p6236_p0 = pnand %p6572_p13, %p6234_p12 }
  0x19   : > { %p6237_p3 = pneg %p6236_p0 }
  0x1b   : > { %p6242_p7 = pnand %p6240_p5, %p6237_p3 }
  0x1d   : > { %6245 = shalt.err (!%p6242_p7)
}
  0x1e   : > { %s6246_s19 = scalar_lea.vmem %s6551_s7, 9728  ;;  %p6254_p2 = scmp.lt.s32.totalorder %s6551_s7, %s6551_s7 }
  0x1f   : > { %p6247_p9 = scmp.ne.s32.totalorder %s6551_s7, %s6246_s19  ;;  %p6255_p6 = scmp.lt.s32.totalorder %s6246_s19, %s6246_s19 }
  0x21   : > { %p6249_p10 = pnand %p6247_p9, %p6572_p13  ;;  %p6256_p12 = por %p6255_p6, %p6254_p2 }
  0x23   : > { %p6250_p1 = pneg %p6249_p10 }
  0x25   : > { %p6257_p0 = pnand %p6256_p12, %p6250_p1 }
  0x27   : > { %6260 = shalt.err (!%p6257_p0)
}
  0x28   : > { %s6457_s20 = smov 256   ;;  %s6458_s26 = smov 16  }
  0x29   : > { %5776 = dma.hbm_to_vmem [thread:$0]  (!%p6558_p11), %s7575_s2, 9728, %s6551_s7, [#allocation6], %s6457_s20, %s6457_s20, %s6458_s26  }
  0x2a   : > { %s6261_s13 = scalar_lea.hbm %s7576_s3, 8192 }
  0x2b   : > { %p6262_p2 = scmp.ne.s32.totalorder %s7576_s3, %s6261_s13  ;;  %p6268_p10 = scmp.lt.u32.totalorder %s6261_s13, %s7576_s3 }
  0x2d   : > { %p6264_p1 = pnand %p6262_p2, %p6572_p13 }
  0x2f   : > { %p6265_p6 = pneg %p6264_p1 }
  0x31   : > { %p6270_p3 = pnand %p6268_p10, %p6265_p6 }
  0x33   : > { %6273 = shalt.err (!%p6270_p3)
}
  0x34   : > { %s6274_s7 = scalar_lea.vmem %s6562_s10, 8192  ;;  %p6282_p12 = scmp.lt.s32.totalorder %s6562_s10, %s6562_s10 }
  0x35   : > { %p6275_p5 = scmp.ne.s32.totalorder %s6562_s10, %s6274_s7  ;;  %p6283_p0 = scmp.lt.s32.totalorder %s6274_s7, %s6274_s7 }
  0x37   : > { %p6277_p7 = pnand %p6275_p5, %p6572_p13  ;;  %p6284_p2 = por %p6283_p0, %p6282_p12 }
  0x39   : > { %p6278_p9 = pneg %p6277_p7 }
  0x3b   : > { %p6285_p1 = pnand %p6284_p2, %p6278_p9 }
  0x3d   : > { %6288 = shalt.err (!%p6285_p1)
}
  0x3e   : > { %s6459_s19 = smov 128   ;;  %s6460_s20 = smov 8  }
  0x3f   : > { %5779 = dma.hbm_to_vmem [thread:$0]  (!%p6558_p11), %s7576_s3, 8192, %s6562_s10, [#allocation9], %s6459_s19, %s6459_s19, %s6460_s20  }
  0x40   : > { %s6461_s9 = smov [#allocation2]   ;;  %s6289_s14 = scalar_lea.hbm %s7573_s0, 1024 }
  0x41   : > { %s198_s11 = sshll.u32 %s6461_s9, 4  ;;  %p6290_p6 = scmp.ne.s32.totalorder %s7573_s0, %s6289_s14  ;;  %s199_s11 = int_to_ptr.vmem [resolvable:$true] %s198_s11 }
  0x42   : > { %p6296_p5 = scmp.lt.u32.totalorder %s6289_s14, %s7573_s0 }
  0x43   : > { %p6292_p10 = pnand %p6290_p6, %p6572_p13 }
  0x45   : > { %p6293_p3 = pneg %p6292_p10 }
  0x47   : > { %p6298_p7 = pnand %p6296_p5, %p6293_p3 }
  0x49   : > { %6301 = shalt.err (!%p6298_p7)
}
  0x4a   : > { %s6302_s10 = scalar_lea.vmem %s199_s11, 1024  ;;  %p6310_p2 = scmp.lt.s32.totalorder %s199_s11, %s199_s11 }
  0x4b   : > { %p6303_p9 = scmp.ne.s32.totalorder %s199_s11, %s6302_s10  ;;  %p6311_p1 = scmp.lt.s32.totalorder %s6302_s10, %s6302_s10 }
  0x4d   : > { %p6305_p12 = pnand %p6303_p9, %p6572_p13  ;;  %p6312_p4 = por %p6311_p1, %p6310_p2 }
  0x4f   : > { %p6306_p0 = pneg %p6305_p12 }
  0x51   : > { %p6313_p8 = pnand %p6312_p4, %p6306_p0 }
  0x53   : > { %6316 = shalt.err (!%p6313_p8)
}
  0x54   : > { %s6462_s19 = smov 64   ;;  %s6463_s20 = smov 4  }
  0x55   : > { %5773 = dma.hbm_to_vmem [thread:$0]  (!%p6558_p11), %s7573_s0, 1024, %s199_s11, [#allocation3], %s6462_s19, %s6462_s19, %s6463_s20  }
  0x56   : > { %s6464_s9 = smov [#allocation10]   ;;  %s6317_s15 = scalar_lea.hbm %s7577_s4, 11264 }
  0x57   : > { %s237_s12 = sshll.u32 %s6464_s9, 4  ;;  %p6318_p4 = scmp.ne.s32.totalorder %s7577_s4, %s6317_s15  ;;  %s238_s12 = int_to_ptr.vmem [resolvable:$true] %s237_s12 }
  0x58   : > { %p6324_p10 = scmp.lt.u32.totalorder %s6317_s15, %s7577_s4 }
  0x59   : > { %p6320_p8 = pnand %p6318_p4, %p6572_p13 }
  0x5b   : > { %p6321_p6 = pneg %p6320_p8 }
  0x5d   : > { %p6326_p3 = pnand %p6324_p10, %p6321_p6 }
  0x5f   : > { %6329 = shalt.err (!%p6326_p3)
}
  0x60   : > { %s6330_s11 = scalar_lea.vmem %s238_s12, 11264  ;;  %p6338_p12 = scmp.lt.s32.totalorder %s238_s12, %s238_s12 }
  0x61   : > { %p6331_p5 = scmp.ne.s32.totalorder %s238_s12, %s6330_s11  ;;  %p6339_p0 = scmp.lt.s32.totalorder %s6330_s11, %s6330_s11 }
  0x63   : > { %p6333_p7 = pnand %p6331_p5, %p6572_p13  ;;  %p6340_p2 = por %p6339_p0, %p6338_p12 }
  0x65   : > { %p6334_p9 = pneg %p6333_p7 }
  0x67   : > { %p6341_p1 = pnand %p6340_p2, %p6334_p9 }
  0x69   : > { %6344 = shalt.err (!%p6341_p1)
}
  0x6a   : > { %5782 = dma.hbm_to_vmem [thread:$0]  (!%p6558_p11), %s7577_s4, 11264, %s238_s12, [#allocation9], %s6462_s19, %s6462_s19, %s6463_s20  }
  0x6b   : > { %s6653_s16 = sadd.s32 1, %s6453_s24   ;;  %s52_s8 = sadd.s32 1, %s6449_s23 }
  0x6c   : > { %s49_s9 = ssub.s32 %s6453_s24, %s6653_s16  ;;  %p59_p13 = scmp.ne.s32.totalorder %s6449_s23, %s6445_s22 }
  0x6d   : > { %p50_p4 = scmp.eq.s32.totalorder %s49_s9, 0  ;;  %p60_p8 = scmp.eq.s32.totalorder %s6453_s24, 0 }
  0x6e   : > { %p7599_p6 = scmp.eq.s32.totalorder %s6528_s25, 1  ;;  %p5795_p3 = scmp.lt.s32.totalorder %s6453_s24, 2 }
  0x6f   : > { %s6669_s14 = scalar_select %p50_p4, %s6449_s23, %s52_s8  }
  0x70   : > { %p6663_p10 = por %p7599_p6, %p59_p13  ;;  %p61_p5 = por %p60_p8, %p59_p13 }
  0x71   : > { %s254_s15 = sand.u32 1, %s6453_s24   ;;  %s256_s17 = sand.u32 1, %s6449_s23  }
  0x72   : > { %s5747_s19 = smul.u32 384, %s256_s17  ;;  %p6673_p11 = pnand %p5795_p3, %p61_p5 }
  0x73   : > { %s5748_s12 = smul.u32 6144, %s6453_s24  ;;  %s6685_s30 = scalar_lea.sflag [#allocation6], %s254_s15 }
  0x74   : > { %s258_s11 = scalar_lea.vmem [#allocation5], %s5747_s19  ;;  %p6347_p9 = pneg %p6673_p11 }
  0x75   : > { %s6681_s10 = scalar_lea.hbm %s7574_s1, %s5748_s12  ;;  %s266_s26 = sshll.u32 %s258_s11, 4  ;;  %s6683_s26 = int_to_ptr.vmem [resolvable:$true] %s266_s26 }
  0x76   : > { %s6345_s8 = scalar_lea.hbm %s6681_s10, 6144  ;;  %s6350_s12 = scalar_lea.hbm %s7574_s1, 12288 }
  0x77   : > { %p6346_p7 = scmp.ne.s32.totalorder %s6681_s10, %s6345_s8  ;;  %p6351_p2 = scmp.lt.u32.totalorder %s6681_s10, %s7574_s1 }
  0x78   : > { %p6352_p1 = scmp.lt.u32.totalorder %s6350_s12, %s6345_s8  ;;  %p6354_p4 = scmp.lt.u32.totalorder %s6345_s8, %s6681_s10 }
  0x79   : > { %p6348_p12 = pnand %p6347_p9, %p6346_p7 }
  0x7a   : > { %p6353_p13 = por %p6352_p1, %p6351_p2 }
  0x7b   : > { %p6349_p0 = pneg %p6348_p12 }
  0x7c   : > { %p6355_p8 = por %p6354_p4, %p6353_p13 }
  0x7e   : > { %p6356_p6 = pnand %p6355_p8, %p6349_p0 }
  0x80   : > { %6359 = shalt.err (!%p6356_p6)
}
  0x81   : > { %s6360_s15 = scalar_lea.vmem %s6683_s26, 6144  ;;  %s6465_s19 = smov [#allocation5]  }
  0x82   : > { %p6361_p3 = scmp.ne.s32.totalorder %s6683_s26, %s6360_s15  ;;  %s6365_s11 = sshll.u32 %s6465_s19, 4  ;;  %s6366_s11 = int_to_ptr.vmem [resolvable:$false] %s6365_s11 }
  0x83   : > { %s6367_s9 = scalar_lea.vmem %s6366_s11, 12288  ;;  %p6368_p12 = scmp.lt.s32.totalorder %s6683_s26, %s6366_s11 }
  0x84   : > { %p6363_p5 = pnand %p6361_p3, %p6347_p9  ;;  %p6369_p2 = scmp.lt.s32.totalorder %s6367_s9, %s6360_s15 }
  0x86   : > { %p6364_p7 = pneg %p6363_p5  ;;  %p6370_p1 = por %p6369_p2, %p6368_p12 }
  0x88   : > { %p6371_p13 = pnand %p6370_p1, %p6364_p7 }
  0x8a   : > { %6374 = shalt.err (!%p6371_p13)
}
  0x8b   : > { %s6466_s8 = smov 384   ;;  %s6467_s17 = smov 24  }
  0x8c   : > { %5786 = dma.hbm_to_vmem [thread:$0]  (!%p6673_p11), %s6681_s10, 6144, %s6683_s26, %s6685_s30, %s6466_s8, %s6466_s8, %s6467_s17  }
  0x8d   : > { %p7602_p9 = scmp.ne.s32.totalorder %s7596_s29, 0 }
  0x8f   : > { %278 = sbr.rel (%p7602_p9) target bundleno = 2813 (0xafd), region = 44 }
  0x96   : > { %p7603_p0 = scmp.eq.s32.totalorder %s6528_s25, 0 }
  0x98   : > { %6420 = dma.done.wait (%p7603_p0), [#allocation3], 1024   ;;  %p7604_p4 = pmov %p7603_p0 }
  0x99   : > { %s284_s12 = sand.u32 1, %s6528_s25   ;;  %s6721_s18 = sand.u32 1, %s6445_s22  }
  0x9a   : > { %6422 = vsyncadd (%p7604_p4), [#allocation3], 4294966272  ;;  %s5749_s7 = smul.u32 384, %s6721_s18  ;;  %s285_s15 = scalar_lea.sflag [#allocation6], %s284_s12 }
  0x9b   : > { %p7605_p11 = scmp.ne.s32.totalorder %s7594_s27, 0 }
  0x9c   : > { %s6724_s20 = scalar_lea.vmem [#allocation5], %s5749_s7 }
  0x9d   : > { %6424 = dma.done.wait (%p7605_p11), %s285_s15, 6144  }
  0x9e   : > { %6426 = vsyncadd (%p7605_p11), %s285_s15, 4294961152  ;;  %p7606_p8 = pmov %p7603_p0 }
  0x9f   : > { %p7607_p6 = pmov %p7603_p0 }
  0xa0   : > { %6428 = dma.done.wait (%p7606_p8), [#allocation6], 9728  }
  0xa1   : > { %6430 = vsyncadd (%p7607_p6), [#allocation6], 4294957568  ;;  %p7608_p3 = pmov %p7603_p0 }
  0xa2   : > { %p7609_p5 = pmov %p7603_p0 }
  0xa3   : > { %6432 = dma.done.wait (%p7608_p3), [#allocation9], 19456  }
  0xa4   : > { %6434 = vsyncadd (%p7609_p5), [#allocation9], 4294947840  ;;  %v6468_v0 = vmov 0   ;;  %v349_v1 = vld [vmem:[%s6724_s20 + $0x8] sm:$0xff]  ;;  %v352_v2 = vld [vmem:[%s6724_s20 + $0x20] sm:$0xff]  ;;  %vm1179_vm0 = vcmask 1045504  }
  0xa5   : > { %500 = vmatprep.mubr.bf16.mxu0 %v6468_v0  ;;  %v348_v3 = vld [vmem:[%s6724_s20] sm:$0xff]  ;;  %v397_v4 = vpack.c.bf16 %v352_v2, %v349_v1  ;;  %v351_v5 = vld [vmem:[%s6724_s20 + $0x18] sm:$0xff]  ;;  %v358_v7 = vld [vmem:[%s6724_s20 + $0x50] sm:$0xff]  ;;  %vm1154_vm1 = vcmask 359424   ;;  %s4797_s10 = sshll.u32 %s6721_s18, 7  ;;  %s5058_s30 = sshll.u32 %s6528_s25, 11 }
  0xa6   : > { %v355_v6 = vld [vmem:[%s6724_s20 + $0x38] sm:$0xff]  ;;  %v396_v8 = vpack.c.bf16 %v351_v5, %v348_v3  ;;  %v354_v10 = vld [vmem:[%s6724_s20 + $0x30] sm:$0xff]  ;;  %v357_v11 = vld [vmem:[%s6724_s20 + $0x48] sm:$0xff]  ;;  %s7489_s26 = scalar_lea.vmem [#allocation11], %s4797_s10  ;;  %s7525_s8 = scalar_lea.hbm %s7579_s6, %s5058_s30 }
  0xa7   : > { %v400_v9 = vpack.c.bf16 %v358_v7, %v355_v6  ;;  %v361_v12 = vld [vmem:[%s6724_s20 + $0x68] sm:$0xff]  ;;  %468 = vmatprep.subr.bf16.mxu0 %v397_v4  ;;  %v364_v13 = vld [vmem:[%s6724_s20 + $0x80] sm:$0xff]  ;;  %v399_v14 = vpack.c.bf16 %v357_v11, %v354_v10  ;;  %v363_v17 = vld [vmem:[%s6724_s20 + $0x78] sm:$0xff]  ;;  %s4669_s19 = sshll.u32 %s7489_s26, 4  ;;  %s4656_s25 = scalar_lea.sflag [#allocation4], %s6721_s18  ;;  %s7527_s19 = int_to_ptr.vmem [resolvable:$true] %s4669_s19 }
  0xa8   : > { %469 = vmatpush1.bf16.msra.mxu0 %v396_v8  ;;  %v403_v15 = vpack.c.bf16 %v364_v13, %v361_v12  ;;  %v360_v16 = vld [vmem:[%s6724_s20 + $0x60] sm:$0xff]  ;;  %v367_v18 = vld [vmem:[%s6724_s20 + $0x98] sm:$0xff]  ;;  %v370_v19 = vld [vmem:[%s6724_s20 + $0xb0] sm:$0xff]  ;;  %s6375_s17 = scalar_lea.vmem %s7527_s19, 2048  ;;  %s6469_s12 = smov [#allocation11]  }
  0xa9   : > { %470 = vmatprep.subr.bf16.mxu0 %v400_v9  ;;  %v402_v20 = vpack.c.bf16 %v363_v17, %v360_v16  ;;  %v406_v21 = vpack.c.bf16 %v370_v19, %v367_v18  ;;  %v366_v22 = vld [vmem:[%s6724_s20 + $0x90] sm:$0xff]  ;;  %v369_v23 = vld [vmem:[%s6724_s20 + $0xa8] sm:$0xff]  ;;  %v376_v25 = vld [vmem:[%s6724_s20 + $0xe0] sm:$0xff]  ;;  %p6376_p7 = scmp.ne.s32.totalorder %s7527_s19, %s6375_s17  ;;  %s6379_s7 = sshll.u32 %s6469_s12, 4  ;;  %s6380_s7 = int_to_ptr.vmem [resolvable:$false] %s6379_s7 }
  0xaa   : > { %v373_v24 = vld [vmem:[%s6724_s20 + $0xc8] sm:$0xff]  ;;  %v372_v26 = vld [vmem:[%s6724_s20 + $0xc0] sm:$0xff]  ;;  %v405_v28 = vpack.c.bf16 %v369_v23, %v366_v22  ;;  %v375_v29 = vld [vmem:[%s6724_s20 + $0xd8] sm:$0xff]  ;;  %s6381_s15 = scalar_lea.vmem %s6380_s7, 4096  ;;  %p6382_p1 = scmp.lt.s32.totalorder %s7527_s19, %s6380_s7 }
  0xab   : > { %v6758_v27 = vld [vmem:[#allocation2] sm:$0xff]   ;;  %v409_v30 = vpack.c.bf16 %v376_v25, %v373_v24  ;;  %v379_v31 = vld [vmem:[%s6724_s20 + $0xf8] sm:$0xff]  ;;  %v382_v32 = vld [vmem:[%s6724_s20 + $0x110] sm:$0xff]  ;;  %v408_v36 = vpack.c.bf16 %v375_v29, %v372_v26  ;;  %p6377_p12 = pnand %p6376_p7, %p6663_p10  ;;  %p6383_p13 = scmp.lt.s32.totalorder %s6381_s15, %s6375_s17 }
  0xac   : > { %471 = vmatpush1.bf16.msra.mxu0 %v399_v14  ;;  %5427 = vmatprep.mubr.bf16.mxu1 %v6758_v27  ;;  %v350_v33 = vld [vmem:[%s6724_s20 + $0x10] sm:$0xff]  ;;  %v353_v35 = vld [vmem:[%s6724_s20 + $0x28] sm:$0xff]  ;;  %v356_v39 = vld [vmem:[%s6724_s20 + $0x40] sm:$0xff]  ;;  %v412_v41 = vpack.c.bf16 %v382_v32, %v379_v31 }
  0xad   : > { %472 = vmatprep.subr.bf16.mxu0 %v403_v15  ;;  %v378_v34 = vld [vmem:[%s6724_s20 + $0xf0] sm:$0xff]  ;;  %v381_v37 = vld [vmem:[%s6724_s20 + $0x108] sm:$0xff]  ;;  %v398_v38 = vpack.c.bf16 %v353_v35, %v350_v33  ;;  %v359_v40 = vld [vmem:[%s6724_s20 + $0x58] sm:$0xff]  ;;  %p6378_p2 = pneg %p6377_p12  ;;  %p6384_p9 = por %p6383_p13, %p6382_p1 }
  0xae   : > { %v401_v42 = vpack.c.bf16 %v359_v40, %v356_v39  ;;  %v362_v43 = vld [vmem:[%s6724_s20 + $0x70] sm:$0xff]  ;;  %v365_v44 = vld [vmem:[%s6724_s20 + $0x88] sm:$0xff]  ;;  %v388_v46 = vld [vmem:[%s6724_s20 + $0x140] sm:$0xff]  ;;  %v411_v48 = vpack.c.bf16 %v381_v37, %v378_v34 }
  0xaf   : > { %v385_v45 = vld [vmem:[%s6724_s20 + $0x128] sm:$0xff]  ;;  %5411 = vmatprep.subr.bf16.mxu1 %v398_v38  ;;  %v384_v47 = vld [vmem:[%s6724_s20 + $0x120] sm:$0xff]  ;;  %v387_v49 = vld [vmem:[%s6724_s20 + $0x138] sm:$0xff]  ;;  %v404_v50 = vpack.c.bf16 %v365_v44, %v362_v43  ;;  %p6385_p0 = pnand %p6384_p9, %p6378_p2 }
  0xb0   : > { %473 = vmatpush1.bf16.msra.mxu0 %v402_v20  ;;  %5412 = vmatpush3.bf16.msra.mxu1 %v398_v38  ;;  %v415_v51 = vpack.c.bf16 %v388_v46, %v385_v45  ;;  %v391_v52 = vld [vmem:[%s6724_s20 + $0x158] sm:$0xff]  ;;  %v368_v53 = vld [vmem:[%s6724_s20 + $0xa0] sm:$0xff]  ;;  %v394_v55 = vld [vmem:[%s6724_s20 + $0x170] sm:$0xff]  ;;  %v414_v58 = vpack.c.bf16 %v387_v49, %v384_v47 }
  0xb1   : > { %474 = vmatprep.subr.bf16.mxu0 %v406_v21  ;;  %5413 = vmatprep.subr.bf16.mxu1 %v401_v42  ;;  %v371_v54 = vld [vmem:[%s6724_s20 + $0xb8] sm:$0xff]  ;;  %v390_v56 = vld [vmem:[%s6724_s20 + $0x150] sm:$0xff]  ;;  %v393_v57 = vld [vmem:[%s6724_s20 + $0x168] sm:$0xff]  ;;  %v418_v61 = vpack.c.bf16 %v394_v55, %v391_v52 }
  0xb2   : > { %v407_v59 = vpack.c.bf16 %v371_v54, %v368_v53  ;;  %v374_v60 = vld [vmem:[%s6724_s20 + $0xd0] sm:$0xff]  ;;  %v377_v62 = vld [vmem:[%s6724_s20 + $0xe8] sm:$0xff]  ;;  %v380_v63 = vld [vmem:[%s6724_s20 + $0x100] sm:$0xff]  ;;  %v417_v1 = vpack.c.bf16 %v393_v57, %v390_v56 }
  0xb3   : > { %v410_v2 = vpack.c.bf16 %v377_v62, %v374_v60  ;;  %v383_v3 = vld [vmem:[%s6724_s20 + $0x118] sm:$0xff]  ;;  %v5858_v4 = vld [vmem:[#allocation7 + $0x4] ss:$16 sps:$4 sm:$0xff]   ;;  %v389_v7 = vld [vmem:[%s6724_s20 + $0x148] sm:$0xff] }
  0xb4   : > { %475 = vmatpush1.bf16.msra.mxu0 %v405_v28  ;;  %5414 = vmatpush3.bf16.msra.mxu1 %v401_v42  ;;  %v386_v5 = vld [vmem:[%s6724_s20 + $0x130] sm:$0xff]  ;;  %v413_v6 = vpack.c.bf16 %v383_v3, %v380_v63  ;;  %v392_v10 = vld [vmem:[%s6724_s20 + $0x160] sm:$0xff]  ;;  %v395_v12 = vld [vmem:[%s6724_s20 + $0x178] sm:$0xff] }
  0xb5   : > { %476 = vmatprep.subr.bf16.mxu0 %v409_v30  ;;  %5415 = vmatprep.subr.bf16.mxu1 %v404_v50  ;;  %v5856_v8 = vld [vmem:[#allocation7] ss:$16 sps:$4 sm:$0xff]   ;;  %v5864_v9 = vld [vmem:[#allocation7 + $0x24] ss:$16 sps:$4 sm:$0xff]   ;;  %v416_v11 = vpack.c.bf16 %v389_v7, %v386_v5  ;;  %v5849_v15 = vld [vmem:[#allocation2 + $0x8] sm:$0xff]   ;;  %v419_v16 = vpack.c.bf16 %v395_v12, %v392_v10 }
  0xb6   : > { %v5862_v13 = vld [vmem:[#allocation7 + $0x20] ss:$16 sps:$4 sm:$0xff]   ;;  %v5870_v14 = vld [vmem:[#allocation7 + $0x44] ss:$16 sps:$4 sm:$0xff]   ;;  %v5861_v19 = vld [vmem:[#allocation7 + $0xc] ss:$16 sps:$4 sm:$0xff]  }
  0xb7   : > { %v5868_v17 = vld [vmem:[#allocation7 + $0x40] ss:$16 sps:$4 sm:$0xff]   ;;  %v5876_v18 = vld [vmem:[#allocation7 + $0x64] ss:$16 sps:$4 sm:$0xff]   ;;  %v5859_v23 = vld [vmem:[#allocation7 + $0x8] ss:$16 sps:$4 sm:$0xff]  }
  0xb8   : > { %477 = vmatpush1.bf16.msra.mxu0 %v408_v36  ;;  %5416 = vmatpush3.bf16.msra.mxu1 %v404_v50  ;;  %v5874_v20 = vld [vmem:[#allocation7 + $0x60] ss:$16 sps:$4 sm:$0xff]   ;;  %v5882_v21 = vld [vmem:[#allocation7 + $0x84] ss:$16 sps:$4 sm:$0xff]   ;;  %v5867_v24 = vld [vmem:[#allocation7 + $0x2c] ss:$16 sps:$4 sm:$0xff]  }
  0xb9   : > { %478 = vmatprep.subr.bf16.mxu0 %v412_v41  ;;  %5417 = vmatprep.subr.bf16.mxu1 %v407_v59  ;;  %v5850_v22 = vld [vmem:[#allocation2 + $0x10] sm:$0xff]   ;;  %v5873_v28 = vld [vmem:[#allocation7 + $0x4c] ss:$16 sps:$4 sm:$0xff]   ;;  %v5852_v32 = vld [vmem:[#allocation2 + $0x20] sm:$0xff]  }
  0xba   : > { %v5880_v25 = vld [vmem:[#allocation7 + $0x80] ss:$16 sps:$4 sm:$0xff]   ;;  %v5888_v26 = vld [vmem:[#allocation7 + $0xa4] ss:$16 sps:$4 sm:$0xff]   ;;  %v5851_v30 = vld [vmem:[#allocation2 + $0x18] sm:$0xff]  }
  0xbb   : > { %v5886_v29 = vld [vmem:[#allocation7 + $0xa0] ss:$16 sps:$4 sm:$0xff]   ;;  %v5894_v31 = vld [vmem:[#allocation7 + $0xc4] ss:$16 sps:$4 sm:$0xff]   ;;  %v5871_v33 = vld [vmem:[#allocation7 + $0x48] ss:$16 sps:$4 sm:$0xff]  }
  0xbc   : > { %479 = vmatpush1.bf16.msra.mxu0 %v411_v48  ;;  %5418 = vmatpush3.bf16.msra.mxu1 %v407_v59  ;;  %v5879_v34 = vld [vmem:[#allocation7 + $0x6c] ss:$16 sps:$4 sm:$0xff]   ;;  %v5892_v35 = vld [vmem:[#allocation7 + $0xc0] ss:$16 sps:$4 sm:$0xff]   ;;  %v5900_v36 = vld [vmem:[#allocation7 + $0xe4] ss:$16 sps:$4 sm:$0xff]  }
  0xbd   : > { %480 = vmatprep.subr.bf16.mxu0 %v415_v51  ;;  %5419 = vmatprep.subr.bf16.mxu1 %v410_v2  ;;  %v5877_v37 = vld [vmem:[#allocation7 + $0x68] ss:$16 sps:$4 sm:$0xff]   ;;  %v5885_v38 = vld [vmem:[#allocation7 + $0x8c] ss:$16 sps:$4 sm:$0xff]   ;;  %v5898_v39 = vld [vmem:[#allocation7 + $0xe0] ss:$16 sps:$4 sm:$0xff]  }
  0xbe   : > { %v5853_v40 = vld [vmem:[#allocation2 + $0x28] sm:$0xff]   ;;  %v5906_v42 = vld [vmem:[#allocation7 + $0x104] ss:$16 sps:$4 sm:$0xff]   ;;  %v5904_v45 = vld [vmem:[#allocation7 + $0x100] ss:$16 sps:$4 sm:$0xff]  }
  0xbf   : > { %v5883_v41 = vld [vmem:[#allocation7 + $0x88] ss:$16 sps:$4 sm:$0xff]   ;;  %v5854_v43 = vld [vmem:[#allocation2 + $0x30] sm:$0xff]   ;;  %v5891_v44 = vld [vmem:[#allocation7 + $0xac] ss:$16 sps:$4 sm:$0xff]  }
  0xc0   : > { %481 = vmatpush1.bf16.msra.mxu0 %v414_v58  ;;  %5420 = vmatpush3.bf16.msra.mxu1 %v410_v2  ;;  %v5912_v46 = vld [vmem:[#allocation7 + $0x124] ss:$16 sps:$4 sm:$0xff]   ;;  %v5889_v47 = vld [vmem:[#allocation7 + $0xa8] ss:$16 sps:$4 sm:$0xff]   ;;  %v5897_v48 = vld [vmem:[#allocation7 + $0xcc] ss:$16 sps:$4 sm:$0xff]  }
  0xc1   : > { %482 = vmatprep.subr.bf16.mxu0 %v418_v61  ;;  %5421 = vmatprep.subr.bf16.mxu1 %v413_v6  ;;  %v5910_v49 = vld [vmem:[#allocation7 + $0x120] ss:$16 sps:$4 sm:$0xff]   ;;  %v5918_v50 = vld [vmem:[#allocation7 + $0x144] ss:$16 sps:$4 sm:$0xff]   ;;  %v5855_v51 = vld [vmem:[#allocation2 + $0x38] sm:$0xff]  }
  0xc2   : > { %v5895_v52 = vld [vmem:[#allocation7 + $0xc8] ss:$16 sps:$4 sm:$0xff]   ;;  %v5903_v53 = vld [vmem:[#allocation7 + $0xec] ss:$16 sps:$4 sm:$0xff]   ;;  %v5916_v54 = vld [vmem:[#allocation7 + $0x140] ss:$16 sps:$4 sm:$0xff]  }
  0xc3   : > { %v5924_v55 = vld [vmem:[#allocation7 + $0x164] ss:$16 sps:$4 sm:$0xff]   ;;  %v5901_v56 = vld [vmem:[#allocation7 + $0xe8] ss:$16 sps:$4 sm:$0xff]   ;;  %v5909_v57 = vld [vmem:[#allocation7 + $0x10c] ss:$16 sps:$4 sm:$0xff]  }
  0xc4   : > { %483 = vmatpush1.bf16.msra.mxu0 %v417_v1  ;;  %5422 = vmatpush3.bf16.msra.mxu1 %v413_v6  ;;  %v5922_v58 = vld [vmem:[#allocation7 + $0x160] ss:$16 sps:$4 sm:$0xff]   ;;  %v5930_v59 = vld [vmem:[#allocation7 + $0x184] ss:$16 sps:$4 sm:$0xff]   ;;  %v5907_v60 = vld [vmem:[#allocation7 + $0x108] ss:$16 sps:$4 sm:$0xff]  }
  0xc5   : > { %1192 = vmatprep.subr.bf16.mxu0 %v5858_v4  ;;  %5423 = vmatprep.subr.bf16.mxu1 %v416_v11  ;;  %v5915_v61 = vld [vmem:[#allocation7 + $0x12c] ss:$16 sps:$4 sm:$0xff]   ;;  %v5928_v62 = vld [vmem:[#allocation7 + $0x180] ss:$16 sps:$4 sm:$0xff]   ;;  %v5936_v63 = vld [vmem:[#allocation7 + $0x1a4] ss:$16 sps:$4 sm:$0xff]  }
  0xc6   : > { %v5913_v1 = vld [vmem:[#allocation7 + $0x128] ss:$16 sps:$4 sm:$0xff]   ;;  %v5921_v2 = vld [vmem:[#allocation7 + $0x14c] ss:$16 sps:$4 sm:$0xff]   ;;  %v5934_v3 = vld [vmem:[#allocation7 + $0x1a0] ss:$16 sps:$4 sm:$0xff]  }
  0xc7   : > { %501 = vmatmul.mubr.bf16.vlgmr.msra.gmra.mrb[0].mxu0 %v6758_v27  ;;  %v5865_v27 = vld [vmem:[#allocation7 + $0x28] ss:$16 sps:$4 sm:$0xff]   ;;  %v5942_v4 = vld [vmem:[#allocation7 + $0x1c4] ss:$16 sps:$4 sm:$0xff]   ;;  %v5927_v6 = vld [vmem:[#allocation7 + $0x16c] ss:$16 sps:$4 sm:$0xff]  }
  0xc8   : > { %510 = vmatprep.mubr.bf16.mxu0 %v6468_v0  ;;  %1193 = vmatpush1.bf16.msra.mxu0 %v5856_v8  ;;  %v5919_v5 = vld [vmem:[#allocation7 + $0x148] ss:$16 sps:$4 sm:$0xff]   ;;  %v5940_v7 = vld [vmem:[#allocation7 + $0x1c0] ss:$16 sps:$4 sm:$0xff]  }
  0xc9   : > { %1194 = vmatprep.subr.bf16.mxu0 %v5864_v9  ;;  %5424 = vmatpush3.bf16.msra.mxu1 %v416_v11  ;;  %v5925_v8 = vld [vmem:[#allocation7 + $0x168] ss:$16 sps:$4 sm:$0xff]   ;;  %v5933_v9 = vld [vmem:[#allocation7 + $0x18c] ss:$16 sps:$4 sm:$0xff]  }
  0xca   : > { %5425 = vmatprep.subr.bf16.mxu1 %v419_v16  ;;  %v5931_v10 = vld [vmem:[#allocation7 + $0x188] ss:$16 sps:$4 sm:$0xff]   ;;  %v5939_v11 = vld [vmem:[#allocation7 + $0x1ac] ss:$16 sps:$4 sm:$0xff]  }
  0xcb   : > { %v5937_v12 = vld [vmem:[#allocation7 + $0x1a8] ss:$16 sps:$4 sm:$0xff]  }
  0xcc   : > { %1195 = vmatpush1.bf16.msra.mxu0 %v5862_v13  ;;  %v5945_v13 = vld [vmem:[#allocation7 + $0x1cc] ss:$16 sps:$4 sm:$0xff]  }
  0xcd   : > { %1196 = vmatprep.subr.bf16.mxu0 %v5870_v14  ;;  %5426 = vmatpush3.bf16.msra.mxu1 %v419_v16  ;;  %v5943_v14 = vld [vmem:[#allocation7 + $0x1c8] ss:$16 sps:$4 sm:$0xff]   ;;  %v5951_v16 = vld [vmem:[#allocation7 + $0x1ec] ss:$16 sps:$4 sm:$0xff]  }
  0xce   : > { %1418 = vmatprep.subr.bf16.mxu1 %v5861_v19  ;;  %v5954_v19 = vld [vmem:[#allocation7 + $0x204] ss:$16 sps:$4 sm:$0xff]  }
  0xcf   : > { %511 = vmatmul.mubr.bf16.gmra.mrb[4].mxu0 %v5849_v15 }
  0xd0   : > { %520 = vmatprep.mubr.bf16.mxu0 %v6468_v0  ;;  %1197 = vmatpush1.bf16.msra.mxu0 %v5868_v17  ;;  %v5946_v17 = vld [vmem:[#allocation7 + $0x1e0] ss:$16 sps:$4 sm:$0xff]  }
  0xd1   : > { %1198 = vmatprep.subr.bf16.mxu0 %v5876_v18  ;;  %5428 = vmatmul.mubr.bf16.vlgmr.msra.gmra.mrb[0].mxu1 %v5849_v15  ;;  %v5948_v15 = vld [vmem:[#allocation7 + $0x1e4] ss:$16 sps:$4 sm:$0xff]   ;;  %v5949_v18 = vld [vmem:[#allocation7 + $0x1e8] ss:$16 sps:$4 sm:$0xff]  }
  0xd2   : > { %5431 = vmatprep.mubr.bf16.mxu1 %v5850_v22  ;;  %1419 = vmatpush1.bf16.msra.mxu1 %v5859_v23 }
  0xd3   : > { %1420 = vmatprep.subr.bf16.mxu1 %v5867_v24 }
  0xd4   : > { %1199 = vmatpush1.bf16.msra.mxu0 %v5874_v20  ;;  %v5963_v20 = vld [vmem:[#allocation7 + $0x20c] ss:$16 sps:$4 sm:$0xff]  }
  0xd5   : > { %1200 = vmatprep.subr.bf16.mxu0 %v5882_v21 }
  0xd6   : > { %1421 = vmatpush1.bf16.msra.mxu1 %v5865_v27  ;;  %v5952_v27 = vld [vmem:[#allocation7 + $0x200] ss:$16 sps:$4 sm:$0xff]  }
  0xd7   : > { %521 = vmatmul.mubr.bf16.gmra.mrb[8].mxu0 %v5850_v22  ;;  %1422 = vmatprep.subr.bf16.mxu1 %v5873_v28  ;;  %v5961_v28 = vld [vmem:[#allocation7 + $0x208] ss:$16 sps:$4 sm:$0xff]  }
  0xd8   : > { %530 = vmatprep.mubr.bf16.mxu0 %v6468_v0  ;;  %1201 = vmatpush1.bf16.msra.mxu0 %v5880_v25 }
  0xd9   : > { %1202 = vmatprep.subr.bf16.mxu0 %v5888_v26  ;;  %5432 = vmatmul.mubr.bf16.gmra.mrb[4].mxu1 %v5851_v30 }
  0xda   : > { %5435 = vmatprep.mubr.bf16.mxu1 %v5852_v32  ;;  %1423 = vmatpush1.bf16.msra.mxu1 %v5871_v33  ;;  %v5960_v33 = vld [vmem:[#allocation7 + $0x240] ss:$16 sps:$4 sm:$0x3f]  }
  0xdb   : > { %1424 = vmatprep.subr.bf16.mxu1 %v5879_v34 }
  0xdc   : > { %1203 = vmatpush1.bf16.msra.mxu0 %v5886_v29  ;;  %v5957_v29 = vld [vmem:[#allocation7 + $0x224] ss:$16 sps:$4 sm:$0xff]  }
  0xdd   : > { %1204 = vmatprep.subr.bf16.mxu0 %v5894_v31  ;;  %v5955_v31 = vld [vmem:[#allocation7 + $0x220] ss:$16 sps:$4 sm:$0xff]  }
  0xde   : > { %1425 = vmatpush1.bf16.msra.mxu1 %v5877_v37 }
  0xdf   : > { %531 = vmatmul.mubr.bf16.gmra.mrb[12].mxu0 %v5851_v30  ;;  %1426 = vmatprep.subr.bf16.mxu1 %v5885_v38  ;;  %v5966_v30 = vld [vmem:[#allocation7 + $0x22c] ss:$16 sps:$4 sm:$0xff]   ;;  %v5969_v38 = vld [vmem:[#allocation7 + $0x248] ss:$16 sps:$4 sm:$0x3f]  }
  0xe0   : > { %540 = vmatprep.mubr.bf16.mxu0 %v6468_v0  ;;  %1205 = vmatpush1.bf16.msra.mxu0 %v5892_v35  ;;  %v5964_v35 = vld [vmem:[#allocation7 + $0x228] ss:$16 sps:$4 sm:$0xff]  }
  0xe1   : > { %1206 = vmatprep.subr.bf16.mxu0 %v5900_v36  ;;  %5436 = vmatmul.mubr.bf16.gmra.mrb[8].mxu1 %v5853_v40  ;;  %v5967_v36 = vld [vmem:[#allocation7 + $0x24c] ss:$16 sps:$4 sm:$0x3f]  }
  0xe2   : > { %5439 = vmatprep.mubr.bf16.mxu1 %v5854_v43  ;;  %1427 = vmatpush1.bf16.msra.mxu1 %v5883_v41 }
  0xe3   : > { %1428 = vmatprep.subr.bf16.mxu1 %v5891_v44  ;;  %v1187_v44 = vsel %vm1179_vm0, %v5969_v38, 0 }
  0xe4   : > { %1207 = vmatpush1.bf16.msra.mxu0 %v5898_v39 }
  0xe5   : > { %1208 = vmatprep.subr.bf16.mxu0 %v5906_v42 }
  0xe6   : > { %1429 = vmatpush1.bf16.msra.mxu1 %v5889_v47 }
  0xe7   : > { %541 = vmatmul.mubr.bf16.gmra.mrb[16].mxu0 %v5852_v32  ;;  %1430 = vmatprep.subr.bf16.mxu1 %v5897_v48  ;;  %v5958_v32 = vld [vmem:[#allocation7 + $0x244] ss:$16 sps:$4 sm:$0x3f]  }
  0xe8   : > { %550 = vmatprep.mubr.bf16.mxu0 %v6468_v0  ;;  %1209 = vmatpush1.bf16.msra.mxu0 %v5904_v45  ;;  %v5972_v45 = vld [vmem:[#allocation8 + $0x4] ss:$8 sps:$4 sm:$0xff]  }
  0xe9   : > { %1210 = vmatprep.subr.bf16.mxu0 %v5912_v46  ;;  %5440 = vmatmul.mubr.bf16.gmra.mrb[12].mxu1 %v5855_v51 }
  0xea   : > { %1431 = vmatpush1.bf16.msra.mxu1 %v5895_v52 }
  0xeb   : > { %1432 = vmatprep.subr.bf16.mxu1 %v5903_v53 }
  0xec   : > { %1211 = vmatpush1.bf16.msra.mxu0 %v5910_v49 }
  0xed   : > { %1212 = vmatprep.subr.bf16.mxu0 %v5918_v50 }
  0xee   : > { %1433 = vmatpush1.bf16.msra.mxu1 %v5901_v56 }
  0xef   : > { %551 = vmatmul.mubr.bf16.gmra.mrb[20].mxu0 %v5853_v40  ;;  %1434 = vmatprep.subr.bf16.mxu1 %v5909_v57 }
  0xf0   : > { %560 = vmatprep.mubr.bf16.mxu0 %v6468_v0  ;;  %1213 = vmatpush1.bf16.msra.mxu0 %v5916_v54 }
  0xf1   : > { %1214 = vmatprep.subr.bf16.mxu0 %v5924_v55 }
  0xf2   : > { %1435 = vmatpush1.bf16.msra.mxu1 %v5907_v60 }
  0xf3   : > { %1436 = vmatprep.subr.bf16.mxu1 %v5915_v61 }
  0xf4   : > { %1215 = vmatpush1.bf16.msra.mxu0 %v5922_v58 }
  0xf5   : > { %1216 = vmatprep.subr.bf16.mxu0 %v5930_v59 }
  0xf6   : > { %1437 = vmatpush1.bf16.msra.mxu1 %v5913_v1 }
  0xf7   : > { %561 = vmatmul.mubr.bf16.gmra.mrb[24].mxu0 %v5854_v43  ;;  %1438 = vmatprep.subr.bf16.mxu1 %v5921_v2  ;;  %v1181_v43 = vsel %vm1179_vm0, %v5960_v33, 0 }
  0xf8   : > { %570 = vmatprep.mubr.bf16.mxu0 %v6468_v0  ;;  %1217 = vmatpush1.bf16.msra.mxu0 %v5928_v62 }
  0xf9   : > { %1218 = vmatprep.subr.bf16.mxu0 %v5936_v63 }
  0xfa   : > { %1439 = vmatpush1.bf16.msra.mxu1 %v5919_v5 }
  0xfb   : > { %1440 = vmatprep.subr.bf16.mxu1 %v5927_v6 }
  0xfc   : > { %1219 = vmatpush1.bf16.msra.mxu0 %v5934_v3 }
  0xfd   : > { %1220 = vmatprep.subr.bf16.mxu0 %v5942_v4 }
  0xfe   : > { %1441 = vmatpush1.bf16.msra.mxu1 %v5925_v8 }
  0xff   : > { %571 = vmatmul.mubr.bf16.gmra.mrb[28].mxu0 %v5855_v51  ;;  %1442 = vmatprep.subr.bf16.mxu1 %v5933_v9 }
 0x100   : > { %1221 = vmatpush1.bf16.msra.mxu0 %v5940_v7 }
 0x101   : > { %1222 = vmatprep.subr.bf16.mxu0 %v5948_v15 }
 0x102   : > { %1443 = vmatpush1.bf16.msra.mxu1 %v5931_v10 }
 0x103   : > { %1444 = vmatprep.subr.bf16.mxu1 %v5939_v11 }
 0x104   : > { %1223 = vmatpush1.bf16.msra.mxu0 %v5946_v17 }
 0x105   : > { %1305 = vmatprep.subr.bf16.mxu0 %v5954_v19 }
 0x106   : > { %1445 = vmatpush1.bf16.msra.mxu1 %v5937_v12 }
 0x107   : > { %1446 = vmatprep.subr.bf16.mxu1 %v5945_v13 }
 0x10a   : > { %1447 = vmatpush1.bf16.msra.mxu1 %v5943_v14 }
 0x10b   : > { %1448 = vmatprep.subr.bf16.mxu1 %v5951_v16 }
 0x10e   : > { %1449 = vmatpush1.bf16.msra.mxu1 %v5949_v18 }
 0x10f   : > { %1531 = vmatprep.subr.bf16.mxu1 %v5963_v20 }
 0x19a   : > { %v502_v21 = vpop.f32.mrb[0].mxu0 }
 0x19b   : > { %v504_v22 = vpop.f32.mrb[1].mxu0 }
 0x19c   : > { %v506_v23 = vpop.f32.mrb[2].mxu0 }
 0x19d   : > { %v678_v24 = vpack.c.bf16 %v506_v23, %v502_v21  ;;  %v508_v25 = vpop.f32.mrb[3].mxu0 }
 0x19e   : > { %v679_v26 = vpack.c.bf16 %v508_v25, %v504_v22 }
 0x1a0   : > { %1224 = vmatprep.mubr.bf16.mxu0 %v679_v26  ;;  %1450 = vmatprep.mubr.bf16.mxu1 %v679_v26 }
 0x1a1   : > { %1225 = vmatmul.mubr.bf16.vlgmr.msra.gmra.mrb[32].mxu0 %v678_v24  ;;  %1451 = vmatmul.mubr.bf16.vlgmr.msra.gmra.mrb[16].mxu1 %v678_v24 }
 0x1a2   : > { %v512_v34 = vpop.f32.mrb[4].mxu0  ;;  %1306 = vmatpush1.bf16.msra.mxu0 %v5952_v27  ;;  %1532 = vmatpush1.bf16.msra.mxu1 %v5961_v28 }
 0x1a3   : > { %v514_v37 = vpop.f32.mrb[5].mxu0  ;;  %1307 = vmatprep.subr.bf16.mxu0 %v5957_v29  ;;  %1533 = vmatprep.subr.bf16.mxu1 %v5966_v30 }
 0x1a4   : > { %v516_v39 = vpop.f32.mrb[6].mxu0  ;;  %v5429_v46 = vpop.f32.mrb[0].mxu1 }
 0x1a5   : > { %v681_v40 = vpack.c.bf16 %v516_v39, %v512_v34  ;;  %v518_v41 = vpop.f32.mrb[7].mxu0  ;;  %v615_v48 = vpop.f32.mrb[1].mxu1 }
 0x1a6   : > { %v682_v42 = vpack.c.bf16 %v518_v41, %v514_v37  ;;  %1308 = vmatpush1.bf16.msra.mxu0 %v5955_v31  ;;  %1534 = vmatpush1.bf16.msra.mxu1 %v5964_v35  ;;  %v5430_v50 = vpop.f32.mrb[2].mxu1 }
 0x1a7   : > { %4882 = vmatprep.subr.msk.bf16.mxu0 %vm1179_vm0, %v5958_v32  ;;  %4891 = vmatprep.subr.msk.bf16.mxu1 %vm1179_vm0, %v5967_v36  ;;  %v6798_v52 = vpack.c.bf16 %v5430_v50, %v5429_v46  ;;  %v618_v53 = vpop.f32.mrb[3].mxu1  ;;  %v5978_v46 = vld [vmem:[#allocation8 + $0x24] ss:$8 sps:$4 sm:$0xff]  }
 0x1a8   : > { %1234 = vmatprep.mubr.bf16.mxu0 %v682_v42  ;;  %1460 = vmatprep.mubr.bf16.mxu1 %v682_v42  ;;  %v6800_v56 = vpack.c.bf16 %v618_v53, %v615_v48  ;;  %v5981_v48 = vld [vmem:[#allocation8 + $0x34] ss:$8 sps:$4 sm:$0xff]   ;;  %v5984_v50 = vld [vmem:[#allocation8 + $0x44] ss:$8 sps:$4 sm:$0xff]  }
 0x1a9   : > { %1235 = vmatmul.mubr.bf16.gmra.mrb[36].mxu0 %v681_v40  ;;  %1461 = vmatmul.mubr.bf16.gmra.mrb[20].mxu1 %v681_v40  ;;  %v5987_v53 = vld [vmem:[#allocation8 + $0x54] ss:$8 sps:$4 sm:$0xff]  }
 0x1aa   : > { %v522_v47 = vpop.f32.mrb[8].mxu0  ;;  %1310 = vmatpush1.bf16.msra.mxu0 %v1181_v43  ;;  %1536 = vmatpush1.bf16.msra.mxu1 %v1187_v44  ;;  %v5970_v43 = vld [vmem:[#allocation8] ss:$8 sps:$4 sm:$0xff]   ;;  %v5975_v44 = vld [vmem:[#allocation8 + $0x14] ss:$8 sps:$4 sm:$0xff]  }
 0x1ab   : > { %v524_v49 = vpop.f32.mrb[9].mxu0  ;;  %2252 = vmatprep.subr.bf16.mxu0 %v5972_v45  ;;  %v5973_v45 = vld [vmem:[#allocation8 + $0x10] ss:$8 sps:$4 sm:$0xff]  }
 0x1ac   : > { %v526_v51 = vpop.f32.mrb[10].mxu0  ;;  %v5433_v58 = vpop.f32.mrb[4].mxu1 }
 0x1ad   : > { %v684_v54 = vpack.c.bf16 %v526_v51, %v522_v47  ;;  %v528_v55 = vpop.f32.mrb[11].mxu0  ;;  %v631_v60 = vpop.f32.mrb[5].mxu1  ;;  %v5976_v47 = vld [vmem:[#allocation8 + $0x20] ss:$8 sps:$4 sm:$0xff]  }
 0x1ae   : > { %v685_v57 = vpack.c.bf16 %v528_v55, %v524_v49  ;;  %v5434_v62 = vpop.f32.mrb[6].mxu1  ;;  %v5979_v49 = vld [vmem:[#allocation8 + $0x30] ss:$8 sps:$4 sm:$0xff]   ;;  %v5982_v51 = vld [vmem:[#allocation8 + $0x40] ss:$8 sps:$4 sm:$0xff]  }
 0x1af   : > { %v6802_v1 = vpack.c.bf16 %v5434_v62, %v5433_v58  ;;  %v634_v2 = vpop.f32.mrb[7].mxu1  ;;  %v5988_v55 = vld [vmem:[#allocation8 + $0x60] ss:$8 sps:$4 sm:$0xff]   ;;  %v5996_v58 = vld [vmem:[#allocation8 + $0x84] ss:$8 sps:$4 sm:$0xff]  }
 0x1b0   : > { %1244 = vmatprep.mubr.bf16.mxu0 %v685_v57  ;;  %1470 = vmatprep.mubr.bf16.mxu1 %v685_v57  ;;  %v6804_v5 = vpack.c.bf16 %v634_v2, %v631_v60  ;;  %v5991_v57 = vld [vmem:[#allocation8 + $0x70] ss:$8 sps:$4 sm:$0xff]   ;;  %v5999_v60 = vld [vmem:[#allocation8 + $0x94] ss:$8 sps:$4 sm:$0xff]   ;;  %v6002_v62 = vld [vmem:[#allocation8 + $0xa4] ss:$8 sps:$4 sm:$0xff]  }
 0x1b1   : > { %1245 = vmatmul.mubr.bf16.gmra.mrb[40].mxu0 %v684_v54  ;;  %1471 = vmatmul.mubr.bf16.gmra.mrb[24].mxu1 %v684_v54  ;;  %v5990_v54 = vld [vmem:[#allocation8 + $0x64] ss:$8 sps:$4 sm:$0xff]   ;;  %v6003_v2 = vld [vmem:[#allocation8 + $0xb0] ss:$8 sps:$4 sm:$0xff]  }
 0x1b2   : > { %v532_v59 = vpop.f32.mrb[12].mxu0 }
 0x1b3   : > { %v534_v61 = vpop.f32.mrb[13].mxu0 }
 0x1b4   : > { %v536_v63 = vpop.f32.mrb[14].mxu0  ;;  %v5437_v7 = vpop.f32.mrb[8].mxu1 }
 0x1b5   : > { %v687_v3 = vpack.c.bf16 %v536_v63, %v532_v59  ;;  %v538_v4 = vpop.f32.mrb[15].mxu0  ;;  %v647_v9 = vpop.f32.mrb[9].mxu1  ;;  %v5994_v59 = vld [vmem:[#allocation8 + $0x80] ss:$8 sps:$4 sm:$0xff]  }
 0x1b6   : > { %v688_v6 = vpack.c.bf16 %v538_v4, %v534_v61  ;;  %v5438_v11 = vpop.f32.mrb[10].mxu1  ;;  %v5997_v61 = vld [vmem:[#allocation8 + $0x90] ss:$8 sps:$4 sm:$0xff]   ;;  %v6000_v63 = vld [vmem:[#allocation8 + $0xa0] ss:$8 sps:$4 sm:$0xff]  }
 0x1b7   : > { %v6806_v13 = vpack.c.bf16 %v5438_v11, %v5437_v7  ;;  %v650_v14 = vpop.f32.mrb[11].mxu1  ;;  %v6006_v4 = vld [vmem:[#allocation8 + $0xc0] ss:$8 sps:$4 sm:$0xff]   ;;  %v6014_v7 = vld [vmem:[#allocation8 + $0xe4] ss:$8 sps:$4 sm:$0xff]  }
 0x1b8   : > { %1254 = vmatprep.mubr.bf16.mxu0 %v688_v6  ;;  %1480 = vmatprep.mubr.bf16.mxu1 %v688_v6  ;;  %v6808_v17 = vpack.c.bf16 %v650_v14, %v647_v9  ;;  %v6009_v6 = vld [vmem:[#allocation8 + $0xd0] ss:$8 sps:$4 sm:$0xff]   ;;  %v6017_v9 = vld [vmem:[#allocation8 + $0xf4] ss:$8 sps:$4 sm:$0xff]   ;;  %v6020_v11 = vld [vmem:[#allocation8 + $0x104] ss:$8 sps:$4 sm:$0xff]  }
 0x1b9   : > { %1255 = vmatmul.mubr.bf16.gmra.mrb[44].mxu0 %v687_v3  ;;  %1481 = vmatmul.mubr.bf16.gmra.mrb[28].mxu1 %v687_v3  ;;  %v6008_v3 = vld [vmem:[#allocation8 + $0xc4] ss:$8 sps:$4 sm:$0xff]  }
 0x1ba   : > { %v542_v8 = vpop.f32.mrb[16].mxu0 }
 0x1bb   : > { %v544_v10 = vpop.f32.mrb[17].mxu0 }
 0x1bc   : > { %v546_v12 = vpop.f32.mrb[18].mxu0  ;;  %v5441_v19 = vpop.f32.mrb[12].mxu1 }
 0x1bd   : > { %v690_v15 = vpack.c.bf16 %v546_v12, %v542_v8  ;;  %v548_v16 = vpop.f32.mrb[19].mxu0  ;;  %v663_v21 = vpop.f32.mrb[13].mxu1  ;;  %v6012_v8 = vld [vmem:[#allocation8 + $0xe0] ss:$8 sps:$4 sm:$0xff]  }
 0x1be   : > { %v691_v18 = vpack.c.bf16 %v548_v16, %v544_v10  ;;  %v5442_v23 = vpop.f32.mrb[14].mxu1  ;;  %v6015_v10 = vld [vmem:[#allocation8 + $0xf0] ss:$8 sps:$4 sm:$0xff]  }
 0x1bf   : > { %v6810_v25 = vpack.c.bf16 %v5442_v23, %v5441_v19  ;;  %v666_v26 = vpop.f32.mrb[15].mxu1 }
 0x1c0   : > { %1264 = vmatprep.mubr.bf16.mxu0 %v691_v18  ;;  %1490 = vmatprep.mubr.bf16.mxu1 %v691_v18  ;;  %v6812_v29 = vpack.c.bf16 %v666_v26, %v663_v21 }
 0x1c1   : > { %1265 = vmatmul.mubr.bf16.gmra.mrb[48].mxu0 %v690_v15  ;;  %1491 = vmatmul.mubr.bf16.gmra.mrb[32].mxu1 %v690_v15 }
 0x1c2   : > { %v552_v20 = vpop.f32.mrb[20].mxu0 }
 0x1c3   : > { %v554_v22 = vpop.f32.mrb[21].mxu0 }
 0x1c4   : > { %v556_v24 = vpop.f32.mrb[22].mxu0 }
 0x1c5   : > { %v693_v27 = vpack.c.bf16 %v556_v24, %v552_v20  ;;  %v558_v28 = vpop.f32.mrb[23].mxu0 }
 0x1c6   : > { %v694_v30 = vpack.c.bf16 %v558_v28, %v554_v22 }
 0x1c8   : > { %1274 = vmatprep.mubr.bf16.mxu0 %v694_v30  ;;  %1500 = vmatprep.mubr.bf16.mxu1 %v694_v30 }
 0x1c9   : > { %1275 = vmatmul.mubr.bf16.gmra.mrb[52].mxu0 %v693_v27  ;;  %1501 = vmatmul.mubr.bf16.gmra.mrb[36].mxu1 %v693_v27 }
 0x1ca   : > { %v562_v31 = vpop.f32.mrb[24].mxu0 }
 0x1cb   : > { %v564_v32 = vpop.f32.mrb[25].mxu0 }
 0x1cc   : > { %v566_v33 = vpop.f32.mrb[26].mxu0 }
 0x1cd   : > { %v696_v34 = vpack.c.bf16 %v566_v33, %v562_v31  ;;  %v568_v35 = vpop.f32.mrb[27].mxu0 }
 0x1ce   : > { %v697_v36 = vpack.c.bf16 %v568_v35, %v564_v32 }
 0x1d0   : > { %1284 = vmatprep.mubr.bf16.mxu0 %v697_v36  ;;  %1510 = vmatprep.mubr.bf16.mxu1 %v697_v36 }
 0x1d1   : > { %1285 = vmatmul.mubr.bf16.gmra.mrb[56].mxu0 %v696_v34  ;;  %1511 = vmatmul.mubr.bf16.gmra.mrb[40].mxu1 %v696_v34 }
 0x1d2   : > { %v572_v37 = vpop.f32.mrb[28].mxu0 }
 0x1d3   : > { %v574_v38 = vpop.f32.mrb[29].mxu0 }
 0x1d4   : > { %v576_v39 = vpop.f32.mrb[30].mxu0 }
 0x1d5   : > { %v699_v40 = vpack.c.bf16 %v576_v39, %v572_v37  ;;  %v578_v41 = vpop.f32.mrb[31].mxu0 }
 0x1d6   : > { %v700_v42 = vpack.c.bf16 %v578_v41, %v574_v38  ;;  %v6018_v41 = vld [vmem:[#allocation8 + $0x100] ss:$8 sps:$4 sm:$0xff]  }
 0x1d8   : > { %1294 = vmatprep.mubr.bf16.mxu0 %v700_v42  ;;  %1520 = vmatprep.mubr.bf16.mxu1 %v700_v42 }
 0x1d9   : > { %1295 = vmatmul.mubr.bf16.gmra.mrb[60].mxu0 %v699_v40  ;;  %1521 = vmatmul.mubr.bf16.gmra.mrb[44].mxu1 %v699_v40 }
 0x1da   : > { %1337 = vmatprep.mubr.bf16.mxu0 %v6468_v0  ;;  %1563 = vmatprep.mubr.bf16.mxu1 %v6468_v0 }
 0x1e1   : > { %4883 = vmatmul.mubr.msk.bf16.vlgmr.msra.gmra.mrb[32].mxu0 %vm1154_vm1, %v6800_v56  ;;  %4892 = vmatmul.mubr.msk.bf16.vlgmr.msra.gmra.mrb[16].mxu1 %vm1154_vm1, %v6800_v56  ;;  %v5993_v56 = vld [vmem:[#allocation8 + $0x74] ss:$8 sps:$4 sm:$0xff]  }
 0x1e2   : > { %1347 = vmatprep.mubr.bf16.mxu0 %v6468_v0  ;;  %1573 = vmatprep.mubr.bf16.mxu1 %v6468_v0 }
 0x1e3   : > { %2253 = vmatpush1.bf16.msra.mxu0 %v5970_v43 }
 0x1e4   : > { %2254 = vmatprep.subr.bf16.mxu0 %v5975_v44 }
 0x1e7   : > { %2255 = vmatpush1.bf16.msra.mxu0 %v5973_v45  ;;  %v6023_v45 = vld [vmem:[#allocation8 + $0x114] ss:$8 sps:$4 sm:$0xff]  }
 0x1e8   : > { %2256 = vmatprep.subr.bf16.mxu0 %v5978_v46 }
 0x1e9   : > { %4884 = vmatmul.mubr.msk.bf16.gmra.mrb[36].mxu0 %vm1154_vm1, %v6798_v52  ;;  %4893 = vmatmul.mubr.msk.bf16.gmra.mrb[20].mxu1 %vm1154_vm1, %v6798_v52  ;;  %v5985_v52 = vld [vmem:[#allocation8 + $0x50] ss:$8 sps:$4 sm:$0xff]  }
 0x1ea   : > { %1357 = vmatprep.mubr.bf16.mxu0 %v6468_v0  ;;  %1583 = vmatprep.mubr.bf16.mxu1 %v6468_v0 }
 0x1eb   : > { %2257 = vmatpush1.bf16.msra.mxu0 %v5976_v47 }
 0x1ec   : > { %2258 = vmatprep.subr.bf16.mxu0 %v5981_v48 }
 0x1ef   : > { %2259 = vmatpush1.bf16.msra.mxu0 %v5979_v49 }
 0x1f0   : > { %2260 = vmatprep.subr.bf16.mxu0 %v5984_v50 }
 0x1f1   : > { %4885 = vmatmul.mubr.msk.bf16.gmra.mrb[40].mxu0 %vm1154_vm1, %v6804_v5  ;;  %4894 = vmatmul.mubr.msk.bf16.gmra.mrb[24].mxu1 %vm1154_vm1, %v6804_v5  ;;  %v6011_v5 = vld [vmem:[#allocation8 + $0xd4] ss:$8 sps:$4 sm:$0xff]  }
 0x1f2   : > { %1367 = vmatprep.mubr.bf16.mxu0 %v6468_v0  ;;  %1593 = vmatprep.mubr.bf16.mxu1 %v6468_v0 }
 0x1f3   : > { %2261 = vmatpush1.bf16.msra.mxu0 %v5982_v51 }
 0x1f4   : > { %2262 = vmatprep.subr.bf16.mxu0 %v5987_v53 }
 0x1f7   : > { %2263 = vmatpush1.bf16.msra.mxu0 %v5985_v52 }
 0x1f8   : > { %2264 = vmatprep.subr.bf16.mxu0 %v5990_v54 }
 0x1f9   : > { %4886 = vmatmul.mubr.msk.bf16.gmra.mrb[44].mxu0 %vm1154_vm1, %v6802_v1  ;;  %4895 = vmatmul.mubr.msk.bf16.gmra.mrb[28].mxu1 %vm1154_vm1, %v6802_v1  ;;  %v6005_v1 = vld [vmem:[#allocation8 + $0xb4] ss:$8 sps:$4 sm:$0xff]  }
 0x1fa   : > { %1377 = vmatprep.mubr.bf16.mxu0 %v6468_v0  ;;  %1603 = vmatprep.mubr.bf16.mxu1 %v6468_v0 }
 0x1fb   : > { %2265 = vmatpush1.bf16.msra.mxu0 %v5988_v55 }
 0x1fc   : > { %2266 = vmatprep.subr.bf16.mxu0 %v5993_v56 }
 0x1ff   : > { %2267 = vmatpush1.bf16.msra.mxu0 %v5991_v57 }
 0x200   : > { %2268 = vmatprep.subr.bf16.mxu0 %v5996_v58 }
 0x201   : > { %4887 = vmatmul.mubr.msk.bf16.gmra.mrb[48].mxu0 %vm1154_vm1, %v6808_v17  ;;  %4896 = vmatmul.mubr.msk.bf16.gmra.mrb[32].mxu1 %vm1154_vm1, %v6808_v17 }
 0x202   : > { %1387 = vmatprep.mubr.bf16.mxu0 %v6468_v0  ;;  %1613 = vmatprep.mubr.bf16.mxu1 %v6468_v0 }
 0x203   : > { %2269 = vmatpush1.bf16.msra.mxu0 %v5994_v59 }
 0x204   : > { %2270 = vmatprep.subr.bf16.mxu0 %v5999_v60 }
 0x207   : > { %2271 = vmatpush1.bf16.msra.mxu0 %v5997_v61 }
 0x208   : > { %2272 = vmatprep.subr.bf16.mxu0 %v6002_v62  ;;  %v6021_v62 = vld [vmem:[#allocation8 + $0x110] ss:$8 sps:$4 sm:$0xff]  }
 0x209   : > { %4888 = vmatmul.mubr.msk.bf16.gmra.mrb[52].mxu0 %vm1154_vm1, %v6806_v13  ;;  %4897 = vmatmul.mubr.msk.bf16.gmra.mrb[36].mxu1 %vm1154_vm1, %v6806_v13 }
 0x20a   : > { %1397 = vmatprep.mubr.bf16.mxu0 %v6468_v0  ;;  %1623 = vmatprep.mubr.bf16.mxu1 %v6468_v0 }
 0x20b   : > { %2273 = vmatpush1.bf16.msra.mxu0 %v6000_v63 }
 0x20c   : > { %2274 = vmatprep.subr.bf16.mxu0 %v6005_v1 }
 0x20f   : > { %2275 = vmatpush1.bf16.msra.mxu0 %v6003_v2 }
 0x210   : > { %2276 = vmatprep.subr.bf16.mxu0 %v6008_v3 }
 0x211   : > { %4889 = vmatmul.mubr.msk.bf16.gmra.mrb[56].mxu0 %vm1154_vm1, %v6812_v29  ;;  %4898 = vmatmul.mubr.msk.bf16.gmra.mrb[40].mxu1 %vm1154_vm1, %v6812_v29 }
 0x212   : > { %1407 = vmatprep.mubr.bf16.mxu0 %v6468_v0  ;;  %1633 = vmatprep.mubr.bf16.mxu1 %v6468_v0 }
 0x213   : > { %2277 = vmatpush1.bf16.msra.mxu0 %v6006_v4 }
 0x214   : > { %2278 = vmatprep.subr.bf16.mxu0 %v6011_v5 }
 0x217   : > { %2279 = vmatpush1.bf16.msra.mxu0 %v6009_v6  ;;  %v6026_v6 = vld [vmem:[#allocation8 + $0x124] ss:$8 sps:$4 sm:$0xff]  }
 0x218   : > { %2280 = vmatprep.subr.bf16.mxu0 %v6014_v7 }
 0x219   : > { %4890 = vmatmul.mubr.msk.bf16.gmra.mrb[60].mxu0 %vm1154_vm1, %v6810_v25  ;;  %4899 = vmatmul.mubr.msk.bf16.gmra.mrb[44].mxu1 %vm1154_vm1, %v6810_v25 }
 0x21a   : > { %2526 = vmatprep.mubr.bf16.mxu1 %v6468_v0 }
 0x21b   : > { %2281 = vmatpush1.bf16.msra.mxu0 %v6012_v8 }
 0x21c   : > { %2282 = vmatprep.subr.bf16.mxu0 %v6017_v9 }
 0x21f   : > { %2283 = vmatpush1.bf16.msra.mxu0 %v6015_v10 }
 0x220   : > { %2365 = vmatprep.subr.bf16.mxu0 %v6020_v11 }
 0x2b4   : > { %v1339_v12 = vpop.f32.mrb[32].mxu0  ;;  %v1565_v13 = vpop.f32.mrb[16].mxu1 }
 0x2b5   : > { %vm1644_vm2 = vcmp.gt.f32.partialorder %v1339_v12, 0.0  ;;  %v1708_v14 = vmul.f32 0.01, %v1339_v12  ;;  %v1710_v15 = vmul.f32 0.01, %v1565_v13  ;;  %vm1646_vm3 = vcmp.gt.f32.partialorder %v1565_v13, 0.0 }
 0x2b6   : > { %v1341_v16 = vpop.f32.mrb[33].mxu0  ;;  %v1567_v17 = vpop.f32.mrb[17].mxu1 }
 0x2b7   : > { %v1772_v18 = vsel %vm1644_vm2, %v1339_v12, %v1708_v14  ;;  %v1343_v19 = vpop.f32.mrb[34].mxu0  ;;  %v1569_v20 = vpop.f32.mrb[18].mxu1  ;;  %vm1645_vm4 = vcmp.gt.f32.partialorder %v1341_v16, 0.0  ;;  %v1709_v21 = vmul.f32 0.01, %v1341_v16  ;;  %v1774_v23 = vsel %vm1646_vm3, %v1565_v13, %v1710_v15 }
 0x2b8   : > { %vm1648_vm5 = vcmp.gt.f32.partialorder %v1343_v19, 0.0  ;;  %v1712_v22 = vmul.f32 0.01, %v1343_v19  ;;  %vm1647_vm6 = vcmp.gt.f32.partialorder %v1567_v17, 0.0  ;;  %vm1650_vm7 = vcmp.gt.f32.partialorder %v1569_v20, 0.0  ;;  %v1345_v25 = vpop.f32.mrb[35].mxu0 }
 0x2b9   : > { %v1714_v24 = vmul.f32 0.01, %v1569_v20  ;;  %v1571_v26 = vpop.f32.mrb[19].mxu1  ;;  %v1711_v27 = vmul.f32 0.01, %v1567_v17  ;;  %vm1649_vm8 = vcmp.gt.f32.partialorder %v1345_v25, 0.0  ;;  %v1773_v42 = vsel %vm1645_vm4, %v1341_v16, %v1709_v21 }
 0x2ba   : > { %v1776_v28 = vsel %vm1648_vm5, %v1343_v19, %v1712_v22  ;;  %v1713_v29 = vmul.f32 0.01, %v1345_v25  ;;  %vm1651_vm9 = vcmp.gt.f32.partialorder %v1571_v26, 0.0  ;;  %v1715_v32 = vmul.f32 0.01, %v1571_v26 }
 0x2bb   : > { %v6863_v30 = vpack.c.bf16 %v1776_v28, %v1772_v18  ;;  %v1778_v31 = vsel %vm1650_vm7, %v1569_v20, %v1714_v24  ;;  %v1775_v43 = vsel %vm1647_vm6, %v1567_v17, %v1711_v27  ;;  %v6024_v18 = vld [vmem:[#allocation8 + $0x120] ss:$8 sps:$4 sm:$0xff]   ;;  %v6029_v19 = vld [vmem:[#allocation8 + $0x134] ss:$8 sps:$4 sm:$0xff]  }
 0x2bc   : > { %v6865_v33 = vpack.c.bf16 %v1778_v31, %v1774_v23  ;;  %v1777_v34 = vsel %vm1649_vm8, %v1345_v25, %v1713_v29  ;;  %v1349_v35 = vpop.f32.mrb[36].mxu0  ;;  %v1575_v36 = vpop.f32.mrb[20].mxu1  ;;  %v1779_v37 = vsel %vm1651_vm9, %v1571_v26, %v1715_v32  ;;  %v6027_v32 = vld [vmem:[#allocation8 + $0x130] ss:$8 sps:$4 sm:$0xff]  }
 0x2bd   : > { %vm1652_vm10 = vcmp.gt.f32.partialorder %v1349_v35, 0.0  ;;  %v1716_v38 = vmul.f32 0.01, %v1349_v35  ;;  %v1351_v39 = vpop.f32.mrb[37].mxu0  ;;  %v1577_v40 = vpop.f32.mrb[21].mxu1  ;;  %vm1654_vm11 = vcmp.gt.f32.partialorder %v1575_v36, 0.0  ;;  %v6869_v47 = vpack.c.bf16 %v1777_v34, %v1773_v42 }
 0x2be   : > { %v1718_v44 = vmul.f32 0.01, %v1575_v36  ;;  %vm1653_vm12 = vcmp.gt.f32.partialorder %v1351_v39, 0.0  ;;  %v1717_v46 = vmul.f32 0.01, %v1351_v39  ;;  %v1353_v48 = vpop.f32.mrb[38].mxu0  ;;  %v6871_v50 = vpack.c.bf16 %v1779_v37, %v1775_v43 }
 0x2bf   : > { %v1579_v49 = vpop.f32.mrb[22].mxu1  ;;  %v1780_v51 = vsel %vm1652_vm10, %v1349_v35, %v1716_v38  ;;  %vm1655_vm13 = vcmp.gt.f32.partialorder %v1577_v40, 0.0  ;;  %vm1656_vm14 = vcmp.gt.f32.partialorder %v1353_v48, 0.0  ;;  %v1720_v53 = vmul.f32 0.01, %v1353_v48  ;;  %v1355_v52 = vpop.f32.mrb[39].mxu0  ;;  %2284 = vmatprep.mubr.bf16.mxu0 %v6869_v47 }
 0x2c0   : > { %v1581_v54 = vpop.f32.mrb[23].mxu1  ;;  %v1719_v55 = vmul.f32 0.01, %v1577_v40  ;;  %vm1658_vm15 = vcmp.gt.f32.partialorder %v1579_v49, 0.0  ;;  %v1722_v56 = vmul.f32 0.01, %v1579_v49  ;;  %2285 = vmatmul.mubr.bf16.vlgmr.msra.gmra.mrb[64].mxu0 %v6863_v30  ;;  %v1782_v60 = vsel %vm1654_vm11, %v1575_v36, %v1718_v44 }
 0x2c1   : > { %vm1657_vm0 = vcmp.gt.f32.partialorder %v1355_v52, 0.0  ;;  %v1784_v57 = vsel %vm1656_vm14, %v1353_v48, %v1720_v53  ;;  %v1721_v58 = vmul.f32 0.01, %v1355_v52  ;;  %vm1659_vm1 = vcmp.gt.f32.partialorder %v1581_v54, 0.0  ;;  %2366 = vmatpush1.bf16.msra.mxu0 %v6018_v41  ;;  %v6032_v38 = vld [vmem:[#allocation8 + $0x144] ss:$8 sps:$4 sm:$0xff]  }
 0x2c2   : > { %v1723_v59 = vmul.f32 0.01, %v1581_v54  ;;  %v1786_v61 = vsel %vm1658_vm15, %v1579_v49, %v1722_v56  ;;  %v6877_v63 = vpack.c.bf16 %v1784_v57, %v1780_v51  ;;  %v1781_v1 = vsel %vm1653_vm12, %v1351_v39, %v1717_v46  ;;  %2367 = vmatprep.subr.bf16.mxu0 %v6023_v45  ;;  %v6030_v44 = vld [vmem:[#allocation8 + $0x140] ss:$8 sps:$4 sm:$0xff]   ;;  %v6035_v49 = vld [vmem:[#allocation8 + $0x154] ss:$8 sps:$4 sm:$0xff]  }
 0x2c3   : > { %v1785_v2 = vsel %vm1657_vm0, %v1355_v52, %v1721_v58  ;;  %v6880_v7 = vpack.c.bf16 %v1786_v61, %v1782_v60  ;;  %v1783_v8 = vsel %vm1655_vm13, %v1577_v40, %v1719_v55 }
 0x2c4   : > { %v1787_v3 = vsel %vm1659_vm1, %v1581_v54, %v1723_v59  ;;  %v1359_v4 = vpop.f32.mrb[40].mxu0  ;;  %v1585_v5 = vpop.f32.mrb[24].mxu1  ;;  %v6883_v13 = vpack.c.bf16 %v1785_v2, %v1781_v1 }
 0x2c5   : > { %vm1660_vm2 = vcmp.gt.f32.partialorder %v1359_v4, 0.0  ;;  %v1724_v9 = vmul.f32 0.01, %v1359_v4  ;;  %v1726_v10 = vmul.f32 0.01, %v1585_v5  ;;  %vm1662_vm3 = vcmp.gt.f32.partialorder %v1585_v5, 0.0  ;;  %2368 = vmatpush1.bf16.msra.mxu0 %v6021_v62 }
 0x2c6   : > { %v1361_v11 = vpop.f32.mrb[41].mxu0  ;;  %v1587_v12 = vpop.f32.mrb[25].mxu1  ;;  %v6885_v14 = vpack.c.bf16 %v1787_v3, %v1783_v8  ;;  %2294 = vmatprep.mubr.bf16.mxu0 %v6883_v13  ;;  %2369 = vmatprep.subr.bf16.mxu0 %v6026_v6 }
 0x2c7   : > { %v1788_v15 = vsel %vm1660_vm2, %v1359_v4, %v1724_v9  ;;  %v1363_v16 = vpop.f32.mrb[42].mxu0  ;;  %v1589_v17 = vpop.f32.mrb[26].mxu1  ;;  %vm1661_vm4 = vcmp.gt.f32.partialorder %v1361_v11, 0.0  ;;  %v1725_v20 = vmul.f32 0.01, %v1361_v11  ;;  %v1790_v22 = vsel %vm1662_vm3, %v1585_v5, %v1726_v10 }
 0x2c8   : > { %vm1664_vm5 = vcmp.gt.f32.partialorder %v1363_v16, 0.0  ;;  %v1728_v21 = vmul.f32 0.01, %v1363_v16  ;;  %vm1663_vm6 = vcmp.gt.f32.partialorder %v1587_v12, 0.0  ;;  %vm1666_vm7 = vcmp.gt.f32.partialorder %v1589_v17, 0.0  ;;  %v1365_v24 = vpop.f32.mrb[43].mxu0  ;;  %2295 = vmatmul.mubr.bf16.gmra.mrb[68].mxu0 %v6877_v63 }
 0x2c9   : > { %v1730_v23 = vmul.f32 0.01, %v1589_v17  ;;  %v1591_v25 = vpop.f32.mrb[27].mxu1  ;;  %v1727_v26 = vmul.f32 0.01, %v1587_v12  ;;  %vm1665_vm8 = vcmp.gt.f32.partialorder %v1365_v24, 0.0  ;;  %2370 = vmatpush1.bf16.msra.mxu0 %v6024_v18  ;;  %v1789_v45 = vsel %vm1661_vm4, %v1361_v11, %v1725_v20 }
 0x2ca   : > { %v1792_v27 = vsel %vm1664_vm5, %v1363_v16, %v1728_v21  ;;  %v1729_v28 = vmul.f32 0.01, %v1365_v24  ;;  %vm1667_vm9 = vcmp.gt.f32.partialorder %v1591_v25, 0.0  ;;  %v1731_v31 = vmul.f32 0.01, %v1591_v25  ;;  %2371 = vmatprep.subr.bf16.mxu0 %v6029_v19 }
 0x2cb   : > { %v1794_v29 = vsel %vm1666_vm7, %v1589_v17, %v1730_v23  ;;  %v6890_v34 = vpack.c.bf16 %v1792_v27, %v1788_v15  ;;  %v1791_v46 = vsel %vm1663_vm6, %v1587_v12, %v1727_v26  ;;  %v6033_v5 = vld [vmem:[#allocation8 + $0x150] ss:$8 sps:$4 sm:$0xff]   ;;  %v6038_v15 = vld [vmem:[#allocation8 + $0x164] ss:$8 sps:$4 sm:$0xff]   ;;  %v6036_v27 = vld [vmem:[#allocation8 + $0x160] ss:$8 sps:$4 sm:$0xff]  }
 0x2cc   : > { %v1793_v35 = vsel %vm1665_vm8, %v1365_v24, %v1729_v28  ;;  %v1369_v36 = vpop.f32.mrb[44].mxu0  ;;  %v1595_v37 = vpop.f32.mrb[28].mxu1  ;;  %v6892_v39 = vpack.c.bf16 %v1794_v29, %v1790_v22  ;;  %v1795_v40 = vsel %vm1667_vm9, %v1591_v25, %v1731_v31  ;;  %v6041_v28 = vld [vmem:[#allocation8 + $0x174] ss:$8 sps:$4 sm:$0xff]  }
 0x2cd   : > { %7610 = vst [vmem:[#allocation17_spill] sm:$0xff] %v6890_v34  ;;  %vm1668_vm10 = vcmp.gt.f32.partialorder %v1369_v36, 0.0  ;;  %v1732_v41 = vmul.f32 0.01, %v1369_v36  ;;  %v1371_v42 = vpop.f32.mrb[45].mxu0  ;;  %v1597_v43 = vpop.f32.mrb[29].mxu1  ;;  %2372 = vmatpush1.bf16.msra.mxu0 %v6027_v32  ;;  %v6896_v53 = vpack.c.bf16 %v1793_v35, %v1789_v45  ;;  %v6898_v55 = vpack.c.bf16 %v1795_v40, %v1791_v46 }
 0x2ce   : > { %vm1670_vm11 = vcmp.gt.f32.partialorder %v1595_v37, 0.0  ;;  %v1734_v48 = vmul.f32 0.01, %v1595_v37  ;;  %vm1669_vm12 = vcmp.gt.f32.partialorder %v1371_v42, 0.0  ;;  %v1733_v51 = vmul.f32 0.01, %v1371_v42  ;;  %2373 = vmatprep.subr.bf16.mxu0 %v6032_v38 }
 0x2cf   : > { %v1373_v52 = vpop.f32.mrb[46].mxu0  ;;  %v1599_v54 = vpop.f32.mrb[30].mxu1  ;;  %v1796_v56 = vsel %vm1668_vm10, %v1369_v36, %v1732_v41  ;;  %vm1671_vm13 = vcmp.gt.f32.partialorder %v1597_v43, 0.0  ;;  %v1735_v60 = vmul.f32 0.01, %v1597_v43  ;;  %2304 = vmatprep.mubr.bf16.mxu0 %v6896_v53 }
 0x2d0   : > { %vm1672_vm14 = vcmp.gt.f32.partialorder %v1373_v52, 0.0  ;;  %v1736_v57 = vmul.f32 0.01, %v1373_v52  ;;  %v1375_v58 = vpop.f32.mrb[47].mxu0  ;;  %v1601_v59 = vpop.f32.mrb[31].mxu1  ;;  %vm1674_vm15 = vcmp.gt.f32.partialorder %v1599_v54, 0.0  ;;  %2305 = vmatmul.mubr.bf16.gmra.mrb[72].mxu0 %v6890_v34  ;;  %v1798_v3 = vsel %vm1670_vm11, %v1595_v37, %v1734_v48 }
 0x2d1   : > { %v1738_v61 = vmul.f32 0.01, %v1599_v54  ;;  %vm1673_vm0 = vcmp.gt.f32.partialorder %v1375_v58, 0.0  ;;  %v1737_v1 = vmul.f32 0.01, %v1375_v58  ;;  %vm1675_vm1 = vcmp.gt.f32.partialorder %v1601_v59, 0.0  ;;  %2374 = vmatpush1.bf16.msra.mxu0 %v6030_v44 }
 0x2d2   : > { %v1800_v62 = vsel %vm1672_vm14, %v1373_v52, %v1736_v57  ;;  %v1739_v2 = vmul.f32 0.01, %v1601_v59  ;;  %v1797_v8 = vsel %vm1669_vm12, %v1371_v42, %v1733_v51  ;;  %2375 = vmatprep.subr.bf16.mxu0 %v6035_v49  ;;  %v1799_v17 = vsel %vm1671_vm13, %v1597_v43, %v1735_v60  ;;  %v6039_v44 = vld [vmem:[#allocation8 + $0x170] ss:$8 sps:$4 sm:$0xff]   ;;  %v6044_v51 = vld [vmem:[#allocation8 + $0x184] ss:$8 sps:$4 sm:$0xff]  }
 0x2d3   : > { %v1802_v4 = vsel %vm1674_vm15, %v1599_v54, %v1738_v61  ;;  %v6904_v6 = vpack.c.bf16 %v1800_v62, %v1796_v56  ;;  %v1801_v9 = vsel %vm1673_vm0, %v1375_v58, %v1737_v1  ;;  %v6047_v1 = vld [vmem:[#allocation8 + $0x194] ss:$8 sps:$4 sm:$0xff]  }
 0x2d4   : > { %v1803_v10 = vsel %vm1675_vm1, %v1601_v59, %v1739_v2  ;;  %v1379_v11 = vpop.f32.mrb[48].mxu0  ;;  %v1605_v12 = vpop.f32.mrb[32].mxu1  ;;  %v6907_v16 = vpack.c.bf16 %v1802_v4, %v1798_v3  ;;  %v6910_v22 = vpack.c.bf16 %v1801_v9, %v1797_v8  ;;  %v6042_v59 = vld [vmem:[#allocation8 + $0x180] ss:$8 sps:$4 sm:$0xff]  }
 0x2d5   : > { %7611 = vst [vmem:[#allocation18_spill] sm:$0xff] %v6904_v6  ;;  %vm1676_vm2 = vcmp.gt.f32.partialorder %v1379_v11, 0.0  ;;  %v1740_v18 = vmul.f32 0.01, %v1379_v11  ;;  %v1742_v19 = vmul.f32 0.01, %v1605_v12  ;;  %v6912_v23 = vpack.c.bf16 %v1803_v10, %v1799_v17  ;;  %2376 = vmatpush1.bf16.msra.mxu0 %v6033_v5 }
 0x2d6   : > { %vm1678_vm3 = vcmp.gt.f32.partialorder %v1605_v12, 0.0  ;;  %v1381_v20 = vpop.f32.mrb[49].mxu0  ;;  %v1607_v21 = vpop.f32.mrb[33].mxu1  ;;  %7612 = vst [vmem:[#allocation19_spill] sm:$0xff] %v6910_v22  ;;  %2314 = vmatprep.mubr.bf16.mxu0 %v6910_v22  ;;  %2377 = vmatprep.subr.bf16.mxu0 %v6038_v15 }
 0x2d7   : > { %v1804_v24 = vsel %vm1676_vm2, %v1379_v11, %v1740_v18  ;;  %v1383_v25 = vpop.f32.mrb[50].mxu0  ;;  %v1609_v26 = vpop.f32.mrb[34].mxu1  ;;  %vm1677_vm4 = vcmp.gt.f32.partialorder %v1381_v20, 0.0  ;;  %v1741_v29 = vmul.f32 0.01, %v1381_v20  ;;  %v1806_v32 = vsel %vm1678_vm3, %v1605_v12, %v1742_v19 }
 0x2d8   : > { %vm1680_vm5 = vcmp.gt.f32.partialorder %v1383_v25, 0.0  ;;  %v1744_v31 = vmul.f32 0.01, %v1383_v25  ;;  %vm1679_vm6 = vcmp.gt.f32.partialorder %v1607_v21, 0.0  ;;  %vm1682_vm7 = vcmp.gt.f32.partialorder %v1609_v26, 0.0  ;;  %v1385_v36 = vpop.f32.mrb[51].mxu0  ;;  %2315 = vmatmul.mubr.bf16.gmra.mrb[76].mxu0 %v6904_v6 }
 0x2d9   : > { %v1746_v35 = vmul.f32 0.01, %v1609_v26  ;;  %v1611_v37 = vpop.f32.mrb[35].mxu1  ;;  %v1743_v38 = vmul.f32 0.01, %v1607_v21  ;;  %vm1681_vm8 = vcmp.gt.f32.partialorder %v1385_v36, 0.0  ;;  %2378 = vmatpush1.bf16.msra.mxu0 %v6036_v27  ;;  %v1805_v60 = vsel %vm1677_vm4, %v1381_v20, %v1741_v29 }
 0x2da   : > { %v1808_v40 = vsel %vm1680_vm5, %v1383_v25, %v1744_v31  ;;  %v1745_v41 = vmul.f32 0.01, %v1385_v36  ;;  %vm1683_vm9 = vcmp.gt.f32.partialorder %v1611_v37, 0.0  ;;  %v1747_v43 = vmul.f32 0.01, %v1611_v37  ;;  %2379 = vmatprep.subr.bf16.mxu0 %v6041_v28 }
 0x2db   : > { %v1810_v42 = vsel %vm1682_vm7, %v1609_v26, %v1746_v35  ;;  %v6917_v45 = vpack.c.bf16 %v1808_v40, %v1804_v24  ;;  %v1807_v61 = vsel %vm1679_vm6, %v1607_v21, %v1743_v38  ;;  %v6045_v25 = vld [vmem:[#allocation8 + $0x190] ss:$8 sps:$4 sm:$0xff]   ;;  %v6050_v35 = vld [vmem:[#allocation8 + $0x1a4] ss:$8 sps:$4 sm:$0xff]  }
 0x2dc   : > { %v1809_v46 = vsel %vm1681_vm8, %v1385_v36, %v1745_v41  ;;  %v1389_v48 = vpop.f32.mrb[52].mxu0  ;;  %v1615_v49 = vpop.f32.mrb[36].mxu1  ;;  %v6919_v52 = vpack.c.bf16 %v1810_v42, %v1806_v32  ;;  %v1811_v54 = vsel %vm1683_vm9, %v1611_v37, %v1747_v43 }
 0x2dd   : > { %7613 = vst [vmem:[#allocation20_spill] sm:$0xff] %v6917_v45  ;;  %vm1684_vm10 = vcmp.gt.f32.partialorder %v1389_v48, 0.0  ;;  %v1748_v56 = vmul.f32 0.01, %v1389_v48  ;;  %v1391_v57 = vpop.f32.mrb[53].mxu0  ;;  %v1617_v58 = vpop.f32.mrb[37].mxu1  ;;  %2380 = vmatpush1.bf16.msra.mxu0 %v6039_v44  ;;  %v6923_v3 = vpack.c.bf16 %v1809_v46, %v1805_v60  ;;  %v6925_v8 = vpack.c.bf16 %v1811_v54, %v1807_v61 }
 0x2de   : > { %vm1686_vm11 = vcmp.gt.f32.partialorder %v1615_v49, 0.0  ;;  %v1750_v62 = vmul.f32 0.01, %v1615_v49  ;;  %vm1685_vm12 = vcmp.gt.f32.partialorder %v1391_v57, 0.0  ;;  %v1749_v2 = vmul.f32 0.01, %v1391_v57  ;;  %2381 = vmatprep.subr.bf16.mxu0 %v6044_v51 }
 0x2df   : > { %7614 = vst [vmem:[#allocation21_spill] sm:$0xff] %v6923_v3  ;;  %v1393_v4 = vpop.f32.mrb[54].mxu0  ;;  %v1619_v5 = vpop.f32.mrb[38].mxu1  ;;  %v1812_v9 = vsel %vm1684_vm10, %v1389_v48, %v1748_v56  ;;  %vm1687_vm13 = vcmp.gt.f32.partialorder %v1617_v58, 0.0  ;;  %v1751_v15 = vmul.f32 0.01, %v1617_v58  ;;  %2324 = vmatprep.mubr.bf16.mxu0 %v6923_v3 }
 0x2e0   : > { %vm1688_vm14 = vcmp.gt.f32.partialorder %v1393_v4, 0.0  ;;  %v1752_v10 = vmul.f32 0.01, %v1393_v4  ;;  %v1395_v11 = vpop.f32.mrb[55].mxu0  ;;  %v1621_v12 = vpop.f32.mrb[39].mxu1  ;;  %vm1690_vm15 = vcmp.gt.f32.partialorder %v1619_v5, 0.0  ;;  %2325 = vmatmul.mubr.bf16.gmra.mrb[80].mxu0 %v6917_v45  ;;  %v1814_v21 = vsel %vm1686_vm11, %v1615_v49, %v1750_v62 }
 0x2e1   : > { %v1754_v17 = vmul.f32 0.01, %v1619_v5  ;;  %vm1689_vm0 = vcmp.gt.f32.partialorder %v1395_v11, 0.0  ;;  %v1753_v19 = vmul.f32 0.01, %v1395_v11  ;;  %vm1691_vm1 = vcmp.gt.f32.partialorder %v1621_v12, 0.0  ;;  %2382 = vmatpush1.bf16.msra.mxu0 %v6042_v59 }
 0x2e2   : > { %v1816_v18 = vsel %vm1688_vm14, %v1393_v4, %v1752_v10  ;;  %v1755_v20 = vmul.f32 0.01, %v1621_v12  ;;  %v1813_v27 = vsel %vm1685_vm12, %v1391_v57, %v1749_v2  ;;  %2383 = vmatprep.subr.bf16.mxu0 %v6047_v1  ;;  %v1815_v37 = vsel %vm1687_vm13, %v1617_v58, %v1751_v15  ;;  %v6048_v44 = vld [vmem:[#allocation8 + $0x1a0] ss:$8 sps:$4 sm:$0xff]   ;;  %v6053_v54 = vld [vmem:[#allocation8 + $0x1b4] ss:$8 sps:$4 sm:$0xff]  }
 0x2e3   : > { %v1818_v24 = vsel %vm1690_vm15, %v1619_v5, %v1754_v17  ;;  %v6931_v26 = vpack.c.bf16 %v1816_v18, %v1812_v9  ;;  %v1817_v28 = vsel %vm1689_vm0, %v1395_v11, %v1753_v19  ;;  %v6051_v9 = vld [vmem:[#allocation8 + $0x1b0] ss:$8 sps:$4 sm:$0xff]   ;;  %v6056_v17 = vld [vmem:[#allocation8 + $0x1c4] ss:$8 sps:$4 sm:$0xff]  }
 0x2e4   : > { %v1819_v29 = vsel %vm1691_vm1, %v1621_v12, %v1755_v20  ;;  %v1399_v31 = vpop.f32.mrb[56].mxu0  ;;  %v1625_v32 = vpop.f32.mrb[40].mxu1  ;;  %v6934_v36 = vpack.c.bf16 %v1818_v24, %v1814_v21  ;;  %v6937_v43 = vpack.c.bf16 %v1817_v28, %v1813_v27  ;;  %v6054_v28 = vld [vmem:[#allocation8 + $0x1c0] ss:$8 sps:$4 sm:$0xff]  }
 0x2e5   : > { %7615 = vst [vmem:[#allocation22_spill] sm:$0xff] %v6931_v26  ;;  %vm1692_vm2 = vcmp.gt.f32.partialorder %v1399_v31, 0.0  ;;  %v1756_v38 = vmul.f32 0.01, %v1399_v31  ;;  %v1758_v40 = vmul.f32 0.01, %v1625_v32  ;;  %v6939_v46 = vpack.c.bf16 %v1819_v29, %v1815_v37  ;;  %2384 = vmatpush1.bf16.msra.mxu0 %v6045_v25 }
 0x2e6   : > { %vm1694_vm3 = vcmp.gt.f32.partialorder %v1625_v32, 0.0  ;;  %v1401_v41 = vpop.f32.mrb[57].mxu0  ;;  %v1627_v42 = vpop.f32.mrb[41].mxu1  ;;  %7616 = vst [vmem:[#allocation23_spill] sm:$0xff] %v6937_v43  ;;  %2334 = vmatprep.mubr.bf16.mxu0 %v6937_v43  ;;  %2385 = vmatprep.subr.bf16.mxu0 %v6050_v35 }
 0x2e7   : > { %v1757_v48 = vmul.f32 0.01, %v1401_v41  ;;  %v1403_v49 = vpop.f32.mrb[58].mxu0  ;;  %v1629_v51 = vpop.f32.mrb[42].mxu1  ;;  %v1820_v56 = vsel %vm1692_vm2, %v1399_v31, %v1756_v38  ;;  %v1759_v57 = vmul.f32 0.01, %v1627_v42  ;;  %v1822_v59 = vsel %vm1694_vm3, %v1625_v32, %v1758_v40 }
 0x2e8   : > { %vm1696_vm4 = vcmp.gt.f32.partialorder %v1403_v49, 0.0  ;;  %v1760_v58 = vmul.f32 0.01, %v1403_v49  ;;  %vm1693_vm5 = vcmp.gt.f32.partialorder %v1401_v41, 0.0  ;;  %vm1698_vm6 = vcmp.gt.f32.partialorder %v1629_v51, 0.0  ;;  %v1405_v61 = vpop.f32.mrb[59].mxu0  ;;  %2335 = vmatmul.mubr.bf16.gmra.mrb[84].mxu0 %v6931_v26 }
 0x2e9   : > { %v1762_v60 = vmul.f32 0.01, %v1629_v51  ;;  %v1631_v62 = vpop.f32.mrb[43].mxu1  ;;  %vm1695_vm7 = vcmp.gt.f32.partialorder %v1627_v42, 0.0  ;;  %vm1697_vm8 = vcmp.gt.f32.partialorder %v1405_v61, 0.0  ;;  %2386 = vmatpush1.bf16.msra.mxu0 %v6048_v44  ;;  %v1821_v19 = vsel %vm1693_vm5, %v1401_v41, %v1757_v48 }
 0x2ea   : > { %v1824_v1 = vsel %vm1696_vm4, %v1403_v49, %v1760_v58  ;;  %v1761_v2 = vmul.f32 0.01, %v1405_v61  ;;  %vm1699_vm9 = vcmp.gt.f32.partialorder %v1631_v62, 0.0  ;;  %v1763_v5 = vmul.f32 0.01, %v1631_v62  ;;  %2387 = vmatprep.subr.bf16.mxu0 %v6053_v54 }
 0x2eb   : > { %v1826_v4 = vsel %vm1698_vm6, %v1629_v51, %v1762_v60  ;;  %v6944_v10 = vpack.c.bf16 %v1824_v1, %v1820_v56  ;;  %v1823_v20 = vsel %vm1695_vm7, %v1627_v42, %v1759_v57  ;;  %v6059_v31 = vld [vmem:[#allocation8 + $0x1d4] ss:$8 sps:$4 sm:$0xff]  }
 0x2ec   : > { %v1825_v11 = vsel %vm1697_vm8, %v1405_v61, %v1761_v2  ;;  %v1409_v12 = vpop.f32.mrb[60].mxu0  ;;  %v1635_v15 = vpop.f32.mrb[44].mxu1  ;;  %v6946_v18 = vpack.c.bf16 %v1826_v4, %v1822_v59  ;;  %v1827_v21 = vsel %vm1699_vm9, %v1631_v62, %v1763_v5  ;;  %v6057_v61 = vld [vmem:[#allocation8 + $0x1d0] ss:$8 sps:$4 sm:$0xff]   ;;  %v6062_v5 = vld [vmem:[#allocation8 + $0x1e4] ss:$8 sps:$4 sm:$0xff]  }
 0x2ed   : > { %7617 = vst [vmem:[#allocation24_spill] sm:$0xff] %v6944_v10  ;;  %v1764_v24 = vmul.f32 0.01, %v1409_v12  ;;  %v1411_v25 = vpop.f32.mrb[61].mxu0  ;;  %v1637_v27 = vpop.f32.mrb[45].mxu1  ;;  %vm1700_vm10 = vcmp.gt.f32.partialorder %v1409_v12, 0.0  ;;  %2388 = vmatpush1.bf16.msra.mxu0 %v6051_v9  ;;  %v6950_v37 = vpack.c.bf16 %v1825_v11, %v1821_v19  ;;  %v6952_v41 = vpack.c.bf16 %v1827_v21, %v1823_v20 }
 0x2ee   : > { %vm1702_vm11 = vcmp.gt.f32.partialorder %v1635_v15, 0.0  ;;  %v1766_v29 = vmul.f32 0.01, %v1635_v15  ;;  %vm1701_vm12 = vcmp.gt.f32.partialorder %v1411_v25, 0.0  ;;  %v1765_v32 = vmul.f32 0.01, %v1411_v25  ;;  %2389 = vmatprep.subr.bf16.mxu0 %v6056_v17 }
 0x2ef   : > { %v1767_v35 = vmul.f32 0.01, %v1637_v27  ;;  %7618 = vst [vmem:[#allocation25_spill] sm:$0xff] %v6950_v37  ;;  %v1413_v38 = vpop.f32.mrb[62].mxu0  ;;  %v1639_v40 = vpop.f32.mrb[46].mxu1  ;;  %vm1703_vm13 = vcmp.gt.f32.partialorder %v1637_v27, 0.0  ;;  %v1828_v49 = vsel %vm1700_vm10, %v1409_v12, %v1764_v24  ;;  %2344 = vmatprep.mubr.bf16.mxu0 %v6950_v37 }
 0x2f0   : > { %vm1704_vm14 = vcmp.gt.f32.partialorder %v1413_v38, 0.0  ;;  %v1768_v42 = vmul.f32 0.01, %v1413_v38  ;;  %v1415_v44 = vpop.f32.mrb[63].mxu0  ;;  %v1641_v48 = vpop.f32.mrb[47].mxu1  ;;  %vm1706_vm15 = vcmp.gt.f32.partialorder %v1639_v40, 0.0  ;;  %2345 = vmatmul.mubr.bf16.gmra.mrb[88].mxu0 %v6944_v10  ;;  %v1830_v58 = vsel %vm1702_vm11, %v1635_v15, %v1766_v29 }
 0x2f1   : > { %v1770_v51 = vmul.f32 0.01, %v1639_v40  ;;  %vm1705_vm0 = vcmp.gt.f32.partialorder %v1415_v44, 0.0  ;;  %v1769_v56 = vmul.f32 0.01, %v1415_v44  ;;  %vm1707_vm1 = vcmp.gt.f32.partialorder %v1641_v48, 0.0  ;;  %2390 = vmatpush1.bf16.msra.mxu0 %v6054_v28 }
 0x2f2   : > { %v1832_v54 = vsel %vm1704_vm14, %v1413_v38, %v1768_v42  ;;  %v1771_v57 = vmul.f32 0.01, %v1641_v48  ;;  %v1829_v59 = vsel %vm1701_vm12, %v1411_v25, %v1765_v32  ;;  %v1831_v1 = vsel %vm1703_vm13, %v1637_v27, %v1767_v35  ;;  %2391 = vmatprep.subr.bf16.mxu0 %v6059_v31  ;;  %v6060_v15 = vld [vmem:[#allocation8 + $0x1e0] ss:$8 sps:$4 sm:$0xff]   ;;  %v6065_v17 = vld [vmem:[#allocation8 + $0x1f4] ss:$8 sps:$4 sm:$0xff]  }
 0x2f3   : > { %v1834_v60 = vsel %vm1706_vm15, %v1639_v40, %v1770_v51  ;;  %v6959_v62 = vpack.c.bf16 %v1832_v54, %v1828_v49  ;;  %v1833_v2 = vsel %vm1705_vm0, %v1415_v44, %v1769_v56  ;;  %v6063_v19 = vld [vmem:[#allocation8 + $0x1f0] ss:$8 sps:$4 sm:$0xff]   ;;  %v6986_v20 = vld [vmem:[#allocation2] sm:$0xff]  }
 0x2f4   : > { %v1835_v4 = vsel %vm1707_vm1, %v1641_v48, %v1771_v57  ;;  %v6962_v9 = vpack.c.bf16 %v1834_v60, %v1830_v58  ;;  %v6964_v11 = vpack.c.bf16 %v1833_v2, %v1829_v59 }
 0x2f5   : > { %7619 = vst [vmem:[#allocation26_spill] sm:$0xff] %v6959_v62  ;;  %v6966_v12 = vpack.c.bf16 %v1835_v4, %v1831_v1  ;;  %2392 = vmatpush1.bf16.msra.mxu0 %v6057_v61 }
 0x2f6   : > { %7620 = vst [vmem:[#allocation27_spill] sm:$0xff] %v6964_v11  ;;  %2354 = vmatprep.mubr.bf16.mxu0 %v6964_v11  ;;  %2393 = vmatprep.subr.bf16.mxu0 %v6062_v5 }
 0x2f8   : > { %2355 = vmatmul.mubr.bf16.gmra.mrb[92].mxu0 %v6959_v62 }
 0x2f9   : > { %2394 = vmatpush1.bf16.msra.mxu0 %v6060_v15  ;;  %2397 = vmatprep.mubr.bf16.mxu0 %v6871_v50 }
 0x2fa   : > { %2395 = vmatprep.subr.bf16.mxu0 %v6065_v17 }
 0x2fd   : > { %2396 = vmatpush1.bf16.msra.mxu0 %v6063_v19 }
 0x300   : > { %2398 = vmatmul.mubr.bf16.vlgmr.msra.gmra.mrb[64].mxu0 %v6865_v33 }
 0x301   : > { %2407 = vmatprep.mubr.bf16.mxu0 %v6885_v14 }
 0x308   : > { %2408 = vmatmul.mubr.bf16.gmra.mrb[68].mxu0 %v6880_v7 }
 0x309   : > { %2417 = vmatprep.mubr.bf16.mxu0 %v6898_v55 }
 0x310   : > { %2418 = vmatmul.mubr.bf16.gmra.mrb[72].mxu0 %v6892_v39 }
 0x311   : > { %2427 = vmatprep.mubr.bf16.mxu0 %v6912_v23 }
 0x318   : > { %2428 = vmatmul.mubr.bf16.gmra.mrb[76].mxu0 %v6907_v16 }
 0x319   : > { %2437 = vmatprep.mubr.bf16.mxu0 %v6925_v8 }
 0x320   : > { %2438 = vmatmul.mubr.bf16.gmra.mrb[80].mxu0 %v6919_v52 }
 0x321   : > { %2447 = vmatprep.mubr.bf16.mxu0 %v6939_v46 }
 0x328   : > { %2448 = vmatmul.mubr.bf16.gmra.mrb[84].mxu0 %v6934_v36 }
 0x329   : > { %2457 = vmatprep.mubr.bf16.mxu0 %v6952_v41 }
 0x330   : > { %2458 = vmatmul.mubr.bf16.gmra.mrb[88].mxu0 %v6946_v18 }
 0x331   : > { %2467 = vmatprep.mubr.bf16.mxu0 %v6966_v12 }
 0x338   : > { %2468 = vmatmul.mubr.bf16.gmra.mrb[92].mxu0 %v6962_v9 }
 0x339   : > { %5459 = vmatprep.mubr.bf16.mxu0 %v6986_v20 }
 0x3d3   : > { %v2399_v21 = vpop.f32.mrb[64].mxu0 }
 0x3d4   : > { %v2401_v24 = vpop.f32.mrb[65].mxu0 }
 0x3d5   : > { %v2403_v25 = vpop.f32.mrb[66].mxu0 }
 0x3d6   : > { %v2478_v27 = vpack.c.bf16 %v2403_v25, %v2399_v21  ;;  %v2405_v28 = vpop.f32.mrb[67].mxu0 }
 0x3d7   : > { %v2479_v29 = vpack.c.bf16 %v2405_v28, %v2401_v24 }
 0x3d9   : > { %2494 = vmatprep.subr.bf16.mxu1 %v2479_v29 }
 0x3da   : > { %2495 = vmatpush1.bf16.msra.mxu1 %v2478_v27 }
 0x3db   : > { %v2409_v31 = vpop.f32.mrb[68].mxu0 }
 0x3dc   : > { %v2411_v32 = vpop.f32.mrb[69].mxu0 }
 0x3dd   : > { %v2413_v35 = vpop.f32.mrb[70].mxu0 }
 0x3de   : > { %v2480_v38 = vpack.c.bf16 %v2413_v35, %v2409_v31  ;;  %v2415_v40 = vpop.f32.mrb[71].mxu0 }
 0x3df   : > { %v2481_v42 = vpack.c.bf16 %v2415_v40, %v2411_v32 }
 0x3e1   : > { %2496 = vmatprep.subr.bf16.mxu1 %v2481_v42 }
 0x3e2   : > { %2497 = vmatpush1.bf16.msra.mxu1 %v2480_v38 }
 0x3e3   : > { %v2419_v44 = vpop.f32.mrb[72].mxu0 }
 0x3e4   : > { %v2421_v48 = vpop.f32.mrb[73].mxu0 }
 0x3e5   : > { %v2423_v49 = vpop.f32.mrb[74].mxu0 }
 0x3e6   : > { %v2482_v51 = vpack.c.bf16 %v2423_v49, %v2419_v44  ;;  %v2425_v54 = vpop.f32.mrb[75].mxu0 }
 0x3e7   : > { %v2483_v56 = vpack.c.bf16 %v2425_v54, %v2421_v48 }
 0x3e9   : > { %2498 = vmatprep.subr.bf16.mxu1 %v2483_v56 }
 0x3ea   : > { %2499 = vmatpush1.bf16.msra.mxu1 %v2482_v51 }
 0x3eb   : > { %v2429_v57 = vpop.f32.mrb[76].mxu0 }
 0x3ec   : > { %v2431_v58 = vpop.f32.mrb[77].mxu0 }
 0x3ed   : > { %v2433_v59 = vpop.f32.mrb[78].mxu0 }
 0x3ee   : > { %v2484_v60 = vpack.c.bf16 %v2433_v59, %v2429_v57  ;;  %v2435_v61 = vpop.f32.mrb[79].mxu0  ;;  %v6066_v57 = vld [vmem:[#allocation10 + $0x40] sm:$0xff]   ;;  %v6068_v59 = vld [vmem:[#allocation10 + $0x48] sm:$0xff]  }
 0x3ef   : > { %v2485_v1 = vpack.c.bf16 %v2435_v61, %v2431_v58  ;;  %v6067_v58 = vld [vmem:[#allocation10] sm:$0xff]   ;;  %v6070_v61 = vld [vmem:[#allocation10 + $0x50] sm:$0xff]  }
 0x3f1   : > { %2500 = vmatprep.subr.bf16.mxu1 %v2485_v1  ;;  %v6071_v1 = vld [vmem:[#allocation10 + $0x10] sm:$0xff]  }
 0x3f2   : > { %2501 = vmatpush1.bf16.msra.mxu1 %v2484_v60  ;;  %v6069_v60 = vld [vmem:[#allocation10 + $0x8] sm:$0xff]  }
 0x3f3   : > { %v2439_v2 = vpop.f32.mrb[80].mxu0 }
 0x3f4   : > { %v2441_v4 = vpop.f32.mrb[81].mxu0 }
 0x3f5   : > { %v2443_v5 = vpop.f32.mrb[82].mxu0 }
 0x3f6   : > { %v2486_v15 = vpack.c.bf16 %v2443_v5, %v2439_v2  ;;  %v2445_v17 = vpop.f32.mrb[83].mxu0  ;;  %v6072_v2 = vld [vmem:[#allocation10 + $0x58] sm:$0xff]  }
 0x3f7   : > { %v2487_v19 = vpack.c.bf16 %v2445_v17, %v2441_v4  ;;  %v6991_v4 = vld [vmem:[#allocation2 + $0x8] sm:$0xff]   ;;  %v6073_v5 = vld [vmem:[#allocation10 + $0x18] sm:$0xff]   ;;  %v6075_v17 = vld [vmem:[#allocation10 + $0x20] sm:$0xff]  }
 0x3f9   : > { %2502 = vmatprep.subr.bf16.mxu1 %v2487_v19  ;;  %v6076_v19 = vld [vmem:[#allocation10 + $0x68] sm:$0xff]  }
 0x3fa   : > { %2503 = vmatpush1.bf16.msra.mxu1 %v2486_v15  ;;  %v6074_v15 = vld [vmem:[#allocation10 + $0x60] sm:$0xff]  }
 0x3fb   : > { %v2449_v21 = vpop.f32.mrb[84].mxu0 }
 0x3fc   : > { %v2451_v24 = vpop.f32.mrb[85].mxu0 }
 0x3fd   : > { %v2453_v25 = vpop.f32.mrb[86].mxu0 }
 0x3fe   : > { %v2488_v27 = vpack.c.bf16 %v2453_v25, %v2449_v21  ;;  %v2455_v28 = vpop.f32.mrb[87].mxu0  ;;  %v6995_v21 = vld [vmem:[#allocation2 + $0x10] sm:$0xff]  }
 0x3ff   : > { %v2489_v29 = vpack.c.bf16 %v2455_v28, %v2451_v24  ;;  %v6077_v24 = vld [vmem:[#allocation10 + $0x28] sm:$0xff]   ;;  %v6078_v25 = vld [vmem:[#allocation10 + $0x70] sm:$0xff]   ;;  %v6999_v28 = vld [vmem:[#allocation2 + $0x18] sm:$0xff]  }
 0x401   : > { %2504 = vmatprep.subr.bf16.mxu1 %v2489_v29  ;;  %v7003_v29 = vld [vmem:[#allocation2 + $0x20] sm:$0xff]  }
 0x402   : > { %2505 = vmatpush1.bf16.msra.mxu1 %v2488_v27  ;;  %v6079_v27 = vld [vmem:[#allocation10 + $0x30] sm:$0xff]  }
 0x403   : > { %v2459_v31 = vpop.f32.mrb[88].mxu0 }
 0x404   : > { %v2461_v32 = vpop.f32.mrb[89].mxu0 }
 0x405   : > { %v2463_v35 = vpop.f32.mrb[90].mxu0 }
 0x406   : > { %v2490_v38 = vpack.c.bf16 %v2463_v35, %v2459_v31  ;;  %v2465_v40 = vpop.f32.mrb[91].mxu0  ;;  %v7007_v31 = vld [vmem:[#allocation2 + $0x28] sm:$0xff]   ;;  %v7015_v35 = vld [vmem:[#allocation2 + $0x38] sm:$0xff]  }
 0x407   : > { %v2491_v42 = vpack.c.bf16 %v2465_v40, %v2461_v32  ;;  %v7011_v32 = vld [vmem:[#allocation2 + $0x30] sm:$0xff]   ;;  %v6081_v40 = vld [vmem:[#allocation10 + $0x38] sm:$0xff]  }
 0x409   : > { %2506 = vmatprep.subr.bf16.mxu1 %v2491_v42 }
 0x40a   : > { %2507 = vmatpush1.bf16.msra.mxu1 %v2490_v38  ;;  %v6080_v38 = vld [vmem:[#allocation10 + $0x78] sm:$0xff]  }
 0x40b   : > { %v2469_v44 = vpop.f32.mrb[92].mxu0 }
 0x40c   : > { %v2471_v48 = vpop.f32.mrb[93].mxu0 }
 0x40d   : > { %v2473_v49 = vpop.f32.mrb[94].mxu0 }
 0x40e   : > { %v2492_v51 = vpack.c.bf16 %v2473_v49, %v2469_v44  ;;  %v2475_v54 = vpop.f32.mrb[95].mxu0 }
 0x40f   : > { %v2493_v56 = vpack.c.bf16 %v2475_v54, %v2471_v48 }
 0x411   : > { %2508 = vmatprep.subr.bf16.mxu1 %v2493_v56 }
 0x412   : > { %2509 = vmatpush1.bf16.msra.mxu1 %v2492_v51 }
 0x413   : > { %5075 = vmatprep.subr.bf16.mxu1 %v6066_v57 }
 0x415   : > { %2527 = vmatmul.mubr.bf16.vlgmr.msra.gmra.mrb[48].mxu1 %v6986_v20 }
 0x416   : > { %2536 = vmatprep.mubr.bf16.mxu1 %v6468_v0  ;;  %5076 = vmatpush3.bf16.msra.mxu1 %v6067_v58 }
 0x417   : > { %5077 = vmatprep.subr.bf16.mxu1 %v6068_v59 }
 0x41a   : > { %5078 = vmatpush3.bf16.msra.mxu1 %v6069_v60 }
 0x41b   : > { %5079 = vmatprep.subr.bf16.mxu1 %v6070_v61 }
 0x41d   : > { %2537 = vmatmul.mubr.bf16.gmra.mrb[52].mxu1 %v6991_v4 }
 0x41e   : > { %2546 = vmatprep.mubr.bf16.mxu1 %v6468_v0  ;;  %5080 = vmatpush3.bf16.msra.mxu1 %v6071_v1 }
 0x41f   : > { %5081 = vmatprep.subr.bf16.mxu1 %v6072_v2 }
 0x422   : > { %5082 = vmatpush3.bf16.msra.mxu1 %v6073_v5 }
 0x423   : > { %5083 = vmatprep.subr.bf16.mxu1 %v6074_v15 }
 0x425   : > { %2547 = vmatmul.mubr.bf16.gmra.mrb[56].mxu1 %v6995_v21 }
 0x426   : > { %2556 = vmatprep.mubr.bf16.mxu1 %v6468_v0  ;;  %5084 = vmatpush3.bf16.msra.mxu1 %v6075_v17 }
 0x427   : > { %5085 = vmatprep.subr.bf16.mxu1 %v6076_v19 }
 0x42a   : > { %5086 = vmatpush3.bf16.msra.mxu1 %v6077_v24 }
 0x42b   : > { %5087 = vmatprep.subr.bf16.mxu1 %v6078_v25 }
 0x42d   : > { %2557 = vmatmul.mubr.bf16.gmra.mrb[60].mxu1 %v6999_v28 }
 0x42e   : > { %2566 = vmatprep.mubr.bf16.mxu1 %v6468_v0  ;;  %5088 = vmatpush3.bf16.msra.mxu1 %v6079_v27 }
 0x42f   : > { %5089 = vmatprep.subr.bf16.mxu1 %v6080_v38 }
 0x432   : > { %5090 = vmatpush3.bf16.msra.mxu1 %v6081_v40 }
 0x435   : > { %2567 = vmatmul.mubr.bf16.gmra.mrb[64].mxu1 %v7003_v29 }
 0x436   : > { %2576 = vmatprep.mubr.bf16.mxu1 %v6468_v0 }
 0x43d   : > { %2577 = vmatmul.mubr.bf16.gmra.mrb[68].mxu1 %v7007_v31 }
 0x43e   : > { %2586 = vmatprep.mubr.bf16.mxu1 %v6468_v0 }
 0x445   : > { %2587 = vmatmul.mubr.bf16.gmra.mrb[72].mxu1 %v7011_v32 }
 0x446   : > { %2596 = vmatprep.mubr.bf16.mxu1 %v6468_v0 }
 0x44d   : > { %2597 = vmatmul.mubr.bf16.gmra.mrb[76].mxu1 %v7015_v35 }
 0x4e8   : > { %v2528_v42 = vpop.f32.mrb[48].mxu1 }
 0x4e9   : > { %v2639_v44 = vmul.f32 0.01, %v2528_v42  ;;  %v2530_v48 = vpop.f32.mrb[49].mxu1  ;;  %vm2607_vm2 = vcmp.gt.f32.partialorder %v2528_v42, 0.0 }
 0x4ea   : > { %v2640_v49 = vmul.f32 0.01, %v2530_v48  ;;  %v2532_v51 = vpop.f32.mrb[50].mxu1  ;;  %vm2608_vm3 = vcmp.gt.f32.partialorder %v2530_v48, 0.0 }
 0x4eb   : > { %vm2609_vm4 = vcmp.gt.f32.partialorder %v2532_v51, 0.0  ;;  %v2641_v54 = vmul.f32 0.01, %v2532_v51  ;;  %v2534_v56 = vpop.f32.mrb[51].mxu1  ;;  %v2671_v57 = vsel %vm2607_vm2, %v2528_v42, %v2639_v44 }
 0x4ec   : > { %vm2610_vm5 = vcmp.gt.f32.partialorder %v2534_v56, 0.0  ;;  %v2642_v0 = vmul.f32 0.01, %v2534_v56  ;;  %v2672_v59 = vsel %vm2608_vm3, %v2530_v48, %v2640_v49 }
 0x4ed   : > { %v2673_v58 = vsel %vm2609_vm4, %v2532_v51, %v2641_v54 }
 0x4ee   : > { %v7018_v60 = vpack.c.bf16 %v2673_v58, %v2671_v57  ;;  %v2674_v61 = vsel %vm2610_vm5, %v2534_v56, %v2642_v0 }
 0x4ef   : > { %v7020_v1 = vpack.c.bf16 %v2674_v61, %v2672_v59 }
 0x4f0   : > { %v2538_v2 = vpop.f32.mrb[52].mxu1 }
 0x4f1   : > { %v2643_v5 = vmul.f32 0.01, %v2538_v2  ;;  %v2540_v15 = vpop.f32.mrb[53].mxu1  ;;  %2879 = vmatprep.mubr.bf16.mxu1 %v7020_v1  ;;  %vm2611_vm6 = vcmp.gt.f32.partialorder %v2538_v2, 0.0 }
 0x4f2   : > { %v2644_v17 = vmul.f32 0.01, %v2540_v15  ;;  %v2542_v19 = vpop.f32.mrb[54].mxu1  ;;  %2880 = vmatmul.mubr.bf16.vlgmr.msra.gmra.mrb[80].mxu1 %v7018_v60  ;;  %vm2612_vm7 = vcmp.gt.f32.partialorder %v2540_v15, 0.0 }
 0x4f3   : > { %vm2613_vm8 = vcmp.gt.f32.partialorder %v2542_v19, 0.0  ;;  %v2645_v24 = vmul.f32 0.01, %v2542_v19  ;;  %v2544_v25 = vpop.f32.mrb[55].mxu1  ;;  %v2675_v38 = vsel %vm2611_vm6, %v2538_v2, %v2643_v5 }
 0x4f4   : > { %vm2614_vm9 = vcmp.gt.f32.partialorder %v2544_v25, 0.0  ;;  %v2646_v27 = vmul.f32 0.01, %v2544_v25  ;;  %v2676_v42 = vsel %vm2612_vm7, %v2540_v15, %v2644_v17 }
 0x4f5   : > { %v2677_v40 = vsel %vm2613_vm8, %v2542_v19, %v2645_v24 }
 0x4f6   : > { %v2678_v44 = vsel %vm2614_vm9, %v2544_v25, %v2646_v27  ;;  %v7024_v48 = vpack.c.bf16 %v2677_v40, %v2675_v38 }
 0x4f7   : > { %v7026_v49 = vpack.c.bf16 %v2678_v44, %v2676_v42 }
 0x4f8   : > { %v2548_v51 = vpop.f32.mrb[56].mxu1 }
 0x4f9   : > { %v2647_v54 = vmul.f32 0.01, %v2548_v51  ;;  %v2550_v56 = vpop.f32.mrb[57].mxu1  ;;  %2887 = vmatprep.mubr.bf16.mxu1 %v7026_v49  ;;  %vm2615_vm10 = vcmp.gt.f32.partialorder %v2548_v51, 0.0 }
 0x4fa   : > { %v2648_v0 = vmul.f32 0.01, %v2550_v56  ;;  %v2552_v57 = vpop.f32.mrb[58].mxu1  ;;  %2888 = vmatmul.mubr.bf16.gmra.mrb[84].mxu1 %v7024_v48  ;;  %vm2616_vm11 = vcmp.gt.f32.partialorder %v2550_v56, 0.0 }
 0x4fb   : > { %vm2617_vm12 = vcmp.gt.f32.partialorder %v2552_v57, 0.0  ;;  %v2649_v58 = vmul.f32 0.01, %v2552_v57  ;;  %v2554_v59 = vpop.f32.mrb[59].mxu1  ;;  %v2679_v2 = vsel %vm2615_vm10, %v2548_v51, %v2647_v54 }
 0x4fc   : > { %vm2618_vm13 = vcmp.gt.f32.partialorder %v2554_v59, 0.0  ;;  %v2650_v61 = vmul.f32 0.01, %v2554_v59  ;;  %v2680_v15 = vsel %vm2616_vm11, %v2550_v56, %v2648_v0 }
 0x4fd   : > { %v2681_v5 = vsel %vm2617_vm12, %v2552_v57, %v2649_v58 }
 0x4fe   : > { %v2682_v17 = vsel %vm2618_vm13, %v2554_v59, %v2650_v61  ;;  %v7030_v19 = vpack.c.bf16 %v2681_v5, %v2679_v2 }
 0x4ff   : > { %v7032_v24 = vpack.c.bf16 %v2682_v17, %v2680_v15 }
 0x500   : > { %v2558_v25 = vpop.f32.mrb[60].mxu1 }
 0x501   : > { %v2651_v27 = vmul.f32 0.01, %v2558_v25  ;;  %v2560_v38 = vpop.f32.mrb[61].mxu1  ;;  %2895 = vmatprep.mubr.bf16.mxu1 %v7032_v24  ;;  %vm2619_vm14 = vcmp.gt.f32.partialorder %v2558_v25, 0.0 }
 0x502   : > { %v2652_v40 = vmul.f32 0.01, %v2560_v38  ;;  %v2562_v42 = vpop.f32.mrb[62].mxu1  ;;  %2896 = vmatmul.mubr.bf16.gmra.mrb[88].mxu1 %v7030_v19  ;;  %vm2620_vm15 = vcmp.gt.f32.partialorder %v2560_v38, 0.0 }
 0x503   : > { %vm2621_vm0 = vcmp.gt.f32.partialorder %v2562_v42, 0.0  ;;  %v2653_v44 = vmul.f32 0.01, %v2562_v42  ;;  %v2564_v51 = vpop.f32.mrb[63].mxu1  ;;  %v2683_v56 = vsel %vm2619_vm14, %v2558_v25, %v2651_v27 }
 0x504   : > { %vm2622_vm1 = vcmp.gt.f32.partialorder %v2564_v51, 0.0  ;;  %v2654_v54 = vmul.f32 0.01, %v2564_v51  ;;  %v2684_v57 = vsel %vm2620_vm15, %v2560_v38, %v2652_v40 }
 0x505   : > { %v2685_v0 = vsel %vm2621_vm0, %v2562_v42, %v2653_v44 }
 0x506   : > { %v2686_v58 = vsel %vm2622_vm1, %v2564_v51, %v2654_v54  ;;  %v7036_v59 = vpack.c.bf16 %v2685_v0, %v2683_v56 }
 0x507   : > { %v7038_v61 = vpack.c.bf16 %v2686_v58, %v2684_v57 }
 0x508   : > { %v2568_v2 = vpop.f32.mrb[64].mxu1 }
 0x509   : > { %v2655_v5 = vmul.f32 0.01, %v2568_v2  ;;  %v2570_v15 = vpop.f32.mrb[65].mxu1  ;;  %2903 = vmatprep.mubr.bf16.mxu1 %v7038_v61  ;;  %vm2623_vm2 = vcmp.gt.f32.partialorder %v2568_v2, 0.0 }
 0x50a   : > { %v2656_v17 = vmul.f32 0.01, %v2570_v15  ;;  %v2572_v62 = vpop.f32.mrb[66].mxu1  ;;  %2904 = vmatmul.mubr.bf16.gmra.mrb[92].mxu1 %v7036_v59  ;;  %vm2624_vm3 = vcmp.gt.f32.partialorder %v2570_v15, 0.0 }
 0x50b   : > { %vm2625_vm4 = vcmp.gt.f32.partialorder %v2572_v62, 0.0  ;;  %v2657_v25 = vmul.f32 0.01, %v2572_v62  ;;  %v2574_v27 = vpop.f32.mrb[67].mxu1  ;;  %v2687_v40 = vsel %vm2623_vm2, %v2568_v2, %v2655_v5 }
 0x50c   : > { %vm2626_vm5 = vcmp.gt.f32.partialorder %v2574_v27, 0.0  ;;  %v2658_v38 = vmul.f32 0.01, %v2574_v27  ;;  %v2688_v44 = vsel %vm2624_vm3, %v2570_v15, %v2656_v17 }
 0x50d   : > { %v2689_v42 = vsel %vm2625_vm4, %v2572_v62, %v2657_v25 }
 0x50e   : > { %v2690_v51 = vsel %vm2626_vm5, %v2574_v27, %v2658_v38  ;;  %v7042_v54 = vpack.c.bf16 %v2689_v42, %v2687_v40 }
 0x50f   : > { %v7044_v56 = vpack.c.bf16 %v2690_v51, %v2688_v44 }
 0x510   : > { %v2578_v0 = vpop.f32.mrb[68].mxu1 }
 0x511   : > { %v2659_v57 = vmul.f32 0.01, %v2578_v0  ;;  %v2580_v58 = vpop.f32.mrb[69].mxu1  ;;  %2911 = vmatprep.mubr.bf16.mxu1 %v7044_v56  ;;  %vm2627_vm6 = vcmp.gt.f32.partialorder %v2578_v0, 0.0 }
 0x512   : > { %v2660_v11 = vmul.f32 0.01, %v2580_v58  ;;  %v2582_v10 = vpop.f32.mrb[70].mxu1  ;;  %2912 = vmatmul.mubr.bf16.gmra.mrb[96].mxu1 %v7042_v54  ;;  %vm2628_vm7 = vcmp.gt.f32.partialorder %v2580_v58, 0.0 }
 0x513   : > { %vm2629_vm8 = vcmp.gt.f32.partialorder %v2582_v10, 0.0  ;;  %v2661_v2 = vmul.f32 0.01, %v2582_v10  ;;  %v2584_v62 = vpop.f32.mrb[71].mxu1  ;;  %v2691_v15 = vsel %vm2627_vm6, %v2578_v0, %v2659_v57 }
 0x514   : > { %vm2630_vm9 = vcmp.gt.f32.partialorder %v2584_v62, 0.0  ;;  %v2662_v5 = vmul.f32 0.01, %v2584_v62  ;;  %v2692_v25 = vsel %vm2628_vm7, %v2580_v58, %v2660_v11 }
 0x515   : > { %v2693_v17 = vsel %vm2629_vm8, %v2582_v10, %v2661_v2 }
 0x516   : > { %v2694_v27 = vsel %vm2630_vm9, %v2584_v62, %v2662_v5  ;;  %v7048_v38 = vpack.c.bf16 %v2693_v17, %v2691_v15 }
 0x517   : > { %v7050_v40 = vpack.c.bf16 %v2694_v27, %v2692_v25 }
 0x518   : > { %v2588_v42 = vpop.f32.mrb[72].mxu1 }
 0x519   : > { %v2663_v44 = vmul.f32 0.01, %v2588_v42  ;;  %v2590_v51 = vpop.f32.mrb[73].mxu1  ;;  %2919 = vmatprep.mubr.bf16.mxu1 %v7050_v40  ;;  %vm2631_vm10 = vcmp.gt.f32.partialorder %v2588_v42, 0.0 }
 0x51a   : > { %v2664_v37 = vmul.f32 0.01, %v2590_v51  ;;  %v2592_v26 = vpop.f32.mrb[74].mxu1  ;;  %2920 = vmatmul.mubr.bf16.gmra.mrb[100].mxu1 %v7048_v38  ;;  %vm2632_vm11 = vcmp.gt.f32.partialorder %v2590_v51, 0.0 }
 0x51b   : > { %vm2633_vm12 = vcmp.gt.f32.partialorder %v2592_v26, 0.0  ;;  %v2665_v0 = vmul.f32 0.01, %v2592_v26  ;;  %v2594_v10 = vpop.f32.mrb[75].mxu1  ;;  %v2695_v57 = vsel %vm2631_vm10, %v2588_v42, %v2663_v44 }
 0x51c   : > { %vm2634_vm13 = vcmp.gt.f32.partialorder %v2594_v10, 0.0  ;;  %v2666_v11 = vmul.f32 0.01, %v2594_v10  ;;  %v2696_v2 = vsel %vm2632_vm11, %v2590_v51, %v2664_v37 }
 0x51d   : > { %v2697_v58 = vsel %vm2633_vm12, %v2592_v26, %v2665_v0 }
 0x51e   : > { %v2698_v62 = vsel %vm2634_vm13, %v2594_v10, %v2666_v11  ;;  %v7054_v5 = vpack.c.bf16 %v2697_v58, %v2695_v57  ;;  %v6082_v58 = vld [vmem:[#allocation10 + $0x80] sm:$0xff]  }
 0x51f   : > { %v7056_v15 = vpack.c.bf16 %v2698_v62, %v2696_v2  ;;  %v6083_v2 = vld [vmem:[#allocation10 + $0x88] sm:$0xff]   ;;  %5475 = vmatprep.subr.bf16.mxu1 %v6082_v58  ;;  %v6084_v62 = vld [vmem:[#allocation10 + $0x90] sm:$0xff]  }
 0x520   : > { %v2598_v17 = vpop.f32.mrb[76].mxu1  ;;  %5476 = vmatpush3.bf16.msra.mxu1 %v6082_v58 }
 0x521   : > { %v2667_v25 = vmul.f32 0.01, %v2598_v17  ;;  %v2600_v27 = vpop.f32.mrb[77].mxu1  ;;  %2927 = vmatprep.mubr.bf16.mxu1 %v7056_v15  ;;  %vm2635_vm14 = vcmp.gt.f32.partialorder %v2598_v17, 0.0  ;;  %5477 = vmatprep.subr.bf16.mxu1 %v6083_v2 }
 0x522   : > { %v2668_v43 = vmul.f32 0.01, %v2600_v27  ;;  %v2602_v45 = vpop.f32.mrb[78].mxu1  ;;  %2928 = vmatmul.mubr.bf16.gmra.mrb[104].mxu1 %v7054_v5  ;;  %vm2636_vm15 = vcmp.gt.f32.partialorder %v2600_v27, 0.0 }
 0x523   : > { %vm2637_vm0 = vcmp.gt.f32.partialorder %v2602_v45, 0.0  ;;  %v2669_v42 = vmul.f32 0.01, %v2602_v45  ;;  %v2604_v26 = vpop.f32.mrb[79].mxu1  ;;  %v2699_v44 = vsel %vm2635_vm14, %v2598_v17, %v2667_v25  ;;  %v6085_v17 = vld [vmem:[#allocation10 + $0x98] sm:$0xff]   ;;  %v6088_v25 = vld [vmem:[#allocation10 + $0xb0] sm:$0xff]  }
 0x524   : > { %vm2638_vm1 = vcmp.gt.f32.partialorder %v2604_v26, 0.0  ;;  %v2670_v37 = vmul.f32 0.01, %v2604_v26  ;;  %v2700_v0 = vsel %vm2636_vm15, %v2600_v27, %v2668_v43  ;;  %5478 = vmatpush3.bf16.msra.mxu1 %v6083_v2  ;;  %v6087_v43 = vld [vmem:[#allocation10 + $0xa8] sm:$0xff]  }
 0x525   : > { %v2701_v51 = vsel %vm2637_vm0, %v2602_v45, %v2669_v42  ;;  %5479 = vmatprep.subr.bf16.mxu1 %v6084_v62  ;;  %v6086_v45 = vld [vmem:[#allocation10 + $0xa0] sm:$0xff]  }
 0x526   : > { %v2702_v10 = vsel %vm2638_vm1, %v2604_v26, %v2670_v37  ;;  %v7060_v11 = vpack.c.bf16 %v2701_v51, %v2699_v44 }
 0x527   : > { %v7062_v57 = vpack.c.bf16 %v2702_v10, %v2700_v0 }
 0x528   : > { %5480 = vmatpush3.bf16.msra.mxu1 %v6084_v62 }
 0x529   : > { %2935 = vmatprep.mubr.bf16.mxu1 %v7062_v57  ;;  %5481 = vmatprep.subr.bf16.mxu1 %v6085_v17 }
 0x52a   : > { %2936 = vmatmul.mubr.bf16.gmra.mrb[108].mxu1 %v7060_v11 }
 0x52c   : > { %5482 = vmatpush3.bf16.msra.mxu1 %v6085_v17 }
 0x52d   : > { %5483 = vmatprep.subr.bf16.mxu1 %v6086_v45 }
 0x530   : > { %5484 = vmatpush3.bf16.msra.mxu1 %v6086_v45 }
 0x531   : > { %5485 = vmatprep.subr.bf16.mxu1 %v6087_v43 }
 0x534   : > { %5486 = vmatpush3.bf16.msra.mxu1 %v6087_v43 }
 0x535   : > { %5487 = vmatprep.subr.bf16.mxu1 %v6088_v25 }
 0x538   : > { %5488 = vmatpush3.bf16.msra.mxu1 %v6088_v25 }
 0x5c5   : > { %v5091_v27 = vpop.f32.mrb[80].mxu1 }
 0x5c6   : > { %v5092_v42 = vpop.f32.mrb[81].mxu1 }
 0x5c7   : > { %v5093_v26 = vadd.f32 %v5092_v42, %v5091_v27  ;;  %v5094_v37 = vpop.f32.mrb[82].mxu1 }
 0x5c8   : > { %v5095_v44 = vpop.f32.mrb[83].mxu1 }
 0x5c9   : > { %v5096_v51 = vadd.f32 %v5095_v44, %v5094_v37 }
 0x5cb   : > { %v2944_v0 = vpack.c.bf16 %v5096_v51, %v5093_v26 }
 0x5cd   : > { %v5097_v10 = vpop.f32.mrb[84].mxu1  ;;  %5443 = vmatprep.subr.bf16.mxu0 %v2944_v0 }
 0x5ce   : > { %v5098_v58 = vpop.f32.mrb[85].mxu1  ;;  %5444 = vmatpush3.bf16.msra.mxu0 %v2944_v0 }
 0x5cf   : > { %v5099_v2 = vadd.f32 %v5098_v58, %v5097_v10  ;;  %v5100_v62 = vpop.f32.mrb[86].mxu1 }
 0x5d0   : > { %v5101_v17 = vpop.f32.mrb[87].mxu1 }
 0x5d1   : > { %v5102_v45 = vadd.f32 %v5101_v17, %v5100_v62 }
 0x5d3   : > { %v2945_v3 = vpack.c.bf16 %v5102_v45, %v5099_v2 }
 0x5d5   : > { %v5103_v6 = vpop.f32.mrb[88].mxu1  ;;  %5445 = vmatprep.subr.bf16.mxu0 %v2945_v3 }
 0x5d6   : > { %v5104_v43 = vpop.f32.mrb[89].mxu1  ;;  %5446 = vmatpush3.bf16.msra.mxu0 %v2945_v3 }
 0x5d7   : > { %v5105_v25 = vadd.f32 %v5104_v43, %v5103_v6  ;;  %v5106_v22 = vpop.f32.mrb[90].mxu1 }
 0x5d8   : > { %v5107_v27 = vpop.f32.mrb[91].mxu1 }
 0x5d9   : > { %v5108_v42 = vadd.f32 %v5107_v27, %v5106_v22 }
 0x5db   : > { %v2946_v34 = vpack.c.bf16 %v5108_v42, %v5105_v25 }
 0x5dd   : > { %v5109_v37 = vpop.f32.mrb[92].mxu1  ;;  %5447 = vmatprep.subr.bf16.mxu0 %v2946_v34 }
 0x5de   : > { %v5110_v26 = vpop.f32.mrb[93].mxu1  ;;  %5448 = vmatpush3.bf16.msra.mxu0 %v2946_v34 }
 0x5df   : > { %v5111_v44 = vadd.f32 %v5110_v26, %v5109_v37  ;;  %v5112_v51 = vpop.f32.mrb[94].mxu1 }
 0x5e0   : > { %v5113_v0 = vpop.f32.mrb[95].mxu1 }
 0x5e1   : > { %v5114_v10 = vadd.f32 %v5113_v0, %v5112_v51 }
 0x5e3   : > { %v2947_v58 = vpack.c.bf16 %v5114_v10, %v5111_v44 }
 0x5e5   : > { %v5115_v62 = vpop.f32.mrb[96].mxu1  ;;  %5449 = vmatprep.subr.bf16.mxu0 %v2947_v58 }
 0x5e6   : > { %v5116_v2 = vpop.f32.mrb[97].mxu1  ;;  %5450 = vmatpush3.bf16.msra.mxu0 %v2947_v58 }
 0x5e7   : > { %v5117_v17 = vadd.f32 %v5116_v2, %v5115_v62  ;;  %v5118_v3 = vpop.f32.mrb[98].mxu1 }
 0x5e8   : > { %v5119_v6 = vpop.f32.mrb[99].mxu1 }
 0x5e9   : > { %v5120_v45 = vadd.f32 %v5119_v6, %v5118_v3 }
 0x5eb   : > { %v2948_v43 = vpack.c.bf16 %v5120_v45, %v5117_v17 }
 0x5ed   : > { %v5121_v22 = vpop.f32.mrb[100].mxu1  ;;  %5451 = vmatprep.subr.bf16.mxu0 %v2948_v43 }
 0x5ee   : > { %v5122_v25 = vpop.f32.mrb[101].mxu1  ;;  %5452 = vmatpush3.bf16.msra.mxu0 %v2948_v43 }
 0x5ef   : > { %v5123_v27 = vadd.f32 %v5122_v25, %v5121_v22  ;;  %v5124_v34 = vpop.f32.mrb[102].mxu1 }
 0x5f0   : > { %v5125_v42 = vpop.f32.mrb[103].mxu1 }
 0x5f1   : > { %v5126_v37 = vadd.f32 %v5125_v42, %v5124_v34  ;;  %v6090_v34 = vld [vmem:[#allocation10 + $0x200] sm:$0xff]  }
 0x5f3   : > { %v2949_v26 = vpack.c.bf16 %v5126_v37, %v5123_v27  ;;  %v6089_v27 = vld [vmem:[#allocation10 + $0xb8] sm:$0xff]  }
 0x5f4   : > { %5489 = vmatprep.subr.bf16.mxu1 %v6089_v27 }
 0x5f5   : > { %v5127_v51 = vpop.f32.mrb[104].mxu1  ;;  %5453 = vmatprep.subr.bf16.mxu0 %v2949_v26  ;;  %5490 = vmatpush3.bf16.msra.mxu1 %v6089_v27  ;;  %v6094_v27 = vld [vmem:[#allocation10 + $0x210] sm:$0xff]  }
 0x5f6   : > { %v5128_v44 = vpop.f32.mrb[105].mxu1  ;;  %5454 = vmatpush3.bf16.msra.mxu0 %v2949_v26  ;;  %5187 = vmatprep.subr.bf16.mxu1 %v6090_v34 }
 0x5f7   : > { %v5129_v0 = vadd.f32 %v5128_v44, %v5127_v51  ;;  %v5130_v10 = vpop.f32.mrb[106].mxu1 }
 0x5f8   : > { %v5131_v58 = vpop.f32.mrb[107].mxu1 }
 0x5f9   : > { %v5132_v62 = vadd.f32 %v5131_v58, %v5130_v10  ;;  %v6091_v10 = vld [vmem:[#allocation10 + $0x1c0] sm:$0xff]  }
 0x5fb   : > { %v2950_v2 = vpack.c.bf16 %v5132_v62, %v5129_v0  ;;  %v6092_v62 = vld [vmem:[#allocation10 + $0x208] sm:$0xff]  }
 0x5fd   : > { %v5133_v3 = vpop.f32.mrb[108].mxu1  ;;  %5455 = vmatprep.subr.bf16.mxu0 %v2950_v2 }
 0x5fe   : > { %v5134_v17 = vpop.f32.mrb[109].mxu1  ;;  %5456 = vmatpush3.bf16.msra.mxu0 %v2950_v2 }
 0x5ff   : > { %v5135_v6 = vadd.f32 %v5134_v17, %v5133_v3  ;;  %v5136_v45 = vpop.f32.mrb[110].mxu1 }
 0x600   : > { %v5137_v43 = vpop.f32.mrb[111].mxu1 }
 0x601   : > { %v5138_v22 = vadd.f32 %v5137_v43, %v5136_v45 }
 0x603   : > { %v2951_v25 = vpack.c.bf16 %v5138_v22, %v5135_v6  ;;  %v6093_v22 = vld [vmem:[#allocation10 + $0x1c8] sm:$0xff]  }
 0x605   : > { %5457 = vmatprep.subr.bf16.mxu0 %v2951_v25 }
 0x606   : > { %5458 = vmatpush3.bf16.msra.mxu0 %v2951_v25 }
 0x609   : > { %5460 = vmatmul.mubr.bf16.vlgmr.msra.gmra.mrb[96].mxu0 %v6991_v4 }
 0x60a   : > { %5463 = vmatprep.mubr.bf16.mxu0 %v6995_v21 }
 0x611   : > { %5464 = vmatmul.mubr.bf16.gmra.mrb[100].mxu0 %v6999_v28 }
 0x612   : > { %5467 = vmatprep.mubr.bf16.mxu0 %v7003_v29 }
 0x619   : > { %5468 = vmatmul.mubr.bf16.gmra.mrb[104].mxu0 %v7007_v31 }
 0x61a   : > { %5471 = vmatprep.mubr.bf16.mxu0 %v7011_v32 }
 0x621   : > { %5472 = vmatmul.mubr.bf16.gmra.mrb[108].mxu0 %v7015_v35 }
 0x622   : > { %5523 = vmatprep.mubr.bf16.mxu0 %v6986_v20 }
 0x6dc   : > { %v5461_v4 = vpop.f32.mrb[96].mxu0 }
 0x6dd   : > { %v3067_v42 = vmul.f32 0.01, %v5461_v4  ;;  %v2986_v21 = vpop.f32.mrb[97].mxu0  ;;  %vm3051_vm2 = vcmp.gt.f32.partialorder %v5461_v4, 0.0 }
 0x6de   : > { %v3065_v28 = vmul.f32 0.01, %v2986_v21  ;;  %v5462_v37 = vpop.f32.mrb[98].mxu0  ;;  %vm3049_vm3 = vcmp.gt.f32.partialorder %v2986_v21, 0.0 }
 0x6df   : > { %vm3052_vm4 = vcmp.gt.f32.partialorder %v5462_v37, 0.0  ;;  %v3068_v29 = vmul.f32 0.01, %v5462_v37  ;;  %v2989_v31 = vpop.f32.mrb[99].mxu0  ;;  %v3083_v35 = vsel %vm3051_vm2, %v5461_v4, %v3067_v42 }
 0x6e0   : > { %vm3050_vm5 = vcmp.gt.f32.partialorder %v2989_v31, 0.0  ;;  %v3066_v32 = vmul.f32 0.01, %v2989_v31  ;;  %v3081_v20 = vsel %vm3049_vm3, %v2986_v21, %v3065_v28 }
 0x6e1   : > { %v3084_v26 = vsel %vm3052_vm4, %v5462_v37, %v3068_v29  ;;  %v6095_v29 = vld [vmem:[#allocation10 + $0x1d0] sm:$0xff]  }
 0x6e2   : > { %v7074_v51 = vpack.c.bf16 %v3084_v26, %v3083_v35  ;;  %v3082_v44 = vsel %vm3050_vm5, %v2989_v31, %v3066_v32  ;;  %v6096_v32 = vld [vmem:[#allocation10 + $0x218] sm:$0xff]  }
 0x6e3   : > { %v7076_v0 = vpack.c.bf16 %v3082_v44, %v3081_v20 }
 0x6e4   : > { %v5465_v58 = vpop.f32.mrb[100].mxu0 }
 0x6e5   : > { %v3071_v2 = vmul.f32 0.01, %v5465_v58  ;;  %v3002_v3 = vpop.f32.mrb[101].mxu0  ;;  %5491 = vmatprep.mubr.bf16.mxu1 %v7076_v0  ;;  %vm3055_vm6 = vcmp.gt.f32.partialorder %v5465_v58, 0.0 }
 0x6e6   : > { %v3069_v17 = vmul.f32 0.01, %v3002_v3  ;;  %v5466_v6 = vpop.f32.mrb[102].mxu0  ;;  %5492 = vmatmul.mubr.bf16.vlgmr.msra.gmra.mrb[112].mxu1 %v7074_v51  ;;  %vm3053_vm7 = vcmp.gt.f32.partialorder %v3002_v3, 0.0 }
 0x6e7   : > { %vm3056_vm8 = vcmp.gt.f32.partialorder %v5466_v6, 0.0  ;;  %v3072_v45 = vmul.f32 0.01, %v5466_v6  ;;  %v3005_v43 = vpop.f32.mrb[103].mxu0  ;;  %5188 = vmatpush3.bf16.msra.mxu1 %v6091_v10  ;;  %v3087_v34 = vsel %vm3055_vm6, %v5465_v58, %v3071_v2 }
 0x6e8   : > { %vm3054_vm9 = vcmp.gt.f32.partialorder %v3005_v43, 0.0  ;;  %v3070_v25 = vmul.f32 0.01, %v3005_v43  ;;  %5189 = vmatprep.subr.bf16.mxu1 %v6092_v62  ;;  %v3085_v42 = vsel %vm3053_vm7, %v3002_v3, %v3069_v17  ;;  %v6097_v62 = vld [vmem:[#allocation10 + $0x1d8] sm:$0xff]   ;;  %v6098_v3 = vld [vmem:[#allocation10 + $0x220] sm:$0xff]  }
 0x6e9   : > { %v3088_v4 = vsel %vm3056_vm8, %v5466_v6, %v3072_v45 }
 0x6ea   : > { %v3086_v21 = vsel %vm3054_vm9, %v3005_v43, %v3070_v25  ;;  %v7080_v28 = vpack.c.bf16 %v3088_v4, %v3087_v34  ;;  %v6100_v4 = vld [vmem:[#allocation10 + $0x228] sm:$0xff]  }
 0x6eb   : > { %5190 = vmatpush3.bf16.msra.mxu1 %v6093_v22  ;;  %v7082_v37 = vpack.c.bf16 %v3086_v21, %v3085_v42 }
 0x6ec   : > { %v5469_v31 = vpop.f32.mrb[104].mxu0  ;;  %5191 = vmatprep.subr.bf16.mxu1 %v6094_v27  ;;  %v6099_v27 = vld [vmem:[#allocation10 + $0x1e0] sm:$0xff]  }
 0x6ed   : > { %v3075_v35 = vmul.f32 0.01, %v5469_v31  ;;  %v3018_v26 = vpop.f32.mrb[105].mxu0  ;;  %5495 = vmatprep.mubr.bf16.mxu1 %v7082_v37  ;;  %vm3059_vm10 = vcmp.gt.f32.partialorder %v5469_v31, 0.0 }
 0x6ee   : > { %v3073_v20 = vmul.f32 0.01, %v3018_v26  ;;  %v5470_v44 = vpop.f32.mrb[106].mxu0  ;;  %5496 = vmatmul.mubr.bf16.gmra.mrb[116].mxu1 %v7080_v28  ;;  %vm3057_vm11 = vcmp.gt.f32.partialorder %v3018_v26, 0.0 }
 0x6ef   : > { %vm3060_vm12 = vcmp.gt.f32.partialorder %v5470_v44, 0.0  ;;  %v3076_v10 = vmul.f32 0.01, %v5470_v44  ;;  %v3021_v58 = vpop.f32.mrb[107].mxu0  ;;  %5192 = vmatpush3.bf16.msra.mxu1 %v6095_v29  ;;  %v3091_v17 = vsel %vm3059_vm10, %v5469_v31, %v3075_v35 }
 0x6f0   : > { %vm3058_vm13 = vcmp.gt.f32.partialorder %v3021_v58, 0.0  ;;  %v3074_v2 = vmul.f32 0.01, %v3021_v58  ;;  %5193 = vmatprep.subr.bf16.mxu1 %v6096_v32  ;;  %v3089_v45 = vsel %vm3057_vm11, %v3018_v26, %v3073_v20  ;;  %v6101_v26 = vld [vmem:[#allocation10 + $0x1e8] sm:$0xff]  }
 0x6f1   : > { %v3092_v6 = vsel %vm3060_vm12, %v5470_v44, %v3076_v10  ;;  %v6102_v44 = vld [vmem:[#allocation10 + $0x230] sm:$0xff]  }
 0x6f2   : > { %v3090_v43 = vsel %vm3058_vm13, %v3021_v58, %v3074_v2  ;;  %v7086_v22 = vpack.c.bf16 %v3092_v6, %v3091_v17  ;;  %v6103_v6 = vld [vmem:[#allocation10 + $0x1f0] sm:$0xff]  }
 0x6f3   : > { %5194 = vmatpush3.bf16.msra.mxu1 %v6097_v62  ;;  %v7088_v25 = vpack.c.bf16 %v3090_v43, %v3089_v45  ;;  %v6104_v45 = vld [vmem:[#allocation10 + $0x238] sm:$0xff]  }
 0x6f4   : > { %v5473_v34 = vpop.f32.mrb[108].mxu0  ;;  %5195 = vmatprep.subr.bf16.mxu1 %v6098_v3  ;;  %v6105_v43 = vld [vmem:[#allocation10 + $0x1f8] sm:$0xff]  }
 0x6f5   : > { %v3079_v42 = vmul.f32 0.01, %v5473_v34  ;;  %v3034_v21 = vpop.f32.mrb[109].mxu0  ;;  %5499 = vmatprep.mubr.bf16.mxu1 %v7088_v25  ;;  %vm3063_vm14 = vcmp.gt.f32.partialorder %v5473_v34, 0.0 }
 0x6f6   : > { %v3077_v29 = vmul.f32 0.01, %v3034_v21  ;;  %v5474_v32 = vpop.f32.mrb[110].mxu0  ;;  %5500 = vmatmul.mubr.bf16.gmra.mrb[120].mxu1 %v7086_v22  ;;  %vm3061_vm15 = vcmp.gt.f32.partialorder %v3034_v21, 0.0 }
 0x6f7   : > { %vm3064_vm0 = vcmp.gt.f32.partialorder %v5474_v32, 0.0  ;;  %v3080_v31 = vmul.f32 0.01, %v5474_v32  ;;  %v3037_v35 = vpop.f32.mrb[111].mxu0  ;;  %5196 = vmatpush3.bf16.msra.mxu1 %v6099_v27  ;;  %v3095_v10 = vsel %vm3063_vm14, %v5473_v34, %v3079_v42  ;;  %v6106_v27 = vld [vmem:[#allocation10 + $0x180] sm:$0xff]   ;;  %v6109_v42 = vld [vmem:[#allocation10 + $0x148] sm:$0xff]  }
 0x6f8   : > { %vm3062_vm1 = vcmp.gt.f32.partialorder %v3037_v35, 0.0  ;;  %v3078_v20 = vmul.f32 0.01, %v3037_v35  ;;  %5197 = vmatprep.subr.bf16.mxu1 %v6100_v4  ;;  %v3093_v62 = vsel %vm3061_vm15, %v3034_v21, %v3077_v29  ;;  %v6107_v34 = vld [vmem:[#allocation10 + $0x140] sm:$0xff]   ;;  %v6108_v4 = vld [vmem:[#allocation10 + $0x188] sm:$0xff]   ;;  %v6110_v21 = vld [vmem:[#allocation10 + $0x190] sm:$0xff]  }
 0x6f9   : > { %v3096_v58 = vsel %vm3064_vm0, %v5474_v32, %v3080_v31  ;;  %v6111_v29 = vld [vmem:[#allocation10 + $0x150] sm:$0xff]   ;;  %v6112_v32 = vld [vmem:[#allocation10 + $0x198] sm:$0xff]   ;;  %v6114_v31 = vld [vmem:[#allocation10 + $0x1a0] sm:$0xff]  }
 0x6fa   : > { %v3094_v2 = vsel %vm3062_vm1, %v3037_v35, %v3078_v20  ;;  %v7092_v3 = vpack.c.bf16 %v3096_v58, %v3095_v10  ;;  %v6117_v35 = vld [vmem:[#allocation10 + $0x168] sm:$0xff]   ;;  %v6121_v20 = vld [vmem:[#allocation10 + $0x178] sm:$0xff]  }
 0x6fb   : > { %5198 = vmatpush3.bf16.msra.mxu1 %v6101_v26  ;;  %v7094_v17 = vpack.c.bf16 %v3094_v2, %v3093_v62  ;;  %v6118_v26 = vld [vmem:[#allocation10 + $0x1b0] sm:$0xff]  }
 0x6fc   : > { %5199 = vmatprep.subr.bf16.mxu1 %v6102_v44  ;;  %v7133_v44 = vld [vmem:[#allocation10 + $0x288] sm:$0xff]  }
 0x6fd   : > { %5503 = vmatprep.mubr.bf16.mxu1 %v7094_v17 }
 0x6fe   : > { %5504 = vmatmul.mubr.bf16.gmra.mrb[124].mxu1 %v7092_v3 }
 0x6ff   : > { %5200 = vmatpush3.bf16.msra.mxu1 %v6103_v6  ;;  %3643 = vmatprep.mubr.bf16.mxu1 %v7020_v1  ;;  %v6113_v1 = vld [vmem:[#allocation10 + $0x158] sm:$0xff]   ;;  %v6123_v6 = vld [vmem:[#allocation10 + $0xc0] sm:$0xff]  }
 0x700   : > { %5201 = vmatprep.subr.bf16.mxu1 %v6104_v45 }
 0x703   : > { %5202 = vmatpush3.bf16.msra.mxu1 %v6105_v43  ;;  %v6124_v43 = vld [vmem:[#allocation10 + $0x108] sm:$0xff]  }
 0x704   : > { %5315 = vmatprep.subr.bf16.mxu1 %v6106_v27  ;;  %v7141_v27 = vld [vmem:[#allocation10 + $0x290] sm:$0xff]  }
 0x706   : > { %3644 = vmatmul.mubr.bf16.vlgmr.msra.gmra.mrb[128].mxu1 %v7018_v60  ;;  %v6115_v60 = vld [vmem:[#allocation10 + $0x160] sm:$0xff]  }
 0x707   : > { %3651 = vmatprep.mubr.bf16.mxu1 %v7026_v49  ;;  %5316 = vmatpush3.bf16.msra.mxu1 %v6107_v34  ;;  %v6116_v49 = vld [vmem:[#allocation10 + $0x1a8] sm:$0xff]  }
 0x708   : > { %5317 = vmatprep.subr.bf16.mxu1 %v6108_v4  ;;  %v6226_v34 = vld [vmem:[#allocation2 + $0x8] sm:$0xff]  }
 0x709   : > { %v6125_v4 = vld [vmem:[#allocation10 + $0xc8] sm:$0xff]  }
 0x70b   : > { %5318 = vmatpush3.bf16.msra.mxu1 %v6109_v42  ;;  %v6227_v42 = vld [vmem:[#allocation2 + $0x10] sm:$0xff]  }
 0x70c   : > { %5319 = vmatprep.subr.bf16.mxu1 %v6110_v21 }
 0x70e   : > { %3652 = vmatmul.mubr.bf16.gmra.mrb[132].mxu1 %v7024_v48  ;;  %v6119_v48 = vld [vmem:[#allocation10 + $0x170] sm:$0xff]  }
 0x70f   : > { %3659 = vmatprep.mubr.bf16.mxu1 %v7032_v24  ;;  %5320 = vmatpush3.bf16.msra.mxu1 %v6111_v29  ;;  %v6120_v24 = vld [vmem:[#allocation10 + $0x1b8] sm:$0xff]   ;;  %v6126_v29 = vld [vmem:[#allocation10 + $0x110] sm:$0xff]  }
 0x710   : > { %5321 = vmatprep.subr.bf16.mxu1 %v6112_v32  ;;  %v7145_v32 = vld [vmem:[#allocation10 + $0x298] sm:$0xff]  }
 0x713   : > { %5322 = vmatpush3.bf16.msra.mxu1 %v6113_v1 }
 0x714   : > { %5323 = vmatprep.subr.bf16.mxu1 %v6114_v31 }
 0x716   : > { %3660 = vmatmul.mubr.bf16.gmra.mrb[136].mxu1 %v7030_v19 }
 0x717   : > { %3667 = vmatprep.mubr.bf16.mxu1 %v7038_v61  ;;  %5324 = vmatpush3.bf16.msra.mxu1 %v6115_v60 }
 0x718   : > { %5325 = vmatprep.subr.bf16.mxu1 %v6116_v49 }
 0x71b   : > { %5326 = vmatpush3.bf16.msra.mxu1 %v6117_v35  ;;  %v6127_v35 = vld [vmem:[#allocation10 + $0xd0] sm:$0xff]  }
 0x71c   : > { %5327 = vmatprep.subr.bf16.mxu1 %v6118_v26 }
 0x71e   : > { %3668 = vmatmul.mubr.bf16.gmra.mrb[140].mxu1 %v7036_v59 }
 0x71f   : > { %3675 = vmatprep.mubr.bf16.mxu1 %v7044_v56  ;;  %5328 = vmatpush3.bf16.msra.mxu1 %v6119_v48  ;;  %v6128_v48 = vld [vmem:[#allocation10 + $0x118] sm:$0xff]  }
 0x720   : > { %5329 = vmatprep.subr.bf16.mxu1 %v6120_v24  ;;  %v7153_v24 = vld [vmem:[#allocation10 + $0x2a0] sm:$0xff]  }
 0x723   : > { %5330 = vmatpush3.bf16.msra.mxu1 %v6121_v20  ;;  %v6228_v20 = vld [vmem:[#allocation2 + $0x18] sm:$0xff]  }
 0x726   : > { %3676 = vmatmul.mubr.bf16.gmra.mrb[144].mxu1 %v7042_v54 }
 0x727   : > { %3683 = vmatprep.mubr.bf16.mxu1 %v7050_v40 }
 0x72e   : > { %3684 = vmatmul.mubr.bf16.gmra.mrb[148].mxu1 %v7048_v38 }
 0x72f   : > { %3691 = vmatprep.mubr.bf16.mxu1 %v7056_v15  ;;  %v7130_v15 = vld [vmem:[#allocation10 + $0x280] sm:$0xff]  }
 0x730   : > { %5603 = vmatprep.subr.bf16.mxu1 %v7130_v15 }
 0x736   : > { %3692 = vmatmul.mubr.bf16.gmra.mrb[152].mxu1 %v7054_v5 }
 0x737   : > { %3699 = vmatprep.mubr.bf16.mxu1 %v7062_v57  ;;  %v6122_v57 = vld [vmem:[#allocation10 + $0x100] sm:$0xff]  }
 0x73e   : > { %3700 = vmatmul.mubr.bf16.gmra.mrb[156].mxu1 %v7060_v11 }
 0x73f   : > { %4029 = vmatprep.mubr.bf16.mxu1 %v6871_v50 }
 0x746   : > { %4030 = vmatmul.mubr.bf16.vlgmr.msra.gmra.mrb[160].mxu1 %v6865_v33 }
 0x747   : > { %4037 = vmatprep.mubr.bf16.mxu1 %v6885_v14  ;;  %5611 = vmatpush3.bf16.msra.mxu1 %v7130_v15 }
 0x748   : > { %5604 = vmatprep.subr.bf16.mxu1 %v7133_v44 }
 0x74b   : > { %5612 = vmatpush3.bf16.msra.mxu1 %v7133_v44 }
 0x74c   : > { %5605 = vmatprep.subr.bf16.mxu1 %v7141_v27 }
 0x74e   : > { %4038 = vmatmul.mubr.bf16.gmra.mrb[164].mxu1 %v6880_v7 }
 0x74f   : > { %4045 = vmatprep.mubr.bf16.mxu1 %v6898_v55  ;;  %5613 = vmatpush3.bf16.msra.mxu1 %v7141_v27 }
 0x750   : > { %5606 = vmatprep.subr.bf16.mxu1 %v7145_v32 }
 0x753   : > { %5614 = vmatpush3.bf16.msra.mxu1 %v7145_v32 }
 0x754   : > { %5607 = vmatprep.subr.bf16.mxu1 %v7153_v24 }
 0x756   : > { %4046 = vmatmul.mubr.bf16.gmra.mrb[168].mxu1 %v6892_v39 }
 0x757   : > { %4053 = vmatprep.mubr.bf16.mxu1 %v6912_v23  ;;  %5615 = vmatpush3.bf16.msra.mxu1 %v7153_v24 }
 0x75e   : > { %4054 = vmatmul.mubr.bf16.gmra.mrb[172].mxu1 %v6907_v16 }
 0x75f   : > { %4061 = vmatprep.mubr.bf16.mxu1 %v6925_v8 }
 0x766   : > { %4062 = vmatmul.mubr.bf16.gmra.mrb[176].mxu1 %v6919_v52 }
 0x767   : > { %4069 = vmatprep.mubr.bf16.mxu1 %v6939_v46 }
 0x76e   : > { %4070 = vmatmul.mubr.bf16.gmra.mrb[180].mxu1 %v6934_v36 }
 0x76f   : > { %4077 = vmatprep.mubr.bf16.mxu1 %v6952_v41 }
 0x776   : > { %4078 = vmatmul.mubr.bf16.gmra.mrb[184].mxu1 %v6946_v18 }
 0x777   : > { %4085 = vmatprep.mubr.bf16.mxu1 %v6966_v12 }
 0x77e   : > { %4086 = vmatmul.mubr.bf16.gmra.mrb[188].mxu1 %v6962_v9 }
 0x7b9   : > { %v5493_v33 = vpop.f32.mrb[112].mxu1 }
 0x7ba   : > { %v3203_v50 = vpop.f32.mrb[113].mxu1 }
 0x7bb   : > { %v5494_v7 = vpop.f32.mrb[114].mxu1 }
 0x7bc   : > { %v3267_v14 = vpack.c.bf16 %v5494_v7, %v5493_v33  ;;  %v3206_v39 = vpop.f32.mrb[115].mxu1  ;;  %v6129_v33 = vld [vmem:[#allocation10 + $0xd8] sm:$0xff]  }
 0x7bd   : > { %v3266_v55 = vpack.c.bf16 %v3206_v39, %v3203_v50  ;;  %v6229_v50 = vld [vmem:[#allocation2 + $0x20] sm:$0xff]   ;;  %v7157_v39 = vld [vmem:[#allocation10 + $0x2a8] sm:$0xff]  }
 0x7be   : > { %5608 = vmatprep.subr.bf16.mxu1 %v7157_v39 }
 0x7bf   : > { %5507 = vmatprep.subr.bf16.mxu0 %v3266_v55  ;;  %5616 = vmatpush3.bf16.msra.mxu1 %v7157_v39 }
 0x7c0   : > { %5508 = vmatpush3.bf16.msra.mxu0 %v3266_v55 }
 0x7c1   : > { %v5497_v16 = vpop.f32.mrb[116].mxu1  ;;  %5509 = vmatprep.subr.bf16.mxu0 %v3267_v14 }
 0x7c2   : > { %v3219_v23 = vpop.f32.mrb[117].mxu1 }
 0x7c3   : > { %v5498_v52 = vpop.f32.mrb[118].mxu1 }
 0x7c4   : > { %v3269_v8 = vpack.c.bf16 %v5498_v52, %v5497_v16  ;;  %v3222_v36 = vpop.f32.mrb[119].mxu1  ;;  %5510 = vmatpush3.bf16.msra.mxu0 %v3267_v14  ;;  %v6130_v14 = vld [vmem:[#allocation10 + $0x120] sm:$0xff]  }
 0x7c5   : > { %v3268_v46 = vpack.c.bf16 %v3222_v36, %v3219_v23 }
 0x7c7   : > { %5511 = vmatprep.subr.bf16.mxu0 %v3268_v46 }
 0x7c8   : > { %5512 = vmatpush3.bf16.msra.mxu0 %v3268_v46  ;;  %v6132_v46 = vld [vmem:[#allocation10 + $0x128] sm:$0xff]  }
 0x7c9   : > { %v5501_v18 = vpop.f32.mrb[120].mxu1  ;;  %5513 = vmatprep.subr.bf16.mxu0 %v3269_v8 }
 0x7ca   : > { %v3235_v41 = vpop.f32.mrb[121].mxu1 }
 0x7cb   : > { %v5502_v9 = vpop.f32.mrb[122].mxu1 }
 0x7cc   : > { %v3271_v12 = vpack.c.bf16 %v5502_v9, %v5501_v18  ;;  %v3238_v19 = vpop.f32.mrb[123].mxu1  ;;  %5514 = vmatpush3.bf16.msra.mxu0 %v3269_v8  ;;  %v6131_v8 = vld [vmem:[#allocation10 + $0xe0] sm:$0xff]   ;;  %v6230_v18 = vld [vmem:[#allocation2 + $0x28] sm:$0xff]   ;;  %v6231_v9 = vld [vmem:[#allocation2 + $0x30] sm:$0xff]  }
 0x7cd   : > { %v3270_v59 = vpack.c.bf16 %v3238_v19, %v3235_v41  ;;  %v6133_v41 = vld [vmem:[#allocation10 + $0xe8] sm:$0xff]   ;;  %v6134_v19 = vld [vmem:[#allocation10 + $0x130] sm:$0xff]  }
 0x7cf   : > { %5515 = vmatprep.subr.bf16.mxu0 %v3270_v59 }
 0x7d0   : > { %5516 = vmatpush3.bf16.msra.mxu0 %v3270_v59 }
 0x7d1   : > { %v5505_v61 = vpop.f32.mrb[124].mxu1  ;;  %5517 = vmatprep.subr.bf16.mxu0 %v3271_v12 }
 0x7d2   : > { %v3251_v54 = vpop.f32.mrb[125].mxu1 }
 0x7d3   : > { %v5506_v56 = vpop.f32.mrb[126].mxu1 }
 0x7d4   : > { %v3273_v38 = vpack.c.bf16 %v5506_v56, %v5505_v61  ;;  %v3254_v40 = vpop.f32.mrb[127].mxu1  ;;  %5518 = vmatpush3.bf16.msra.mxu0 %v3271_v12 }
 0x7d5   : > { %v3272_v5 = vpack.c.bf16 %v3254_v40, %v3251_v54 }
 0x7d7   : > { %5519 = vmatprep.subr.bf16.mxu0 %v3272_v5 }
 0x7d8   : > { %5520 = vmatpush3.bf16.msra.mxu0 %v3272_v5  ;;  %v6136_v5 = vld [vmem:[#allocation10 + $0x138] sm:$0xff]  }
 0x7d9   : > { %5521 = vmatprep.subr.bf16.mxu0 %v3273_v38  ;;  %v5203_v11 = vpop.f32.mrb[128].mxu1 }
 0x7da   : > { %v5204_v10 = vpop.f32.mrb[129].mxu1 }
 0x7db   : > { %v7136_v58 = vadd.f32 %v5204_v10, %v5203_v11  ;;  %v5206_v62 = vpop.f32.mrb[130].mxu1  ;;  %v6232_v11 = vld [vmem:[#allocation2 + $0x38] sm:$0xff]  }
 0x7dc   : > { %5522 = vmatpush3.bf16.msra.mxu0 %v3273_v38  ;;  %v5207_v2 = vpop.f32.mrb[131].mxu1  ;;  %v6135_v38 = vld [vmem:[#allocation10 + $0xf0] sm:$0xff]  }
 0x7dd   : > { %v7139_v45 = vadd.f32 %v5207_v2, %v5206_v62  ;;  %5251 = vmatprep.subr.bf16.mxu0 %v6122_v57  ;;  %v6137_v57 = vld [vmem:[#allocation10 + $0xf8] sm:$0xff]   ;;  %v6138_v62 = vld [vmem:[#allocation10 + $0x240] sm:$0xff]  }
 0x7df   : > { %5524 = vmatmul.mubr.bf16.vlgmr.msra.gmra.mrb[112].mxu0 %v6226_v34 }
 0x7e0   : > { %5252 = vmatpush3.bf16.msra.mxu0 %v6123_v6  ;;  %5527 = vmatprep.mubr.bf16.mxu0 %v6227_v42  ;;  %v6139_v42 = vld [vmem:[#allocation10 + $0x248] sm:$0xff]  }
 0x7e1   : > { %v5209_v21 = vpop.f32.mrb[132].mxu1  ;;  %5253 = vmatprep.subr.bf16.mxu0 %v6124_v43 }
 0x7e2   : > { %v5210_v1 = vpop.f32.mrb[133].mxu1 }
 0x7e3   : > { %v7148_v31 = vadd.f32 %v5210_v1, %v5209_v21  ;;  %v5212_v60 = vpop.f32.mrb[134].mxu1  ;;  %v6140_v21 = vld [vmem:[#allocation10 + $0x250] sm:$0xff]  }
 0x7e4   : > { %v5213_v49 = vpop.f32.mrb[135].mxu1  ;;  %5254 = vmatpush3.bf16.msra.mxu0 %v6125_v4 }
 0x7e5   : > { %v7151_v26 = vadd.f32 %v5213_v49, %v5212_v60  ;;  %5255 = vmatprep.subr.bf16.mxu0 %v6126_v29 }
 0x7e7   : > { %5528 = vmatmul.mubr.bf16.gmra.mrb[116].mxu0 %v6228_v20 }
 0x7e8   : > { %5256 = vmatpush3.bf16.msra.mxu0 %v6127_v35  ;;  %5531 = vmatprep.mubr.bf16.mxu0 %v6229_v50 }
 0x7e9   : > { %v5215_v7 = vpop.f32.mrb[136].mxu1  ;;  %5257 = vmatprep.subr.bf16.mxu0 %v6128_v48  ;;  %v6141_v48 = vld [vmem:[#allocation10 + $0x258] sm:$0xff]  }
 0x7ea   : > { %v5216_v55 = vpop.f32.mrb[137].mxu1 }
 0x7eb   : > { %v7160_v16 = vadd.f32 %v5216_v55, %v5215_v7  ;;  %v5218_v23 = vpop.f32.mrb[138].mxu1  ;;  %v6143_v55 = vld [vmem:[#allocation10 + $0x268] sm:$0xff]  }
 0x7ec   : > { %v5219_v52 = vpop.f32.mrb[139].mxu1  ;;  %5258 = vmatpush3.bf16.msra.mxu0 %v6129_v33 }
 0x7ed   : > { %v7163_v36 = vadd.f32 %v5219_v52, %v5218_v23  ;;  %5259 = vmatprep.subr.bf16.mxu0 %v6130_v14  ;;  %v7621_v23 = vld [vmem:[#allocation17_spill] sm:$0xff]  ;;  %v7622_v52 = vld [vmem:[#allocation19_spill] sm:$0xff] }
 0x7ef   : > { %5532 = vmatmul.mubr.bf16.gmra.mrb[120].mxu0 %v6230_v18 }
 0x7f0   : > { %5260 = vmatpush3.bf16.msra.mxu0 %v6131_v8  ;;  %5535 = vmatprep.mubr.bf16.mxu0 %v6231_v9 }
 0x7f1   : > { %v5221_v12 = vpop.f32.mrb[140].mxu1  ;;  %5261 = vmatprep.subr.bf16.mxu0 %v6132_v46 }
 0x7f2   : > { %v5222_v59 = vpop.f32.mrb[141].mxu1 }
 0x7f3   : > { %v7166_v61 = vadd.f32 %v5222_v59, %v5221_v12  ;;  %v5224_v54 = vpop.f32.mrb[142].mxu1  ;;  %v6145_v12 = vld [vmem:[#allocation10 + $0x278] sm:$0xff]   ;;  %v7624_v59 = vld [vmem:[#allocation21_spill] sm:$0xff] }
 0x7f4   : > { %v5225_v56 = vpop.f32.mrb[143].mxu1  ;;  %5262 = vmatpush3.bf16.msra.mxu0 %v6133_v41 }
 0x7f5   : > { %v7168_v40 = vadd.f32 %v5225_v56, %v5224_v54  ;;  %5263 = vmatprep.subr.bf16.mxu0 %v6134_v19  ;;  %v7623_v19 = vld [vmem:[#allocation18_spill] sm:$0xff] }
 0x7f7   : > { %5536 = vmatmul.mubr.bf16.gmra.mrb[124].mxu0 %v6232_v11 }
 0x7f8   : > { %5264 = vmatpush3.bf16.msra.mxu0 %v6135_v38  ;;  %3932 = vmatprep.mubr.bf16.mxu0 %v6869_v47 }
 0x7f9   : > { %v5227_v10 = vpop.f32.mrb[144].mxu1  ;;  %5265 = vmatprep.subr.bf16.mxu0 %v6136_v5 }
 0x7fa   : > { %v5228_v2 = vpop.f32.mrb[145].mxu1 }
 0x7fb   : > { %v7171_v6 = vadd.f32 %v5228_v2, %v5227_v10  ;;  %v5230_v43 = vpop.f32.mrb[146].mxu1  ;;  %v7625_v10 = vld [vmem:[#allocation20_spill] sm:$0xff] }
 0x7fc   : > { %v5231_v34 = vpop.f32.mrb[147].mxu1  ;;  %5266 = vmatpush3.bf16.msra.mxu0 %v6137_v57 }
 0x7fd   : > { %v7173_v4 = vadd.f32 %v5231_v34, %v5230_v43  ;;  %5539 = vmatprep.subr.bf16.mxu0 %v6138_v62 }
 0x7ff   : > { %3933 = vmatmul.mubr.bf16.vlgmr.msra.gmra.mrb[128].mxu0 %v6863_v30 }
 0x800   : > { %3940 = vmatprep.mubr.bf16.mxu0 %v6883_v13  ;;  %5540 = vmatpush3.bf16.msra.mxu0 %v6138_v62  ;;  %v6142_v13 = vld [vmem:[#allocation10 + $0x260] sm:$0xff]   ;;  %v7626_v62 = vld [vmem:[#allocation23_spill] sm:$0xff] }
 0x801   : > { %v5233_v47 = vpop.f32.mrb[148].mxu1  ;;  %5541 = vmatprep.subr.bf16.mxu0 %v6139_v42 }
 0x802   : > { %v5234_v29 = vpop.f32.mrb[149].mxu1 }
 0x803   : > { %v7177_v1 = vadd.f32 %v5234_v29, %v5233_v47  ;;  %v5236_v60 = vpop.f32.mrb[150].mxu1  ;;  %v7627_v29 = vld [vmem:[#allocation22_spill] sm:$0xff] }
 0x804   : > { %v5237_v49 = vpop.f32.mrb[151].mxu1  ;;  %5542 = vmatpush3.bf16.msra.mxu0 %v6139_v42 }
 0x805   : > { %v7179_v35 = vadd.f32 %v5237_v49, %v5236_v60  ;;  %5543 = vmatprep.subr.bf16.mxu0 %v6140_v21  ;;  %v7628_v60 = vld [vmem:[#allocation25_spill] sm:$0xff] }
 0x807   : > { %3941 = vmatmul.mubr.bf16.gmra.mrb[132].mxu0 %v6877_v63 }
 0x808   : > { %3948 = vmatprep.mubr.bf16.mxu0 %v6896_v53  ;;  %5544 = vmatpush3.bf16.msra.mxu0 %v6140_v21  ;;  %v6144_v53 = vld [vmem:[#allocation10 + $0x270] sm:$0xff]  }
 0x809   : > { %v5239_v30 = vpop.f32.mrb[152].mxu1  ;;  %5545 = vmatprep.subr.bf16.mxu0 %v6141_v48 }
 0x80a   : > { %v5240_v20 = vpop.f32.mrb[153].mxu1 }
 0x80b   : > { %v7183_v33 = vadd.f32 %v5240_v20, %v5239_v30  ;;  %v5242_v50 = vpop.f32.mrb[154].mxu1 }
 0x80c   : > { %v5243_v7 = vpop.f32.mrb[155].mxu1  ;;  %5546 = vmatpush3.bf16.msra.mxu0 %v6141_v48 }
 0x80d   : > { %v7185_v14 = vadd.f32 %v5243_v7, %v5242_v50  ;;  %5547 = vmatprep.subr.bf16.mxu0 %v6142_v13  ;;  %v7629_v7 = vld [vmem:[#allocation24_spill] sm:$0xff] }
 0x80f   : > { %3949 = vmatmul.mubr.bf16.gmra.mrb[136].mxu0 %v7621_v23 }
 0x810   : > { %3956 = vmatprep.mubr.bf16.mxu0 %v7622_v52  ;;  %5548 = vmatpush3.bf16.msra.mxu0 %v6142_v13 }
 0x811   : > { %v5245_v63 = vpop.f32.mrb[156].mxu1  ;;  %5549 = vmatprep.subr.bf16.mxu0 %v6143_v55 }
 0x812   : > { %v5246_v8 = vpop.f32.mrb[157].mxu1 }
 0x813   : > { %v7189_v46 = vadd.f32 %v5246_v8, %v5245_v63  ;;  %v5248_v18 = vpop.f32.mrb[158].mxu1  ;;  %v6152_v63 = vld [vmem:[#allocation10 + $0x2b0] sm:$0xff]  }
 0x814   : > { %v5249_v41 = vpop.f32.mrb[159].mxu1  ;;  %5550 = vmatpush3.bf16.msra.mxu0 %v6143_v55  ;;  %v7630_v55 = vld [vmem:[#allocation27_spill] sm:$0xff]  ;;  %5609 = vmatprep.subr.bf16.mxu1 %v6152_v63 }
 0x815   : > { %v7191_v9 = vadd.f32 %v5249_v41, %v5248_v18  ;;  %5551 = vmatprep.subr.bf16.mxu0 %v6144_v53  ;;  %5617 = vmatpush3.bf16.msra.mxu1 %v6152_v63 }
 0x817   : > { %3957 = vmatmul.mubr.bf16.gmra.mrb[140].mxu0 %v7623_v19  ;;  %v7631_v19 = vld [vmem:[#allocation26_spill] sm:$0xff] }
 0x818   : > { %3964 = vmatprep.mubr.bf16.mxu0 %v7624_v59  ;;  %5552 = vmatpush3.bf16.msra.mxu0 %v6144_v53 }
 0x819   : > { %v5331_v54 = vpop.f32.mrb[160].mxu1  ;;  %5553 = vmatprep.subr.bf16.mxu0 %v6145_v12 }
 0x81a   : > { %v5332_v56 = vpop.f32.mrb[161].mxu1 }
 0x81b   : > { %v7195_v38 = vadd.f32 %v5332_v56, %v5331_v54  ;;  %v5334_v5 = vpop.f32.mrb[162].mxu1 }
 0x81c   : > { %v5335_v11 = vpop.f32.mrb[163].mxu1  ;;  %5554 = vmatpush3.bf16.msra.mxu0 %v6145_v12  ;;  %v6153_v12 = vld [vmem:[#allocation10 + $0x2b8] sm:$0xff]  }
 0x81d   : > { %v7197_v57 = vadd.f32 %v5335_v11, %v5334_v5  ;;  %5571 = vmatprep.subr.bf16.mxu0 %v7130_v15  ;;  %5610 = vmatprep.subr.bf16.mxu1 %v6153_v12 }
 0x81e   : > { %5618 = vmatpush3.bf16.msra.mxu1 %v6153_v12 }
 0x81f   : > { %3965 = vmatmul.mubr.bf16.gmra.mrb[144].mxu0 %v7625_v10 }
 0x820   : > { %3972 = vmatprep.mubr.bf16.mxu0 %v7626_v62 }
 0x821   : > { %v5337_v2 = vpop.f32.mrb[164].mxu1 }
 0x822   : > { %v5338_v43 = vpop.f32.mrb[165].mxu1 }
 0x823   : > { %v7202_v34 = vadd.f32 %v5338_v43, %v5337_v2  ;;  %v5340_v42 = vpop.f32.mrb[166].mxu1 }
 0x824   : > { %v5341_v47 = vpop.f32.mrb[167].mxu1 }
 0x825   : > { %v7204_v21 = vadd.f32 %v5341_v47, %v5340_v42 }
 0x827   : > { %3973 = vmatmul.mubr.bf16.gmra.mrb[148].mxu0 %v7627_v29 }
 0x828   : > { %3980 = vmatprep.mubr.bf16.mxu0 %v7628_v60 }
 0x829   : > { %v5343_v49 = vpop.f32.mrb[168].mxu1 }
 0x82a   : > { %v5344_v48 = vpop.f32.mrb[169].mxu1 }
 0x82b   : > { %v7208_v30 = vadd.f32 %v5344_v48, %v5343_v49  ;;  %v5346_v13 = vpop.f32.mrb[170].mxu1 }
 0x82c   : > { %v5347_v20 = vpop.f32.mrb[171].mxu1 }
 0x82d   : > { %v7210_v50 = vadd.f32 %v5347_v20, %v5346_v13 }
 0x82f   : > { %3981 = vmatmul.mubr.bf16.gmra.mrb[152].mxu0 %v7629_v7 }
 0x830   : > { %3988 = vmatprep.mubr.bf16.mxu0 %v7630_v55 }
 0x831   : > { %v5349_v23 = vpop.f32.mrb[172].mxu1 }
 0x832   : > { %v5350_v52 = vpop.f32.mrb[173].mxu1 }
 0x833   : > { %v7214_v53 = vadd.f32 %v5350_v52, %v5349_v23  ;;  %v5352_v8 = vpop.f32.mrb[174].mxu1 }
 0x834   : > { %v5353_v18 = vpop.f32.mrb[175].mxu1 }
 0x835   : > { %v7216_v41 = vadd.f32 %v5353_v18, %v5352_v8 }
 0x837   : > { %3989 = vmatmul.mubr.bf16.gmra.mrb[156].mxu0 %v7631_v19 }
 0x838   : > { %5555 = vmatprep.mubr.bf16.mxu0 %v7076_v0 }
 0x839   : > { %v5355_v59 = vpop.f32.mrb[176].mxu1 }
 0x83a   : > { %v5356_v54 = vpop.f32.mrb[177].mxu1 }
 0x83b   : > { %v7220_v56 = vadd.f32 %v5356_v54, %v5355_v59  ;;  %v5358_v5 = vpop.f32.mrb[178].mxu1 }
 0x83c   : > { %v5359_v11 = vpop.f32.mrb[179].mxu1 }
 0x83d   : > { %v7222_v10 = vadd.f32 %v5359_v11, %v5358_v5 }
 0x83f   : > { %5556 = vmatmul.mubr.bf16.vlgmr.msra.gmra.mrb[160].mxu0 %v7074_v51 }
 0x840   : > { %5559 = vmatprep.mubr.bf16.mxu0 %v7082_v37  ;;  %5572 = vmatpush3.bf16.msra.mxu0 %v7130_v15 }
 0x841   : > { %v5361_v62 = vpop.f32.mrb[180].mxu1  ;;  %5573 = vmatprep.subr.bf16.mxu0 %v7133_v44 }
 0x842   : > { %v5362_v0 = vpop.f32.mrb[181].mxu1 }
 0x843   : > { %v7228_v2 = vadd.f32 %v5362_v0, %v5361_v62  ;;  %v5364_v43 = vpop.f32.mrb[182].mxu1 }
 0x844   : > { %v5365_v42 = vpop.f32.mrb[183].mxu1  ;;  %5574 = vmatpush3.bf16.msra.mxu0 %v7133_v44 }
 0x845   : > { %v7231_v47 = vadd.f32 %v5365_v42, %v5364_v43  ;;  %5575 = vmatprep.subr.bf16.mxu0 %v7141_v27 }
 0x847   : > { %5560 = vmatmul.mubr.bf16.gmra.mrb[164].mxu0 %v7080_v28 }
 0x848   : > { %5563 = vmatprep.mubr.bf16.mxu0 %v7088_v25  ;;  %5576 = vmatpush3.bf16.msra.mxu0 %v7141_v27 }
 0x849   : > { %v5367_v51 = vpop.f32.mrb[184].mxu1  ;;  %5577 = vmatprep.subr.bf16.mxu0 %v7145_v32 }
 0x84a   : > { %v5368_v37 = vpop.f32.mrb[185].mxu1 }
 0x84b   : > { %v7238_v15 = vadd.f32 %v5368_v37, %v5367_v51  ;;  %v5370_v29 = vpop.f32.mrb[186].mxu1 }
 0x84c   : > { %v5371_v60 = vpop.f32.mrb[187].mxu1  ;;  %5578 = vmatpush3.bf16.msra.mxu0 %v7145_v32 }
 0x84d   : > { %v7241_v44 = vadd.f32 %v5371_v60, %v5370_v29  ;;  %5579 = vmatprep.subr.bf16.mxu0 %v7153_v24 }
 0x84f   : > { %5564 = vmatmul.mubr.bf16.gmra.mrb[168].mxu0 %v7086_v22 }
 0x850   : > { %5567 = vmatprep.mubr.bf16.mxu0 %v7094_v17  ;;  %5580 = vmatpush3.bf16.msra.mxu0 %v7153_v24 }
 0x851   : > { %v5373_v28 = vpop.f32.mrb[188].mxu1  ;;  %5581 = vmatprep.subr.bf16.mxu0 %v7157_v39 }
 0x852   : > { %v5374_v25 = vpop.f32.mrb[189].mxu1 }
 0x853   : > { %v7248_v27 = vadd.f32 %v5374_v25, %v5373_v28  ;;  %v5376_v49 = vpop.f32.mrb[190].mxu1 }
 0x854   : > { %v5377_v48 = vpop.f32.mrb[191].mxu1  ;;  %5582 = vmatpush3.bf16.msra.mxu0 %v7157_v39 }
 0x855   : > { %v7251_v32 = vadd.f32 %v5377_v48, %v5376_v49  ;;  %5583 = vmatprep.subr.bf16.mxu0 %v6152_v63 }
 0x857   : > { %5568 = vmatmul.mubr.bf16.gmra.mrb[172].mxu0 %v7092_v3 }
 0x858   : > { %5584 = vmatpush3.bf16.msra.mxu0 %v6152_v63 }
 0x859   : > { %5585 = vmatprep.subr.bf16.mxu0 %v6153_v12 }
 0x85c   : > { %5586 = vmatpush3.bf16.msra.mxu0 %v6153_v12 }
 0x8b2   : > { %v5525_v22 = vpop.f32.mrb[112].mxu0 }
 0x8b3   : > { %v3389_v17 = vmul.f32 0.01, %v5525_v22  ;;  %v3308_v24 = vpop.f32.mrb[113].mxu0  ;;  %vm3373_vm2 = vcmp.gt.f32.partialorder %v5525_v22, 0.0 }
 0x8b4   : > { %v3387_v13 = vmul.f32 0.01, %v3308_v24  ;;  %v5526_v20 = vpop.f32.mrb[114].mxu0  ;;  %vm3371_vm3 = vcmp.gt.f32.partialorder %v3308_v24, 0.0 }
 0x8b5   : > { %vm3374_vm4 = vcmp.gt.f32.partialorder %v5526_v20, 0.0  ;;  %v3390_v7 = vmul.f32 0.01, %v5526_v20  ;;  %v3311_v55 = vpop.f32.mrb[115].mxu0  ;;  %v3405_v23 = vsel %vm3373_vm2, %v5525_v22, %v3389_v17 }
 0x8b6   : > { %vm3372_vm5 = vcmp.gt.f32.partialorder %v3311_v55, 0.0  ;;  %v3388_v39 = vmul.f32 0.01, %v3311_v55  ;;  %v3403_v8 = vsel %vm3371_vm3, %v3308_v24, %v3387_v13 }
 0x8b7   : > { %v3406_v52 = vsel %vm3374_vm4, %v5526_v20, %v3390_v7 }
 0x8b8   : > { %v4272_v18 = vpack.c.bf16 %v3406_v52, %v3405_v23  ;;  %v3404_v3 = vsel %vm3372_vm5, %v3311_v55, %v3388_v39 }
 0x8b9   : > { %v4271_v63 = vpack.c.bf16 %v3404_v3, %v3403_v8 }
 0x8ba   : > { %v5529_v19 = vpop.f32.mrb[116].mxu0 }
 0x8bb   : > { %v3393_v12 = vmul.f32 0.01, %v5529_v19  ;;  %v3324_v59 = vpop.f32.mrb[117].mxu0  ;;  %5587 = vmatprep.mubr.bf16.mxu0 %v4271_v63  ;;  %vm3377_vm6 = vcmp.gt.f32.partialorder %v5529_v19, 0.0 }
 0x8bc   : > { %v3391_v54 = vmul.f32 0.01, %v3324_v59  ;;  %v5530_v5 = vpop.f32.mrb[118].mxu0  ;;  %5588 = vmatmul.mubr.bf16.vlgmr.msra.gmra.mrb[160].mxu0 %v4272_v18  ;;  %vm3375_vm7 = vcmp.gt.f32.partialorder %v3324_v59, 0.0 }
 0x8bd   : > { %vm3378_vm8 = vcmp.gt.f32.partialorder %v5530_v5, 0.0  ;;  %v3394_v11 = vmul.f32 0.01, %v5530_v5  ;;  %v3327_v62 = vpop.f32.mrb[119].mxu0  ;;  %v3409_v43 = vsel %vm3377_vm6, %v5529_v19, %v3393_v12 }
 0x8be   : > { %vm3376_vm9 = vcmp.gt.f32.partialorder %v3327_v62, 0.0  ;;  %v3392_v0 = vmul.f32 0.01, %v3327_v62  ;;  %v3407_v51 = vsel %vm3375_vm7, %v3324_v59, %v3391_v54 }
 0x8bf   : > { %v3410_v42 = vsel %vm3378_vm8, %v5530_v5, %v3394_v11 }
 0x8c0   : > { %v3408_v37 = vsel %vm3376_vm9, %v3327_v62, %v3392_v0  ;;  %v4274_v29 = vpack.c.bf16 %v3410_v42, %v3409_v43 }
 0x8c1   : > { %v4273_v60 = vpack.c.bf16 %v3408_v37, %v3407_v51 }
 0x8c2   : > { %v5533_v28 = vpop.f32.mrb[120].mxu0 }
 0x8c3   : > { %v3397_v25 = vmul.f32 0.01, %v5533_v28  ;;  %v3340_v49 = vpop.f32.mrb[121].mxu0  ;;  %5591 = vmatprep.mubr.bf16.mxu0 %v4273_v60  ;;  %vm3381_vm10 = vcmp.gt.f32.partialorder %v5533_v28, 0.0 }
 0x8c4   : > { %v3395_v48 = vmul.f32 0.01, %v3340_v49  ;;  %v5534_v22 = vpop.f32.mrb[122].mxu0  ;;  %5592 = vmatmul.mubr.bf16.gmra.mrb[164].mxu0 %v4274_v29  ;;  %vm3379_vm11 = vcmp.gt.f32.partialorder %v3340_v49, 0.0 }
 0x8c5   : > { %vm3382_vm12 = vcmp.gt.f32.partialorder %v5534_v22, 0.0  ;;  %v3398_v17 = vmul.f32 0.01, %v5534_v22  ;;  %v3343_v24 = vpop.f32.mrb[123].mxu0  ;;  %v3413_v20 = vsel %vm3381_vm10, %v5533_v28, %v3397_v25 }
 0x8c6   : > { %vm3380_vm13 = vcmp.gt.f32.partialorder %v3343_v24, 0.0  ;;  %v3396_v13 = vmul.f32 0.01, %v3343_v24  ;;  %v3411_v55 = vsel %vm3379_vm11, %v3340_v49, %v3395_v48 }
 0x8c7   : > { %v3414_v7 = vsel %vm3382_vm12, %v5534_v22, %v3398_v17 }
 0x8c8   : > { %v4276_v39 = vpack.c.bf16 %v3414_v7, %v3413_v20  ;;  %v3412_v23 = vsel %vm3380_vm13, %v3343_v24, %v3396_v13 }
 0x8c9   : > { %v4275_v52 = vpack.c.bf16 %v3412_v23, %v3411_v55 }
 0x8ca   : > { %v5537_v8 = vpop.f32.mrb[124].mxu0 }
 0x8cb   : > { %v3401_v18 = vmul.f32 0.01, %v5537_v8  ;;  %v3356_v3 = vpop.f32.mrb[125].mxu0  ;;  %5595 = vmatprep.mubr.bf16.mxu1 %v4275_v52  ;;  %vm3385_vm14 = vcmp.gt.f32.partialorder %v5537_v8, 0.0 }
 0x8cc   : > { %v3399_v63 = vmul.f32 0.01, %v3356_v3  ;;  %v5538_v19 = vpop.f32.mrb[126].mxu0  ;;  %5596 = vmatmul.mubr.bf16.vlgmr.msra.gmra.mrb[192].mxu1 %v4276_v39  ;;  %vm3383_vm15 = vcmp.gt.f32.partialorder %v3356_v3, 0.0 }
 0x8cd   : > { %vm3386_vm0 = vcmp.gt.f32.partialorder %v5538_v19, 0.0  ;;  %v3402_v12 = vmul.f32 0.01, %v5538_v19  ;;  %v3359_v59 = vpop.f32.mrb[127].mxu0  ;;  %v3417_v5 = vsel %vm3385_vm14, %v5537_v8, %v3401_v18 }
 0x8ce   : > { %vm3384_vm1 = vcmp.gt.f32.partialorder %v3359_v59, 0.0  ;;  %v3400_v54 = vmul.f32 0.01, %v3359_v59  ;;  %v3415_v62 = vsel %vm3383_vm15, %v3356_v3, %v3399_v63 }
 0x8cf   : > { %v3418_v11 = vsel %vm3386_vm0, %v5538_v19, %v3402_v12 }
 0x8d0   : > { %v3416_v0 = vsel %vm3384_vm1, %v3359_v59, %v3400_v54  ;;  %v4278_v43 = vpack.c.bf16 %v3418_v11, %v3417_v5 }
 0x8d1   : > { %v4277_v42 = vpack.c.bf16 %v3416_v0, %v3415_v62 }
 0x8d2   : > { %v5267_v51 = vpop.f32.mrb[128].mxu0 }
 0x8d3   : > { %v5268_v37 = vpop.f32.mrb[129].mxu0  ;;  %5599 = vmatprep.mubr.bf16.mxu1 %v4277_v42 }
 0x8d4   : > { %v5269_v29 = vadd.f32 %v5268_v37, %v5267_v51  ;;  %v5270_v60 = vpop.f32.mrb[130].mxu0  ;;  %5600 = vmatmul.mubr.bf16.gmra.mrb[196].mxu1 %v4278_v43 }
 0x8d5   : > { %v5271_v28 = vpop.f32.mrb[131].mxu0 }
 0x8d6   : > { %v3935_v25 = vadd.f32 %v5269_v29, %v7136_v58  ;;  %v5272_v49 = vadd.f32 %v5271_v28, %v5270_v60 }
 0x8d8   : > { %v3938_v48 = vadd.f32 %v5272_v49, %v7139_v45  ;;  %v7257_v22 = vadd.f32 %v7195_v38, %v3935_v25 }
 0x8da   : > { %v5273_v17 = vpop.f32.mrb[132].mxu0  ;;  %v7260_v24 = vadd.f32 %v7197_v57, %v3938_v48 }
 0x8db   : > { %v5274_v13 = vpop.f32.mrb[133].mxu0 }
 0x8dc   : > { %v5275_v20 = vadd.f32 %v5274_v13, %v5273_v17  ;;  %v5276_v7 = vpop.f32.mrb[134].mxu0 }
 0x8dd   : > { %v5277_v55 = vpop.f32.mrb[135].mxu0 }
 0x8de   : > { %v3943_v39 = vadd.f32 %v5275_v20, %v7148_v31  ;;  %v5278_v23 = vadd.f32 %v5277_v55, %v5276_v7 }
 0x8e0   : > { %v3946_v52 = vadd.f32 %v5278_v23, %v7151_v26  ;;  %v7265_v58 = vadd.f32 %v7202_v34, %v3943_v39 }
 0x8e2   : > { %v5279_v45 = vpop.f32.mrb[136].mxu0  ;;  %v7268_v38 = vadd.f32 %v7204_v21, %v3946_v52 }
 0x8e3   : > { %v5280_v8 = vpop.f32.mrb[137].mxu0 }
 0x8e4   : > { %v5281_v18 = vadd.f32 %v5280_v8, %v5279_v45  ;;  %v5282_v57 = vpop.f32.mrb[138].mxu0 }
 0x8e5   : > { %v5283_v3 = vpop.f32.mrb[139].mxu0 }
 0x8e6   : > { %v3951_v63 = vadd.f32 %v5281_v18, %v7160_v16  ;;  %v5284_v19 = vadd.f32 %v5283_v3, %v5282_v57 }
 0x8e8   : > { %v3954_v12 = vadd.f32 %v5284_v19, %v7163_v36  ;;  %v7273_v31 = vadd.f32 %v7208_v30, %v3951_v63 }
 0x8ea   : > { %v5285_v26 = vpop.f32.mrb[140].mxu0  ;;  %v7276_v34 = vadd.f32 %v7210_v50, %v3954_v12 }
 0x8eb   : > { %v5286_v59 = vpop.f32.mrb[141].mxu0 }
 0x8ec   : > { %v5287_v54 = vadd.f32 %v5286_v59, %v5285_v26  ;;  %v5288_v21 = vpop.f32.mrb[142].mxu0 }
 0x8ed   : > { %v5289_v5 = vpop.f32.mrb[143].mxu0 }
 0x8ee   : > { %v3959_v11 = vadd.f32 %v5287_v54, %v7166_v61  ;;  %v5290_v62 = vadd.f32 %v5289_v5, %v5288_v21 }
 0x8f0   : > { %v3962_v0 = vadd.f32 %v5290_v62, %v7168_v40  ;;  %v7281_v16 = vadd.f32 %v7214_v53, %v3959_v11 }
 0x8f2   : > { %v5291_v36 = vpop.f32.mrb[144].mxu0  ;;  %v7284_v30 = vadd.f32 %v7216_v41, %v3962_v0 }
 0x8f3   : > { %v5292_v43 = vpop.f32.mrb[145].mxu0 }
 0x8f4   : > { %v5293_v42 = vadd.f32 %v5292_v43, %v5291_v36  ;;  %v5294_v50 = vpop.f32.mrb[146].mxu0  ;;  %v7313_v43 = vld [vmem:[%s7578_s5] ss:$0 sm:$0xff] }
 0x8f5   : > { %v5295_v51 = vpop.f32.mrb[147].mxu0 }
 0x8f6   : > { %v3967_v37 = vadd.f32 %v5293_v42, %v7171_v6  ;;  %v5296_v29 = vadd.f32 %v5295_v51, %v5294_v50 }
 0x8f8   : > { %v3970_v60 = vadd.f32 %v5296_v29, %v7173_v4  ;;  %v4064_v61 = vadd.f32 %v7220_v56, %v3967_v37 }
 0x8fa   : > { %v5297_v28 = vpop.f32.mrb[148].mxu0  ;;  %v4067_v40 = vadd.f32 %v7222_v10, %v3970_v60 }
 0x8fb   : > { %v5298_v53 = vpop.f32.mrb[149].mxu0 }
 0x8fc   : > { %v5299_v25 = vadd.f32 %v5298_v53, %v5297_v28  ;;  %v5300_v49 = vpop.f32.mrb[150].mxu0 }
 0x8fd   : > { %v5301_v48 = vpop.f32.mrb[151].mxu0 }
 0x8fe   : > { %v3975_v41 = vadd.f32 %v5299_v25, %v7177_v1  ;;  %v5302_v17 = vadd.f32 %v5301_v48, %v5300_v49 }
 0x900   : > { %v3978_v13 = vadd.f32 %v5302_v17, %v7179_v35  ;;  %v4072_v20 = vadd.f32 %v7228_v2, %v3975_v41 }
 0x902   : > { %v5303_v6 = vpop.f32.mrb[152].mxu0  ;;  %v4075_v7 = vadd.f32 %v7231_v47, %v3978_v13 }
 0x903   : > { %v5304_v4 = vpop.f32.mrb[153].mxu0 }
 0x904   : > { %v5305_v55 = vadd.f32 %v5304_v4, %v5303_v6  ;;  %v5306_v56 = vpop.f32.mrb[154].mxu0 }
 0x905   : > { %v5307_v39 = vpop.f32.mrb[155].mxu0 }
 0x906   : > { %v3983_v10 = vadd.f32 %v5305_v55, %v7183_v33  ;;  %v5308_v23 = vadd.f32 %v5307_v39, %v5306_v56 }
 0x908   : > { %v3986_v52 = vadd.f32 %v5308_v23, %v7185_v14  ;;  %v4080_v45 = vadd.f32 %v7238_v15, %v3983_v10 }
 0x90a   : > { %v5309_v1 = vpop.f32.mrb[156].mxu0  ;;  %v4083_v8 = vadd.f32 %v7241_v44, %v3986_v52 }
 0x90b   : > { %v5310_v35 = vpop.f32.mrb[157].mxu0 }
 0x90c   : > { %v5311_v18 = vadd.f32 %v5310_v35, %v5309_v1  ;;  %v5312_v2 = vpop.f32.mrb[158].mxu0 }
 0x90d   : > { %v5313_v57 = vpop.f32.mrb[159].mxu0 }
 0x90e   : > { %v3991_v47 = vadd.f32 %v5311_v18, %v7189_v46  ;;  %v5314_v3 = vadd.f32 %v5313_v57, %v5312_v2 }
 0x910   : > { %v3994_v63 = vadd.f32 %v5314_v3, %v7191_v9  ;;  %v4088_v19 = vadd.f32 %v7248_v27, %v3991_v47 }
 0x912   : > { %v4091_v33 = vadd.f32 %v7251_v32, %v3994_v63 }
 0x922   : > { %v5565_v12 = vpop.f32.mrb[168].mxu0 }
 0x923   : > { %v4265_v14 = vadd.f32 %v5565_v12, %v4072_v20  ;;  %v4224_v26 = vpop.f32.mrb[169].mxu0 }
 0x924   : > { %v4263_v15 = vadd.f32 %v4224_v26, %v4064_v61  ;;  %v5566_v59 = vpop.f32.mrb[170].mxu0 }
 0x925   : > { %v4266_v54 = vadd.f32 %v5566_v59, %v4075_v7  ;;  %v4227_v44 = vpop.f32.mrb[171].mxu0 }
 0x926   : > { %v4264_v21 = vadd.f32 %v4227_v44, %v4067_v40 }
 0x92a   : > { %v5569_v5 = vpop.f32.mrb[172].mxu0 }
 0x92b   : > { %v7302_v11 = vadd.f32 %v5569_v5, %v4088_v19  ;;  %v4240_v62 = vpop.f32.mrb[173].mxu0 }
 0x92c   : > { %v7304_v46 = vadd.f32 %v4240_v62, %v4080_v45  ;;  %v5570_v0 = vpop.f32.mrb[174].mxu0 }
 0x92d   : > { %v7306_v9 = vadd.f32 %v5570_v0, %v4091_v33  ;;  %v4243_v27 = vpop.f32.mrb[175].mxu0 }
 0x92e   : > { %v7308_v36 = vadd.f32 %v4243_v27, %v4083_v8 }
 0x98f   : > { %v5589_v32 = vpop.f32.mrb[160].mxu0 }
 0x990   : > { %v5619_v42 = vadd.f32 %v5589_v32, %v7265_v58  ;;  %v4377_v50 = vpop.f32.mrb[161].mxu0 }
 0x991   : > { %v5620_v51 = vadd.f32 %v4377_v50, %v7257_v22  ;;  %v5590_v37 = vpop.f32.mrb[162].mxu0 }
 0x992   : > { %v5621_v29 = vadd.f32 %v5590_v37, %v7268_v38  ;;  %v4380_v60 = vpop.f32.mrb[163].mxu0  ;;  %v7319_v61 = vadd.f32 %v5619_v42, %v7313_v43 }
 0x993   : > { %v5622_v28 = vadd.f32 %v4380_v60, %v7260_v24  ;;  %v7323_v40 = vadd.f32 %v5620_v51, %v7313_v43 }
 0x994   : > { %v7326_v53 = vadd.f32 %v5621_v29, %v7313_v43  ;;  %v4481_v58 = vmul.f32 %v7319_v61, %v7319_v61 }
 0x995   : > { %v7331_v22 = vadd.f32 %v5622_v28, %v7313_v43  ;;  %v4479_v38 = vmul.f32 %v7323_v40, %v7323_v40 }
 0x996   : > { %4499 = vadd.xlane.f32.xlu1 %v4481_v58  ;;  %v4482_v48 = vmul.f32 %v7326_v53, %v7326_v53 }
 0x997   : > { %v5593_v25 = vpop.f32.mrb[164].mxu0  ;;  %4495 = vadd.xlane.f32.xlu0 %v4479_v38  ;;  %v4480_v13 = vmul.f32 %v7331_v22, %v7331_v22 }
 0x998   : > { %v5623_v24 = vadd.f32 %v5593_v25, %v7281_v16  ;;  %v4393_v49 = vpop.f32.mrb[165].mxu0 }
 0x999   : > { %v5624_v41 = vadd.f32 %v4393_v49, %v7273_v31  ;;  %v5594_v17 = vpop.f32.mrb[166].mxu0 }
 0x99a   : > { %v7342_v20 = vadd.f32 %v5623_v24, %v7313_v43  ;;  %v5625_v6 = vadd.f32 %v5594_v17, %v7284_v30  ;;  %v4396_v7 = vpop.f32.mrb[167].mxu0  ;;  %4501 = vadd.xlane.f32.xlu1 %v4482_v48 }
 0x99b   : > { %v5626_v4 = vadd.f32 %v4396_v7, %v7276_v34  ;;  %4497 = vadd.xlane.f32.xlu0 %v4480_v13  ;;  %v7352_v55 = vadd.f32 %v5624_v41, %v7313_v43 }
 0x99c   : > { %v7347_v16 = vadd.f32 %v5625_v6, %v7313_v43  ;;  %v4485_v31 = vmul.f32 %v7342_v20, %v7342_v20 }
 0x99d   : > { %v7355_v56 = vadd.f32 %v5626_v4, %v7313_v43  ;;  %v4483_v45 = vmul.f32 %v7352_v55, %v7352_v55 }
 0x99e   : > { %v4486_v30 = vmul.f32 %v7347_v16, %v7347_v16 }
 0x99f   : > { %v5597_v39 = vpop.f32.mrb[192].mxu1  ;;  %4507 = vadd.xlane.f32.xlu0 %v4485_v31  ;;  %v4484_v18 = vmul.f32 %v7355_v56, %v7355_v56 }
 0x9a0   : > { %v4450_v10 = vadd.f32 %v5597_v39, %v4265_v14  ;;  %v4409_v34 = vpop.f32.mrb[193].mxu1  ;;  %4509 = vadd.xlane.f32.xlu1 %v4486_v30 }
 0x9a1   : > { %v4448_v23 = vadd.f32 %v4409_v34, %v4263_v15  ;;  %v5598_v52 = vpop.f32.mrb[194].mxu1 }
 0x9a2   : > { %v7362_v1 = vadd.f32 %v7313_v43, %v4450_v10  ;;  %v4451_v8 = vadd.f32 %v5598_v52, %v4266_v54  ;;  %v4412_v35 = vpop.f32.mrb[195].mxu1 }
 0x9a3   : > { %v4449_v2 = vadd.f32 %v4412_v35, %v4264_v21  ;;  %4503 = vadd.xlane.f32.xlu0 %v4483_v45  ;;  %v7372_v3 = vadd.f32 %v7313_v43, %v4448_v23 }
 0x9a4   : > { %v7367_v57 = vadd.f32 %v7313_v43, %v4451_v8  ;;  %4505 = vadd.xlane.f32.xlu1 %v4484_v18  ;;  %v4489_v47 = vmul.f32 %v7362_v1, %v7362_v1 }
 0x9a5   : > { %v7375_v63 = vadd.f32 %v7313_v43, %v4449_v2  ;;  %v4487_v59 = vmul.f32 %v7372_v3, %v7372_v3 }
 0x9a6   : > { %v4490_v19 = vmul.f32 %v7367_v57, %v7367_v57 }
 0x9a7   : > { %4515 = vadd.xlane.f32.xlu0 %v4489_v47  ;;  %v5601_v33 = vpop.f32.mrb[196].mxu1  ;;  %v4488_v21 = vmul.f32 %v7375_v63, %v7375_v63 }
 0x9a8   : > { %v4454_v12 = vadd.f32 %v5601_v33, %v7302_v11  ;;  %4517 = vadd.xlane.f32.xlu1 %v4490_v19  ;;  %v4425_v14 = vpop.f32.mrb[197].mxu1 }
 0x9a9   : > { %v4452_v26 = vadd.f32 %v4425_v14, %v7304_v46  ;;  %v5602_v15 = vpop.f32.mrb[198].mxu1 }
 0x9aa   : > { %v4455_v54 = vadd.f32 %v5602_v15, %v7306_v9  ;;  %v4428_v44 = vpop.f32.mrb[199].mxu1  ;;  %v7391_v11 = vadd.f32 %v7313_v43, %v4454_v12 }
 0x9ab   : > { %v7387_v5 = vadd.f32 %v7313_v43, %v4452_v26  ;;  %v4453_v62 = vadd.f32 %v4428_v44, %v7308_v36  ;;  %4511 = vadd.xlane.f32.xlu0 %v4487_v59 }
 0x9ac   : > { %4513 = vadd.xlane.f32.xlu1 %v4488_v21  ;;  %v7399_v9 = vadd.f32 %v7313_v43, %v4455_v54  ;;  %v4493_v36 = vmul.f32 %v7391_v11, %v7391_v11 }
 0x9ad   : > { %v7394_v46 = vadd.f32 %v7313_v43, %v4453_v62  ;;  %v4491_v0 = vmul.f32 %v7387_v5, %v7387_v5 }
 0x9ae   : > { %v4494_v32 = vmul.f32 %v7399_v9, %v7399_v9 }
 0x9af   : > { %4519 = vadd.xlane.f32.xlu0 %v4491_v0  ;;  %v4492_v27 = vmul.f32 %v7394_v46, %v7394_v46 }
 0x9b1   : > { %4521 = vadd.xlane.f32.xlu1 %v4492_v27 }
 0x9b3   : > { %4523 = vadd.xlane.f32.xlu0 %v4493_v36 }
 0x9b5   : > { %4525 = vadd.xlane.f32.xlu1 %v4494_v32 }
 0xa23   : > { %v4500_v42 = vpop.xlane.xlu1 %4499 }
 0xa24   : > { %6154 = vrsqrt.f32 %v4500_v42  ;;  %v4496_v50 = vpop.xlane.xlu0 %4495 }
 0xa25   : > { %6156 = vrsqrt.f32 %v4496_v50 }
 0xa27   : > { %v4502_v51 = vpop.xlane.xlu1 %4501 }
 0xa28   : > { %6158 = vrsqrt.f32 %v4502_v51  ;;  %v4498_v43 = vpop.xlane.xlu0 %4497 }
 0xa29   : > { %6160 = vrsqrt.f32 %v4498_v43 }
 0xa2c   : > { %v4508_v37 = vpop.xlane.xlu0 %4507 }
 0xa2d   : > { %6162 = vrsqrt.f32 %v4508_v37  ;;  %v4510_v29 = vpop.xlane.xlu1 %4509 }
 0xa2e   : > { %v6155_v60 = vpop.eup %6154  ;;  %6164 = vrsqrt.f32 %v4510_v29 }
 0xa2f   : > { %v6157_v28 = vpop.eup %6156  ;;  %v7408_v58 = vmul.f32 %v6155_v60, %v7319_v61 }
 0xa30   : > { %v4504_v38 = vpop.xlane.xlu0 %4503  ;;  %v7413_v49 = vmul.f32 %v6157_v28, %v7323_v40 }
 0xa31   : > { %6166 = vrsqrt.f32 %v4504_v38  ;;  %v4506_v25 = vpop.xlane.xlu1 %4505  ;;  %v4561_v24 = vmul.f32 %v7408_v58, %v7408_v58 }
 0xa32   : > { %v6159_v48 = vpop.eup %6158  ;;  %6168 = vrsqrt.f32 %v4506_v25  ;;  %v4559_v6 = vmul.f32 %v7413_v49, %v7413_v49 }
 0xa33   : > { %v6161_v41 = vpop.eup %6160  ;;  %4579 = vadd.xlane.f32.xlu0 %v4561_v24  ;;  %v7416_v17 = vmul.f32 %v6159_v48, %v7326_v53 }
 0xa34   : > { %v4516_v13 = vpop.xlane.xlu0 %4515  ;;  %v7423_v4 = vmul.f32 %v6161_v41, %v7331_v22 }
 0xa35   : > { %6170 = vrsqrt.f32 %v4516_v13  ;;  %v4518_v61 = vpop.xlane.xlu1 %4517  ;;  %v4562_v7 = vmul.f32 %v7416_v17, %v7416_v17 }
 0xa36   : > { %6172 = vrsqrt.f32 %v4518_v61  ;;  %v4560_v10 = vmul.f32 %v7423_v4, %v7423_v4 }
 0xa37   : > { %v6163_v40 = vpop.eup %6162  ;;  %4575 = vadd.xlane.f32.xlu0 %v4559_v6  ;;  %4581 = vadd.xlane.f32.xlu1 %v4562_v7 }
 0xa38   : > { %v6165_v31 = vpop.eup %6164  ;;  %v4512_v30 = vpop.xlane.xlu0 %4511  ;;  %v7426_v53 = vmul.f32 %v6163_v40, %v7342_v20 }
 0xa39   : > { %6174 = vrsqrt.f32 %v4512_v30  ;;  %v4514_v39 = vpop.xlane.xlu1 %4513  ;;  %v7431_v34 = vmul.f32 %v6165_v31, %v7347_v16 }
 0xa3a   : > { %6176 = vrsqrt.f32 %v4514_v39  ;;  %v4565_v22 = vmul.f32 %v7426_v53, %v7426_v53 }
 0xa3b   : > { %v6167_v23 = vpop.eup %6166  ;;  %4577 = vadd.xlane.f32.xlu1 %v4560_v10  ;;  %v4566_v8 = vmul.f32 %v7431_v34, %v7431_v34 }
 0xa3c   : > { %v6169_v52 = vpop.eup %6168  ;;  %4587 = vadd.xlane.f32.xlu0 %v4565_v22  ;;  %v4520_v45 = vpop.xlane.xlu0 %4519  ;;  %v7436_v20 = vmul.f32 %v6167_v23, %v7352_v55 }
 0xa3d   : > { %6178 = vrsqrt.f32 %v4520_v45  ;;  %v7441_v35 = vmul.f32 %v6169_v52, %v7355_v56 }
 0xa3e   : > { %v4522_v16 = vpop.xlane.xlu1 %4521  ;;  %v4563_v18 = vmul.f32 %v7436_v20, %v7436_v20 }
 0xa3f   : > { %v6171_v2 = vpop.eup %6170  ;;  %6180 = vrsqrt.f32 %v4522_v16  ;;  %4589 = vadd.xlane.f32.xlu1 %v4566_v8  ;;  %v4564_v33 = vmul.f32 %v7441_v35, %v7441_v35 }
 0xa40   : > { %v6173_v47 = vpop.eup %6172  ;;  %4583 = vadd.xlane.f32.xlu0 %v4563_v18  ;;  %v4524_v19 = vpop.xlane.xlu0 %4523  ;;  %v7446_v55 = vmul.f32 %v6171_v2, %v7362_v1 }
 0xa41   : > { %6182 = vrsqrt.f32 %v4524_v19  ;;  %v7451_v56 = vmul.f32 %v6173_v47, %v7367_v57 }
 0xa42   : > { %v4526_v12 = vpop.xlane.xlu1 %4525  ;;  %v4569_v14 = vmul.f32 %v7446_v55, %v7446_v55 }
 0xa43   : > { %v6175_v26 = vpop.eup %6174  ;;  %6184 = vrsqrt.f32 %v4526_v12  ;;  %4585 = vadd.xlane.f32.xlu1 %v4564_v33  ;;  %v4570_v1 = vmul.f32 %v7451_v56, %v7451_v56 }
 0xa44   : > { %v6177_v15 = vpop.eup %6176  ;;  %4595 = vadd.xlane.f32.xlu0 %v4569_v14  ;;  %v7456_v59 = vmul.f32 %v6175_v26, %v7372_v3 }
 0xa45   : > { %v7461_v54 = vmul.f32 %v6177_v15, %v7375_v63 }
 0xa46   : > { %v4567_v57 = vmul.f32 %v7456_v59, %v7456_v59 }
 0xa47   : > { %v6179_v44 = vpop.eup %6178  ;;  %4597 = vadd.xlane.f32.xlu1 %v4570_v1  ;;  %v4568_v3 = vmul.f32 %v7461_v54, %v7461_v54 }
 0xa48   : > { %4591 = vadd.xlane.f32.xlu0 %v4567_v57  ;;  %v7466_v21 = vmul.f32 %v6179_v44, %v7387_v5 }
 0xa49   : > { %v6181_v62 = vpop.eup %6180 }
 0xa4a   : > { %v4571_v0 = vmul.f32 %v7466_v21, %v7466_v21  ;;  %v7473_v27 = vmul.f32 %v6181_v62, %v7394_v46 }
 0xa4b   : > { %v6183_v63 = vpop.eup %6182  ;;  %4593 = vadd.xlane.f32.xlu1 %v4568_v3 }
 0xa4c   : > { %4599 = vadd.xlane.f32.xlu0 %v4571_v0  ;;  %v4572_v36 = vmul.f32 %v7473_v27, %v7473_v27  ;;  %v7478_v5 = vmul.f32 %v6183_v63, %v7391_v11 }
 0xa4d   : > { %v6185_v32 = vpop.eup %6184 }
 0xa4e   : > { %v4573_v42 = vmul.f32 %v7478_v5, %v7478_v5  ;;  %v7483_v50 = vmul.f32 %v6185_v32, %v7399_v9 }
 0xa4f   : > { %4601 = vadd.xlane.f32.xlu1 %v4572_v36 }
 0xa50   : > { %4603 = vadd.xlane.f32.xlu0 %v4573_v42  ;;  %v4574_v46 = vmul.f32 %v7483_v50, %v7483_v50 }
 0xa53   : > { %4605 = vadd.xlane.f32.xlu1 %v4574_v46 }
 0xac0   : > { %v4580_v51 = vpop.xlane.xlu0 %4579 }
 0xac1   : > { %6186 = vrsqrt.f32 %v4580_v51 }
 0xac4   : > { %v4576_v43 = vpop.xlane.xlu0 %4575  ;;  %v4582_v37 = vpop.xlane.xlu1 %4581 }
 0xac5   : > { %6188 = vrsqrt.f32 %v4576_v43 }
 0xac6   : > { %6190 = vrsqrt.f32 %v4582_v37 }
 0xac8   : > { %v4578_v11 = vpop.xlane.xlu1 %4577 }
 0xac9   : > { %6192 = vrsqrt.f32 %v4578_v11  ;;  %v4588_v29 = vpop.xlane.xlu0 %4587 }
 0xaca   : > { %6194 = vrsqrt.f32 %v4588_v29 }
 0xacb   : > { %v6187_v60 = vpop.eup %6186 }
 0xacc   : > { %v4625_v9 = vmul.f32 %v6187_v60, %v7408_v58  ;;  %v4590_v28 = vpop.xlane.xlu1 %4589 }
 0xacd   : > { %6196 = vrsqrt.f32 %v4590_v28  ;;  %v4584_v38 = vpop.xlane.xlu0 %4583 }
 0xace   : > { %4641 = vst [vmem:[%s7489_s26 + $0x10] sm:$0xff] %v4625_v9  ;;  %6198 = vrsqrt.f32 %v4584_v38 }
 0xacf   : > { %v6189_v25 = vpop.eup %6188 }
 0xad0   : > { %v6191_v24 = vpop.eup %6190  ;;  %v4623_v48 = vmul.f32 %v6189_v25, %v7413_v49  ;;  %v4586_v41 = vpop.xlane.xlu1 %4585 }
 0xad1   : > { %v4626_v13 = vmul.f32 %v6191_v24, %v7416_v17  ;;  %6200 = vrsqrt.f32 %v4586_v41  ;;  %v4596_v58 = vpop.xlane.xlu0 %4595 }
 0xad2   : > { %4639 = vst [vmem:[%s7489_s26] sm:$0xff] %v4623_v48  ;;  %6202 = vrsqrt.f32 %v4596_v58 }
 0xad3   : > { %v6193_v61 = vpop.eup %6192  ;;  %4642 = vst [vmem:[%s7489_s26 + $0x18] sm:$0xff] %v4626_v13 }
 0xad4   : > { %v6195_v6 = vpop.eup %6194  ;;  %v4624_v7 = vmul.f32 %v6193_v61, %v7423_v4  ;;  %v4598_v40 = vpop.xlane.xlu1 %4597 }
 0xad5   : > { %v4629_v31 = vmul.f32 %v6195_v6, %v7426_v53  ;;  %6204 = vrsqrt.f32 %v4598_v40  ;;  %v4592_v49 = vpop.xlane.xlu0 %4591 }
 0xad6   : > { %4640 = vst [vmem:[%s7489_s26 + $0x8] sm:$0xff] %v4624_v7  ;;  %6206 = vrsqrt.f32 %v4592_v49 }
 0xad7   : > { %v6197_v17 = vpop.eup %6196  ;;  %4645 = vst [vmem:[%s7489_s26 + $0x30] sm:$0xff] %v4629_v31 }
 0xad8   : > { %v6199_v30 = vpop.eup %6198  ;;  %v4630_v39 = vmul.f32 %v6197_v17, %v7431_v34  ;;  %v4594_v10 = vpop.xlane.xlu1 %4593 }
 0xad9   : > { %v4627_v22 = vmul.f32 %v6199_v30, %v7436_v20  ;;  %6208 = vrsqrt.f32 %v4594_v10  ;;  %v4600_v4 = vpop.xlane.xlu0 %4599 }
 0xada   : > { %4646 = vst [vmem:[%s7489_s26 + $0x38] sm:$0xff] %v4630_v39  ;;  %6210 = vrsqrt.f32 %v4600_v4 }
 0xadb   : > { %v6201_v53 = vpop.eup %6200  ;;  %4643 = vst [vmem:[%s7489_s26 + $0x20] sm:$0xff] %v4627_v22 }
 0xadc   : > { %v6203_v23 = vpop.eup %6202  ;;  %v4628_v52 = vmul.f32 %v6201_v53, %v7441_v35  ;;  %v4602_v45 = vpop.xlane.xlu1 %4601 }
 0xadd   : > { %v4633_v8 = vmul.f32 %v6203_v23, %v7446_v55  ;;  %6212 = vrsqrt.f32 %v4602_v45  ;;  %v4604_v34 = vpop.xlane.xlu0 %4603 }
 0xade   : > { %4644 = vst [vmem:[%s7489_s26 + $0x28] sm:$0xff] %v4628_v52  ;;  %6214 = vrsqrt.f32 %v4604_v34 }
 0xadf   : > { %v6205_v20 = vpop.eup %6204  ;;  %4649 = vst [vmem:[%s7489_s26 + $0x50] sm:$0xff] %v4633_v8 }
 0xae0   : > { %v6207_v16 = vpop.eup %6206  ;;  %v4634_v18 = vmul.f32 %v6205_v20, %v7451_v56  ;;  %v4606_v2 = vpop.xlane.xlu1 %4605 }
 0xae1   : > { %v4631_v35 = vmul.f32 %v6207_v16, %v7456_v59  ;;  %6216 = vrsqrt.f32 %v4606_v2 }
 0xae2   : > { %4650 = vst [vmem:[%s7489_s26 + $0x58] sm:$0xff] %v4634_v18 }
 0xae3   : > { %v6209_v47 = vpop.eup %6208  ;;  %4647 = vst [vmem:[%s7489_s26 + $0x40] sm:$0xff] %v4631_v35 }
 0xae4   : > { %v6211_v19 = vpop.eup %6210  ;;  %v4632_v55 = vmul.f32 %v6209_v47, %v7461_v54 }
 0xae5   : > { %v4635_v33 = vmul.f32 %v6211_v19, %v7466_v21 }
 0xae6   : > { %4648 = vst [vmem:[%s7489_s26 + $0x48] sm:$0xff] %v4632_v55 }
 0xae7   : > { %v6213_v12 = vpop.eup %6212  ;;  %4651 = vst [vmem:[%s7489_s26 + $0x60] sm:$0xff] %v4635_v33 }
 0xae8   : > { %v6215_v56 = vpop.eup %6214  ;;  %v4636_v14 = vmul.f32 %v6213_v12, %v7473_v27 }
 0xae9   : > { %v4637_v26 = vmul.f32 %v6215_v56, %v7478_v5 }
 0xaea   : > { %4652 = vst [vmem:[%s7489_s26 + $0x68] sm:$0xff] %v4636_v14 }
 0xaeb   : > { %v6217_v15 = vpop.eup %6216  ;;  %4653 = vst [vmem:[%s7489_s26 + $0x70] sm:$0xff] %v4637_v26 }
 0xaec   : > { %v4638_v59 = vmul.f32 %v6217_v15, %v7483_v50 }
 0xaee   : > { %4654 = vst [vmem:[%s7489_s26 + $0x78] sm:$0xff] %v4638_v59 }
 0xaef   : > { %6388 = shalt.err (!%p6385_p0)
}
 0xaf0   : > { %s6389_s20 = scalar_lea.hbm %s7525_s8, 2048  ;;  %s6393_s10 = scalar_lea.hbm %s7579_s6, 4096 }
 0xaf1   : > { %p6390_p4 = scmp.ne.s32.totalorder %s7525_s8, %s6389_s20  ;;  %p6394_p6 = scmp.lt.u32.totalorder %s7525_s8, %s7579_s6 }
 0xaf2   : > { %p6395_p3 = scmp.lt.u32.totalorder %s6393_s10, %s6389_s20  ;;  %p6397_p7 = scmp.lt.u32.totalorder %s6389_s20, %s7525_s8 }
 0xaf3   : > { %p6391_p11 = pnand %p6390_p4, %p6663_p10 }
 0xaf4   : > { %p6396_p5 = por %p6395_p3, %p6394_p6 }
 0xaf5   : > { %p6392_p8 = pneg %p6391_p11 }
 0xaf6   : > { %p6398_p12 = por %p6397_p7, %p6396_p5 }
 0xaf8   : > { %p6399_p2 = pnand %p6398_p12, %p6392_p8 }
 0xafa   : > { %6402 = shalt.err (!%p6399_p2)
}
 0xafb   : > { %s6470_s11 = smov 128   ;;  %s6471_s9 = smov 8  }
 0xafc   : > { %5768 = dma.vmem_to_hbm [thread:$0]  (%p6663_p10), %s7527_s19, 2048, %s7525_s8, %s4656_s25, %s6470_s11, %s6470_s11, %s6471_s9  }
 0xafd PF: > { %s4684_s17 = sand.u32 1, %s6441_s21   ;;  %p7632_p1 = scmp.ne.s32.totalorder %s7595_s28, 0 }
 0xafe   : > { %p7633_p13 = scmp.ge.s32.totalorder %s6453_s24, 2  ;;  %s4685_s12 = scalar_lea.sflag [#allocation4], %s4684_s17 }
 0xb00   : > { %p5788_p9 = pnand %p7633_p13, %p7632_p1 }
 0xb02   : > { %6436 = dma.done.wait (!%p5788_p9), %s4685_s12, 2048  }
 0xb03   : > { %6438 = vsyncadd (!%p5788_p9), %s4685_s12, 4294965248  ;;  %p21_p0 = scmp.ge.s32.totalorder %s6653_s16, 4   ;;  %s7634_s21 = smov %s6445_s22 }
 0xb04   : > { %s7635_s22 = smov %s6449_s23  ;;  %s7636_s23 = smov %s6669_s14 }
 0xb05   : > { %s7637_s24 = smov %s6653_s16  ;;  %23 = sbr.rel (!%p21_p0) target bundleno = 7 (0x7), region = 106 }
 0xb0c   :  { %4690 = vsyncpa [#allocation3], 1 }
 0xb0d   :  { %4692 = vsyncpa [#allocation3 + $0x1], 1 }
 0xb0e   :  { %4693 = vsyncpa [#allocation6], 1 }
 0xb0f   :  { %4695 = vsyncpa [#allocation6 + $0x1], 1 }
 0xb10   :  { %4696 = vsyncpa [#allocation9], 1 }
 0xb11   :  { %4697 = vsyncpa [#allocation4], 1 }
 0xb12   :  { %4699 = vsyncpa [#allocation4 + $0x1], 1 }

</bundles_post_ra>
